<compile_context>
chip_gen: v6e
topology: v6e:2x2x1
jax: 0.10.0
libtpu: 0.0.40
codegen_flags: <defaults>
</compile_context>

<pallas_src>
import numpy as np
import jax
import jax.numpy as jnp
from jax import lax
from jax.experimental import pallas as pl
from jax.experimental.pallas import tpu as pltpu


_CHUNK = 16  # gaussians per early-exit check (inner loop fully unrolled)


def _round_up(x: int, m: int) -> int:
    return ((x + m - 1) // m) * m


def _composite_kernel(params_ref, out_ref, t_ref):
    # params_ref: SMEM (9, N_pad) f32, depth-sorted front-to-back:
    #   row 0: mean_x                 row 1: mean_y
    #   row 2: -0.5*inv00             row 3: -0.5*(inv01+inv10)   row 4: -0.5*inv11
    #   row 5: opacity*valid/(2*pi*sqrt(det))   rows 6..8: rgb
    #   (zero-padded gaussians are exact no-ops: alpha == 0, T factor == 1.0 in f32)
    # out_ref: VMEM (3, TH, TW) image tile (channel-major), used as accumulator.
    # t_ref:   VMEM (TH, TW) transmittance scratch.
    TH = out_ref.shape[1]
    TW = out_ref.shape[2]
    n_pad = params_ref.shape[1]
    n_chunks = n_pad // _CHUNK

    row0 = pl.program_id(0) * TH
    col0 = pl.program_id(1) * TW
    ys = (lax.broadcasted_iota(jnp.int32, (TH, TW), 0) + row0).astype(jnp.float32)
    xs = (lax.broadcasted_iota(jnp.int32, (TH, TW), 1) + col0).astype(jnp.float32)

    t_ref[...] = jnp.ones((TH, TW), jnp.float32)
    out_ref[...] = jnp.zeros((3, TH, TW), jnp.float32)

    @pl.loop(0, n_chunks)
    def _(c):
        # Early exit: front-to-back order makes T monotonically decreasing, so
        # once the whole tile is numerically opaque the rest of the loop is
        # dead work.  (XLU max reduce per chunk ~ free vs 16 gaussians of VPU.)
        @pl.when(jnp.max(t_ref[...]) >= 1e-6)
        def _():
            base = c * _CHUNK

            def body(j, carry):
                T, ar, ag, ab = carry
                i = base + j
                mx = params_ref[0, i]
                my = params_ref[1, i]
                qa = params_ref[2, i]
                qb = params_ref[3, i]
                qc = params_ref[4, i]
                on = params_ref[5, i]
                cr = params_ref[6, i]
                cg = params_ref[7, i]
                cb = params_ref[8, i]

                dx = xs - mx
                dy = ys - my
                # exponent already carries the -0.5; opacity*valid*norm folded into `on`
                alpha = jnp.exp(qa * dx * dx + qb * (dx * dy) + qc * dy * dy) * on
                w = alpha * T                        # weight = alpha * transmittance
                ar = ar + w * cr
                ag = ag + w * cg
                ab = ab + w * cb
                T = T * (1.0 - alpha + 1e-10)        # front-to-back cumprod(beta + 1e-10)
                return T, ar, ag, ab

            init = (t_ref[...], out_ref[0], out_ref[1], out_ref[2])
            T, ar, ag, ab = lax.fori_loop(0, _CHUNK, body, init, unroll=True)
            t_ref[...] = T
            out_ref[0] = ar
            out_ref[1] = ag
            out_ref[2] = ab


class GaussianRenderer:
    """JAX/Pallas port of the PyTorch GaussianRenderer (forward only)."""

    def __init__(self, image_height: int, image_width: int):
        self.H = image_height
        self.W = image_width

    # --- per-gaussian projection math (tiny N x 3 matmuls / 2x2 algebra, plain JAX) ---
    def compute_projection(self, means3D, covs3d, K, R, t):
        cam = means3D @ R.T + t[None, :]                 # (N, 3)
        z = cam[:, 2]
        depths = jnp.maximum(z, 1.0)                     # clamp(min=1.0)
        screen = cam @ K.T
        means2D = screen[:, :2] / screen[:, 2:3]

        N = means3D.shape[0]
        fx = K[0, 0]
        fy = K[1, 1]
        J = jnp.zeros((N, 2, 3), means3D.dtype)
        J = J.at[:, 0, 0].set(fx / z)
        J = J.at[:, 0, 2].set(-fx * cam[:, 0] / (z * z))
        J = J.at[:, 1, 1].set(fy / z)
        J = J.at[:, 1, 2].set(-fy * cam[:, 1] / (z * z))

        covs_cam = jnp.einsum('ij,njk,lk->nil', R, covs3d, R)      # R C R^T
        covs2D = jnp.einsum('nij,njk,nlk->nil', J, covs_cam, J)    # J Cc J^T
        return means2D, covs2D, depths

    def __call__(self, means3D, covs3d, colors, opacities, K, R, t):
        N = means3D.shape[0]
        H, W = self.H, self.W

        means2D, covs2D, depths = self.compute_projection(means3D, covs3d, K, R, t)
        valid = (depths > 1.0) & (depths < 50.0)

        # TODO(synk): depth argsort has no clean Pallas equivalent; done in JAX.
        order = jnp.argsort(depths)                      # ascending, front-to-back
        means2D = means2D[order]
        covs2D = covs2D[order]
        colors_s = colors[order]
        opac_s = opacities[order].reshape(N)
        valid_s = valid[order].astype(jnp.float32)

        eps = 1e-4
        c = covs2D + eps * jnp.eye(2, dtype=covs2D.dtype)[None]
        c00, c01 = c[:, 0, 0], c[:, 0, 1]
        c10, c11 = c[:, 1, 0], c[:, 1, 1]
        det = c00 * c11 - c01 * c10
        inv00 = c11 / det
        inv01 = -c01 / det
        inv10 = -c10 / det
        inv11 = c00 / det
        norm = 1.0 / (2.0 * np.pi * jnp.sqrt(det))

        # Folded per-gaussian scalars, long axis last -> SMEM pads only N -> 128-mult.
        params = jnp.stack([
            means2D[:, 0], means2D[:, 1],
            -0.5 * inv00, -0.5 * (inv01 + inv10), -0.5 * inv11,
            opac_s * valid_s * norm,
            colors_s[:, 0], colors_s[:, 1], colors_s[:, 2],
        ], axis=0).astype(jnp.float32)                   # (9, N)

        n_pad = _round_up(max(N, _CHUNK), _CHUNK)
        if n_pad != N:
            params = jnp.pad(params, ((0, 0), (0, n_pad - N)))   # zero pad = exact no-op

        # Lane-dense tiling: TW = 128 full lanes, TH*TW ~ 4096 px per tile.
        TH = min(32, _round_up(H, 8))
        TW = 128
        H_pad = _round_up(H, TH)
        W_pad = _round_up(W, TW)

        out_chw = pl.pallas_call(
            _composite_kernel,
            out_shape=jax.ShapeDtypeStruct((3, H_pad, W_pad), jnp.float32),
            grid=(H_pad // TH, W_pad // TW),
            in_specs=[pl.BlockSpec(memory_space=pltpu.MemorySpace.SMEM)],
            out_specs=pl.BlockSpec((3, TH, TW), lambda i, j: (0, i, j)),
            scratch_shapes=[pltpu.VMEM((TH, TW), jnp.float32)],
            compiler_params=pltpu.CompilerParams(
                dimension_semantics=("parallel", "parallel")),
        )(params)

        return jnp.transpose(out_chw, (1, 2, 0))[:H, :W, :]     # (H, W, 3)


# ----------------------- pure-JAX reference (for checking) -----------------------
def reference_forward(renderer, means3D, covs3d, colors, opacities, K, R, t):
    H, W = renderer.H, renderer.W
    N = means3D.shape[0]
    means2D, covs2D, depths = renderer.compute_projection(means3D, covs3d, K, R, t)
    valid = (depths > 1.0) & (depths < 50.0)
    order = jnp.argsort(depths)
    means2D = means2D[order]
    covs2D = covs2D[order]
    colors_s = colors[order]
    opac = opacities[order]
    valid = valid[order]

    ys, xs = jnp.meshgrid(jnp.arange(H, dtype=jnp.float32),
                          jnp.arange(W, dtype=jnp.float32), indexing='ij')
    pixels = jnp.stack([xs, ys], axis=-1)                 # (H, W, 2)
    dx = pixels[None] - means2D.reshape(N, 1, 1, 2)
    c = covs2D + 1e-4 * jnp.eye(2, dtype=covs2D.dtype)[None]
    det = c[:, 0, 0] * c[:, 1, 1] - c[:, 0, 1] * c[:, 1, 0]
    inv = jnp.linalg.inv(c)
    expo = -0.5 * jnp.einsum('nijk,nkl,nijl->nij', dx, inv, dx)
    gauss = jnp.exp(expo) / (2.0 * np.pi * jnp.sqrt(det))[:, None, None]
    gauss = gauss * valid.astype(jnp.float32)[:, None, None]
    alphas = opac.reshape(N, 1, 1) * gauss
    cols = jnp.broadcast_to(colors_s.reshape(N, 3, 1, 1),
                            (N, 3, H, W)).transpose(0, 2, 3, 1)
    beta = 1.0 - alphas
    T = jnp.cumprod(beta + 1e-10, axis=0)
    T = jnp.concatenate([jnp.ones((1, H, W), jnp.float32), T[:-1]], axis=0)
    weights = alphas * T
    return (weights[..., None] * cols).sum(axis=0)


if __name__ == "__main__":
    key = jax.random.PRNGKey(0)
    N, H, W = 48, 40, 180          # exercises a 2x2 tile grid and 3 gaussian chunks
    k1, k2, k3, k4 = jax.random.split(key, 4)

    xy = jax.random.uniform(k1, (N, 2), minval=-1.0, maxval=1.0)
    z = jax.random.uniform(k2, (N, 1), minval=2.0, maxval=10.0)
    means3D = jnp.concatenate([xy, z], axis=-1).astype(jnp.float32)

    A = jax.random.normal(k3, (N, 3, 3), dtype=jnp.float32) * 0.1
    covs3d = jnp.einsum('nij,nkj->nik', A, A) + 0.05 * jnp.eye(3, dtype=jnp.float32)[None]

    colors = jax.random.uniform(k4, (N, 3), dtype=jnp.float32)
    opacities = jax.random.uniform(jax.random.fold_in(key, 5), (N,),
                                   minval=0.3, maxval=0.9).astype(jnp.float32)

    K = jnp.array([[70.0, 0.0, W / 2.0],
                   [0.0, 25.0, H / 2.0],
                   [0.0, 0.0, 1.0]], dtype=jnp.float32)
    th = 0.1
    R = jnp.array([[np.cos(th), 0.0, np.sin(th)],
                   [0.0, 1.0, 0.0],
                   [-np.sin(th), 0.0, np.cos(th)]], dtype=jnp.float32)
    t = jnp.array([0.0, 0.0, 0.5], dtype=jnp.float32)

    renderer = GaussianRenderer(H, W)
    rendered = jax.block_until_ready(renderer(means3D, covs3d, colors, opacities, K, R, t))

    ref = jax.block_until_ready(
        reference_forward(renderer, means3D, covs3d, colors, opacities, K, R, t))

    assert rendered.shape == (H, W, 3), rendered.shape
    err = float(np.max(np.abs(np.asarray(rendered) - np.asarray(ref))))
    assert np.allclose(np.asarray(rendered), np.asarray(ref), rtol=1e-4, atol=2e-4), err

    print("KERNEL_OK")
</pallas_src>

<mosaic_0001>
module attributes {stable_mosaic.version = 11 : i64} {
  func.func @_composite_kernel(%arg0: i32, %arg1: i32, %arg2: memref<9x48xf32, #tpu.memory_space<smem>>, %arg3: memref<3x32x128xf32, #tpu.memory_space<vmem>>, %arg4: memref<32x128xf32, #tpu.memory_space<vmem>>) attributes {dimension_semantics = [#tpu.dimension_semantics<parallel>, #tpu.dimension_semantics<parallel>], iteration_bounds = array<i64: 2, 2>, scalar_prefetch = 0 : i64, scratch_operands = 1 : i64, tpu.core_type = #tpu.core_type<tc>, window_params = [{transform_indices = @transform_0, window_bounds = array<i64: 9, 48>}, {transform_indices = @transform_1, window_bounds = array<i64: 3, 32, 128>}]} {
    %c32_i32 = arith.constant 32 : i32
    %0 = arith.muli %arg0, %c32_i32 : i32
    %c128_i32 = arith.constant 128 : i32
    %1 = arith.muli %arg1, %c128_i32 : i32
    %2 = tpu.iota {dimensions = array<i32: 0>} : vector<32x128xi32>
    %3 = vector.broadcast %0 : i32 to vector<32x128xi32>
    %4 = arith.addi %2, %3 : vector<32x128xi32>
    %5 = arith.sitofp %4 : vector<32x128xi32> to vector<32x128xf32>
    %6 = tpu.iota {dimensions = array<i32: 1>} : vector<32x128xi32>
    %7 = vector.broadcast %1 : i32 to vector<32x128xi32>
    %8 = arith.addi %6, %7 : vector<32x128xi32>
    %9 = arith.sitofp %8 : vector<32x128xi32> to vector<32x128xf32>
    %cst = arith.constant 1.000000e+00 : f32
    %10 = vector.broadcast %cst : f32 to vector<32x128xf32>
    %c0 = arith.constant 0 : index
    %c0_0 = arith.constant 0 : index
    %11 = vector.load %arg4[%c0, %c0_0] : memref<32x128xf32, #tpu.memory_space<vmem>>, vector<32x128xf32>
    tpu.vector_store %arg4[%c0, %c0_0], %10 {strides = array<i32>} : memref<32x128xf32, #tpu.memory_space<vmem>>, vector<32x128xf32>,
    %cst_1 = arith.constant 0.000000e+00 : f32
    %12 = vector.broadcast %cst_1 : f32 to vector<3x32x128xf32>
    %c0_2 = arith.constant 0 : index
    %c0_3 = arith.constant 0 : index
    %c0_4 = arith.constant 0 : index
    %13 = vector.load %arg3[%c0_2, %c0_3, %c0_4] : memref<3x32x128xf32, #tpu.memory_space<vmem>>, vector<3x32x128xf32>
    tpu.vector_store %arg3[%c0_2, %c0_3, %c0_4], %12 {strides = array<i32>} : memref<3x32x128xf32, #tpu.memory_space<vmem>>, vector<3x32x128xf32>,
    %c0_i32 = arith.constant 0 : i32
    %c3_i32 = arith.constant 3 : i32
    %14 = arith.addi %c0_i32, %c3_i32 : i32
    %c1_i32 = arith.constant 1 : i32
    scf.for %arg5 = %c0_i32 to %14 step %c1_i32  : i32 {
      %c1_i32_6 = arith.constant 1 : i32
      %15 = arith.muli %arg5, %c1_i32_6 : i32
      %c0_i32_7 = arith.constant 0 : i32
      %16 = arith.addi %c0_i32_7, %15 : i32
      %c0_8 = arith.constant 0 : index
      %c0_9 = arith.constant 0 : index
      %17 = vector.load %arg4[%c0_8, %c0_9] : memref<32x128xf32, #tpu.memory_space<vmem>>, vector<32x128xf32>
      %18 = vector.shape_cast %17 : vector<32x128xf32> to vector<1x32x128xf32>
      %cst_10 = arith.constant dense<0xFF800000> : vector<1xf32>
      %19 = vector.multi_reduction <maximumf>, %18, %cst_10 [1, 2] : vector<1x32x128xf32> to vector<1xf32>
      %20 = vector.shape_cast %19 : vector<1xf32> to vector<1x1x1xf32>
      %21 = vector.extract %20[0, 0, 0] : f32 from vector<1x1x1xf32>
      %cst_11 = arith.constant 9.99999997E-7 : f32
      %22 = arith.cmpf oge, %21, %cst_11 : f32
      %23 = arith.extui %22 : i1 to i32
      %c0_i32_12 = arith.constant 0 : i32
      %24 = arith.cmpi ne, %23, %c0_i32_12 : i32
      scf.if %24 {
        %c16_i32 = arith.constant 16 : i32
        %25 = arith.muli %16, %c16_i32 : i32
        %c0_13 = arith.constant 0 : index
        %c0_14 = arith.constant 0 : index
        %26 = vector.load %arg4[%c0_13, %c0_14] : memref<32x128xf32, #tpu.memory_space<vmem>>, vector<32x128xf32>
        %c0_15 = arith.constant 0 : index
        %c0_16 = arith.constant 0 : index
        %c0_17 = arith.constant 0 : index
        %27 = vector.load %arg3[%c0_15, %c0_16, %c0_17] : memref<3x32x128xf32, #tpu.memory_space<vmem>>, vector<1x32x128xf32>
        %28 = vector.shape_cast %27 : vector<1x32x128xf32> to vector<32x128xf32>
        %c1 = arith.constant 1 : index
        %c0_18 = arith.constant 0 : index
        %c0_19 = arith.constant 0 : index
        %29 = vector.load %arg3[%c1, %c0_18, %c0_19] : memref<3x32x128xf32, #tpu.memory_space<vmem>>, vector<1x32x128xf32>
        %30 = vector.shape_cast %29 : vector<1x32x128xf32> to vector<32x128xf32>
        %c2 = arith.constant 2 : index
        %c0_20 = arith.constant 0 : index
        %c0_21 = arith.constant 0 : index
        %31 = vector.load %arg3[%c2, %c0_20, %c0_21] : memref<3x32x128xf32, #tpu.memory_space<vmem>>, vector<1x32x128xf32>
        %32 = vector.shape_cast %31 : vector<1x32x128xf32> to vector<32x128xf32>
        %c0_i32_22 = arith.constant 0 : i32
        %33 = arith.addi %25, %c0_i32_22 : i32
        %c0_23 = arith.constant 0 : index
        %34 = arith.index_cast %33 : i32 to index
        %35 = memref.load %arg2[%c0_23, %34] : memref<9x48xf32, #tpu.memory_space<smem>>
        %c1_24 = arith.constant 1 : index
        %36 = arith.index_cast %33 : i32 to index
        %37 = memref.load %arg2[%c1_24, %36] : memref<9x48xf32, #tpu.memory_space<smem>>
        %c2_25 = arith.constant 2 : index
        %38 = arith.index_cast %33 : i32 to index
        %39 = memref.load %arg2[%c2_25, %38] : memref<9x48xf32, #tpu.memory_space<smem>>
        %c3 = arith.constant 3 : index
        %40 = arith.index_cast %33 : i32 to index
        %41 = memref.load %arg2[%c3, %40] : memref<9x48xf32, #tpu.memory_space<smem>>
        %c4 = arith.constant 4 : index
        %42 = arith.index_cast %33 : i32 to index
        %43 = memref.load %arg2[%c4, %42] : memref<9x48xf32, #tpu.memory_space<smem>>
        %c5 = arith.constant 5 : index
        %44 = arith.index_cast %33 : i32 to index
        %45 = memref.load %arg2[%c5, %44] : memref<9x48xf32, #tpu.memory_space<smem>>
        %c6 = arith.constant 6 : index
        %46 = arith.index_cast %33 : i32 to index
        %47 = memref.load %arg2[%c6, %46] : memref<9x48xf32, #tpu.memory_space<smem>>
        %c7 = arith.constant 7 : index
        %48 = arith.index_cast %33 : i32 to index
        %49 = memref.load %arg2[%c7, %48] : memref<9x48xf32, #tpu.memory_space<smem>>
        %c8 = arith.constant 8 : index
        %50 = arith.index_cast %33 : i32 to index
        %51 = memref.load %arg2[%c8, %50] : memref<9x48xf32, #tpu.memory_space<smem>>
        %52 = vector.broadcast %35 : f32 to vector<32x128xf32>
        %53 = arith.subf %9, %52 : vector<32x128xf32>
        %54 = vector.broadcast %37 : f32 to vector<32x128xf32>
        %55 = arith.subf %5, %54 : vector<32x128xf32>
        %56 = vector.broadcast %39 : f32 to vector<32x128xf32>
        %57 = arith.mulf %56, %53 : vector<32x128xf32>
        %58 = arith.mulf %57, %53 : vector<32x128xf32>
        %59 = arith.mulf %53, %55 : vector<32x128xf32>
        %60 = vector.broadcast %41 : f32 to vector<32x128xf32>
        %61 = arith.mulf %60, %59 : vector<32x128xf32>
        %62 = arith.addf %58, %61 : vector<32x128xf32>
        %63 = vector.broadcast %43 : f32 to vector<32x128xf32>
        %64 = arith.mulf %63, %55 : vector<32x128xf32>
        %65 = arith.mulf %64, %55 : vector<32x128xf32>
        %66 = arith.addf %62, %65 : vector<32x128xf32>
        %67 = math.exp %66 : vector<32x128xf32>
        %68 = vector.broadcast %45 : f32 to vector<32x128xf32>
        %69 = arith.mulf %67, %68 : vector<32x128xf32>
        %70 = arith.mulf %69, %26 : vector<32x128xf32>
        %71 = vector.broadcast %47 : f32 to vector<32x128xf32>
        %72 = arith.mulf %70, %71 : vector<32x128xf32>
        %73 = arith.addf %28, %72 : vector<32x128xf32>
        %74 = vector.broadcast %49 : f32 to vector<32x128xf32>
        %75 = arith.mulf %70, %74 : vector<32x128xf32>
        %76 = arith.addf %30, %75 : vector<32x128xf32>
        %77 = vector.broadcast %51 : f32 to vector<32x128xf32>
        %78 = arith.mulf %70, %77 : vector<32x128xf32>
        %79 = arith.addf %32, %78 : vector<32x128xf32>
        %cst_26 = arith.constant 1.000000e+00 : f32
        %80 = vector.broadcast %cst_26 : f32 to vector<32x128xf32>
        %81 = arith.subf %80, %69 : vector<32x128xf32>
        %cst_27 = arith.constant 1.000000e-10 : f32
        %82 = vector.broadcast %cst_27 : f32 to vector<32x128xf32>
        %83 = arith.addf %81, %82 : vector<32x128xf32>
        %84 = arith.mulf %26, %83 : vector<32x128xf32>
        %c1_i32_28 = arith.constant 1 : i32
        %85 = arith.addi %25, %c1_i32_28 : i32
        %c0_29 = arith.constant 0 : index
        %86 = arith.index_cast %85 : i32 to index
        %87 = memref.load %arg2[%c0_29, %86] : memref<9x48xf32, #tpu.memory_space<smem>>
        %c1_30 = arith.constant 1 : index
        %88 = arith.index_cast %85 : i32 to index
        %89 = memref.load %arg2[%c1_30, %88] : memref<9x48xf32, #tpu.memory_space<smem>>
        %c2_31 = arith.constant 2 : index
        %90 = arith.index_cast %85 : i32 to index
        %91 = memref.load %arg2[%c2_31, %90] : memref<9x48xf32, #tpu.memory_space<smem>>
        %c3_32 = arith.constant 3 : index
        %92 = arith.index_cast %85 : i32 to index
        %93 = memref.load %arg2[%c3_32, %92] : memref<9x48xf32, #tpu.memory_space<smem>>
        %c4_33 = arith.constant 4 : index
        %94 = arith.index_cast %85 : i32 to index
        %95 = memref.load %arg2[%c4_33, %94] : memref<9x48xf32, #tpu.memory_space<smem>>
        %c5_34 = arith.constant 5 : index
        %96 = arith.index_cast %85 : i32 to index
        %97 = memref.load %arg2[%c5_34, %96] : memref<9x48xf32, #tpu.memory_space<smem>>
        %c6_35 = arith.constant 6 : index
        %98 = arith.index_cast %85 : i32 to index
        %99 = memref.load %arg2[%c6_35, %98] : memref<9x48xf32, #tpu.memory_space<smem>>
        %c7_36 = arith.constant 7 : index
        %100 = arith.index_cast %85 : i32 to index
        %101 = memref.load %arg2[%c7_36, %100] : memref<9x48xf32, #tpu.memory_space<smem>>
        %c8_37 = arith.constant 8 : index
        %102 = arith.index_cast %85 : i32 to index
        %103 = memref.load %arg2[%c8_37, %102] : memref<9x48xf32, #tpu.memory_space<smem>>
        %104 = vector.broadcast %87 : f32 to vector<32x128xf32>
        %105 = arith.subf %9, %104 : vector<32x128xf32>
        %106 = vector.broadcast %89 : f32 to vector<32x128xf32>
        %107 = arith.subf %5, %106 : vector<32x128xf32>
        %108 = vector.broadcast %91 : f32 to vector<32x128xf32>
        %109 = arith.mulf %108, %105 : vector<32x128xf32>
        %110 = arith.mulf %109, %105 : vector<32x128xf32>
        %111 = arith.mulf %105, %107 : vector<32x128xf32>
        %112 = vector.broadcast %93 : f32 to vector<32x128xf32>
        %113 = arith.mulf %112, %111 : vector<32x128xf32>
        %114 = arith.addf %110, %113 : vector<32x128xf32>
        %115 = vector.broadcast %95 : f32 to vector<32x128xf32>
        %116 = arith.mulf %115, %107 : vector<32x128xf32>
        %117 = arith.mulf %116, %107 : vector<32x128xf32>
        %118 = arith.addf %114, %117 : vector<32x128xf32>
        %119 = math.exp %118 : vector<32x128xf32>
        %120 = vector.broadcast %97 : f32 to vector<32x128xf32>
        %121 = arith.mulf %119, %120 : vector<32x128xf32>
        %122 = arith.mulf %121, %84 : vector<32x128xf32>
        %123 = vector.broadcast %99 : f32 to vector<32x128xf32>
        %124 = arith.mulf %122, %123 : vector<32x128xf32>
        %125 = arith.addf %73, %124 : vector<32x128xf32>
        %126 = vector.broadcast %101 : f32 to vector<32x128xf32>
        %127 = arith.mulf %122, %126 : vector<32x128xf32>
        %128 = arith.addf %76, %127 : vector<32x128xf32>
        %129 = vector.broadcast %103 : f32 to vector<32x128xf32>
        %130 = arith.mulf %122, %129 : vector<32x128xf32>
        %131 = arith.addf %79, %130 : vector<32x128xf32>
        %cst_38 = arith.constant 1.000000e+00 : f32
        %132 = vector.broadcast %cst_38 : f32 to vector<32x128xf32>
        %133 = arith.subf %132, %121 : vector<32x128xf32>
        %cst_39 = arith.constant 1.000000e-10 : f32
        %134 = vector.broadcast %cst_39 : f32 to vector<32x128xf32>
        %135 = arith.addf %133, %134 : vector<32x128xf32>
        %136 = arith.mulf %84, %135 : vector<32x128xf32>
        %c2_i32 = arith.constant 2 : i32
        %137 = arith.addi %25, %c2_i32 : i32
        %c0_40 = arith.constant 0 : index
        %138 = arith.index_cast %137 : i32 to index
        %139 = memref.load %arg2[%c0_40, %138] : memref<9x48xf32, #tpu.memory_space<smem>>
        %c1_41 = arith.constant 1 : index
        %140 = arith.index_cast %137 : i32 to index
        %141 = memref.load %arg2[%c1_41, %140] : memref<9x48xf32, #tpu.memory_space<smem>>
        %c2_42 = arith.constant 2 : index
        %142 = arith.index_cast %137 : i32 to index
        %143 = memref.load %arg2[%c2_42, %142] : memref<9x48xf32, #tpu.memory_space<smem>>
        %c3_43 = arith.constant 3 : index
        %144 = arith.index_cast %137 : i32 to index
        %145 = memref.load %arg2[%c3_43, %144] : memref<9x48xf32, #tpu.memory_space<smem>>
        %c4_44 = arith.constant 4 : index
        %146 = arith.index_cast %137 : i32 to index
        %147 = memref.load %arg2[%c4_44, %146] : memref<9x48xf32, #tpu.memory_space<smem>>
        %c5_45 = arith.constant 5 : index
        %148 = arith.index_cast %137 : i32 to index
        %149 = memref.load %arg2[%c5_45, %148] : memref<9x48xf32, #tpu.memory_space<smem>>
        %c6_46 = arith.constant 6 : index
        %150 = arith.index_cast %137 : i32 to index
        %151 = memref.load %arg2[%c6_46, %150] : memref<9x48xf32, #tpu.memory_space<smem>>
        %c7_47 = arith.constant 7 : index
        %152 = arith.index_cast %137 : i32 to index
        %153 = memref.load %arg2[%c7_47, %152] : memref<9x48xf32, #tpu.memory_space<smem>>
        %c8_48 = arith.constant 8 : index
        %154 = arith.index_cast %137 : i32 to index
        %155 = memref.load %arg2[%c8_48, %154] : memref<9x48xf32, #tpu.memory_space<smem>>
        %156 = vector.broadcast %139 : f32 to vector<32x128xf32>
        %157 = arith.subf %9, %156 : vector<32x128xf32>
        %158 = vector.broadcast %141 : f32 to vector<32x128xf32>
        %159 = arith.subf %5, %158 : vector<32x128xf32>
        %160 = vector.broadcast %143 : f32 to vector<32x128xf32>
        %161 = arith.mulf %160, %157 : vector<32x128xf32>
        %162 = arith.mulf %161, %157 : vector<32x128xf32>
        %163 = arith.mulf %157, %159 : vector<32x128xf32>
        %164 = vector.broadcast %145 : f32 to vector<32x128xf32>
        %165 = arith.mulf %164, %163 : vector<32x128xf32>
        %166 = arith.addf %162, %165 : vector<32x128xf32>
        %167 = vector.broadcast %147 : f32 to vector<32x128xf32>
        %168 = arith.mulf %167, %159 : vector<32x128xf32>
        %169 = arith.mulf %168, %159 : vector<32x128xf32>
        %170 = arith.addf %166, %169 : vector<32x128xf32>
        %171 = math.exp %170 : vector<32x128xf32>
        %172 = vector.broadcast %149 : f32 to vector<32x128xf32>
        %173 = arith.mulf %171, %172 : vector<32x128xf32>
        %174 = arith.mulf %173, %136 : vector<32x128xf32>
        %175 = vector.broadcast %151 : f32 to vector<32x128xf32>
        %176 = arith.mulf %174, %175 : vector<32x128xf32>
        %177 = arith.addf %125, %176 : vector<32x128xf32>
        %178 = vector.broadcast %153 : f32 to vector<32x128xf32>
        %179 = arith.mulf %174, %178 : vector<32x128xf32>
        %180 = arith.addf %128, %179 : vector<32x128xf32>
        %181 = vector.broadcast %155 : f32 to vector<32x128xf32>
        %182 = arith.mulf %174, %181 : vector<32x128xf32>
        %183 = arith.addf %131, %182 : vector<32x128xf32>
        %cst_49 = arith.constant 1.000000e+00 : f32
        %184 = vector.broadcast %cst_49 : f32 to vector<32x128xf32>
        %185 = arith.subf %184, %173 : vector<32x128xf32>
        %cst_50 = arith.constant 1.000000e-10 : f32
        %186 = vector.broadcast %cst_50 : f32 to vector<32x128xf32>
        %187 = arith.addf %185, %186 : vector<32x128xf32>
        %188 = arith.mulf %136, %187 : vector<32x128xf32>
        %c3_i32_51 = arith.constant 3 : i32
        %189 = arith.addi %25, %c3_i32_51 : i32
        %c0_52 = arith.constant 0 : index
        %190 = arith.index_cast %189 : i32 to index
        %191 = memref.load %arg2[%c0_52, %190] : memref<9x48xf32, #tpu.memory_space<smem>>
        %c1_53 = arith.constant 1 : index
        %192 = arith.index_cast %189 : i32 to index
        %193 = memref.load %arg2[%c1_53, %192] : memref<9x48xf32, #tpu.memory_space<smem>>
        %c2_54 = arith.constant 2 : index
        %194 = arith.index_cast %189 : i32 to index
        %195 = memref.load %arg2[%c2_54, %194] : memref<9x48xf32, #tpu.memory_space<smem>>
        %c3_55 = arith.constant 3 : index
        %196 = arith.index_cast %189 : i32 to index
        %197 = memref.load %arg2[%c3_55, %196] : memref<9x48xf32, #tpu.memory_space<smem>>
        %c4_56 = arith.constant 4 : index
        %198 = arith.index_cast %189 : i32 to index
        %199 = memref.load %arg2[%c4_56, %198] : memref<9x48xf32, #tpu.memory_space<smem>>
        %c5_57 = arith.constant 5 : index
        %200 = arith.index_cast %189 : i32 to index
        %201 = memref.load %arg2[%c5_57, %200] : memref<9x48xf32, #tpu.memory_space<smem>>
        %c6_58 = arith.constant 6 : index
        %202 = arith.index_cast %189 : i32 to index
        %203 = memref.load %arg2[%c6_58, %202] : memref<9x48xf32, #tpu.memory_space<smem>>
        %c7_59 = arith.constant 7 : index
        %204 = arith.index_cast %189 : i32 to index
        %205 = memref.load %arg2[%c7_59, %204] : memref<9x48xf32, #tpu.memory_space<smem>>
        %c8_60 = arith.constant 8 : index
        %206 = arith.index_cast %189 : i32 to index
        %207 = memref.load %arg2[%c8_60, %206] : memref<9x48xf32, #tpu.memory_space<smem>>
        %208 = vector.broadcast %191 : f32 to vector<32x128xf32>
        %209 = arith.subf %9, %208 : vector<32x128xf32>
        %210 = vector.broadcast %193 : f32 to vector<32x128xf32>
        %211 = arith.subf %5, %210 : vector<32x128xf32>
        %212 = vector.broadcast %195 : f32 to vector<32x128xf32>
        %213 = arith.mulf %212, %209 : vector<32x128xf32>
        %214 = arith.mulf %213, %209 : vector<32x128xf32>
        %215 = arith.mulf %209, %211 : vector<32x128xf32>
        %216 = vector.broadcast %197 : f32 to vector<32x128xf32>
        %217 = arith.mulf %216, %215 : vector<32x128xf32>
        %218 = arith.addf %214, %217 : vector<32x128xf32>
        %219 = vector.broadcast %199 : f32 to vector<32x128xf32>
        %220 = arith.mulf %219, %211 : vector<32x128xf32>
        %221 = arith.mulf %220, %211 : vector<32x128xf32>
        %222 = arith.addf %218, %221 : vector<32x128xf32>
        %223 = math.exp %222 : vector<32x128xf32>
        %224 = vector.broadcast %201 : f32 to vector<32x128xf32>
        %225 = arith.mulf %223, %224 : vector<32x128xf32>
        %226 = arith.mulf %225, %188 : vector<32x128xf32>
        %227 = vector.broadcast %203 : f32 to vector<32x128xf32>
        %228 = arith.mulf %226, %227 : vector<32x128xf32>
        %229 = arith.addf %177, %228 : vector<32x128xf32>
        %230 = vector.broadcast %205 : f32 to vector<32x128xf32>
        %231 = arith.mulf %226, %230 : vector<32x128xf32>
        %232 = arith.addf %180, %231 : vector<32x128xf32>
        %233 = vector.broadcast %207 : f32 to vector<32x128xf32>
        %234 = arith.mulf %226, %233 : vector<32x128xf32>
        %235 = arith.addf %183, %234 : vector<32x128xf32>
        %cst_61 = arith.constant 1.000000e+00 : f32
        %236 = vector.broadcast %cst_61 : f32 to vector<32x128xf32>
        %237 = arith.subf %236, %225 : vector<32x128xf32>
        %cst_62 = arith.constant 1.000000e-10 : f32
        %238 = vector.broadcast %cst_62 : f32 to vector<32x128xf32>
        %239 = arith.addf %237, %238 : vector<32x128xf32>
        %240 = arith.mulf %188, %239 : vector<32x128xf32>
        %c4_i32 = arith.constant 4 : i32
        %241 = arith.addi %25, %c4_i32 : i32
        %c0_63 = arith.constant 0 : index
        %242 = arith.index_cast %241 : i32 to index
        %243 = memref.load %arg2[%c0_63, %242] : memref<9x48xf32, #tpu.memory_space<smem>>
        %c1_64 = arith.constant 1 : index
        %244 = arith.index_cast %241 : i32 to index
        %245 = memref.load %arg2[%c1_64, %244] : memref<9x48xf32, #tpu.memory_space<smem>>
        %c2_65 = arith.constant 2 : index
        %246 = arith.index_cast %241 : i32 to index
        %247 = memref.load %arg2[%c2_65, %246] : memref<9x48xf32, #tpu.memory_space<smem>>
        %c3_66 = arith.constant 3 : index
        %248 = arith.index_cast %241 : i32 to index
        %249 = memref.load %arg2[%c3_66, %248] : memref<9x48xf32, #tpu.memory_space<smem>>
        %c4_67 = arith.constant 4 : index
        %250 = arith.index_cast %241 : i32 to index
        %251 = memref.load %arg2[%c4_67, %250] : memref<9x48xf32, #tpu.memory_space<smem>>
        %c5_68 = arith.constant 5 : index
        %252 = arith.index_cast %241 : i32 to index
        %253 = memref.load %arg2[%c5_68, %252] : memref<9x48xf32, #tpu.memory_space<smem>>
        %c6_69 = arith.constant 6 : index
        %254 = arith.index_cast %241 : i32 to index
        %255 = memref.load %arg2[%c6_69, %254] : memref<9x48xf32, #tpu.memory_space<smem>>
        %c7_70 = arith.constant 7 : index
        %256 = arith.index_cast %241 : i32 to index
        %257 = memref.load %arg2[%c7_70, %256] : memref<9x48xf32, #tpu.memory_space<smem>>
        %c8_71 = arith.constant 8 : index
        %258 = arith.index_cast %241 : i32 to index
        %259 = memref.load %arg2[%c8_71, %258] : memref<9x48xf32, #tpu.memory_space<smem>>
        %260 = vector.broadcast %243 : f32 to vector<32x128xf32>
        %261 = arith.subf %9, %260 : vector<32x128xf32>
        %262 = vector.broadcast %245 : f32 to vector<32x128xf32>
        %263 = arith.subf %5, %262 : vector<32x128xf32>
        %264 = vector.broadcast %247 : f32 to vector<32x128xf32>
        %265 = arith.mulf %264, %261 : vector<32x128xf32>
        %266 = arith.mulf %265, %261 : vector<32x128xf32>
        %267 = arith.mulf %261, %263 : vector<32x128xf32>
        %268 = vector.broadcast %249 : f32 to vector<32x128xf32>
        %269 = arith.mulf %268, %267 : vector<32x128xf32>
        %270 = arith.addf %266, %269 : vector<32x128xf32>
        %271 = vector.broadcast %251 : f32 to vector<32x128xf32>
        %272 = arith.mulf %271, %263 : vector<32x128xf32>
        %273 = arith.mulf %272, %263 : vector<32x128xf32>
        %274 = arith.addf %270, %273 : vector<32x128xf32>
        %275 = math.exp %274 : vector<32x128xf32>
        %276 = vector.broadcast %253 : f32 to vector<32x128xf32>
        %277 = arith.mulf %275, %276 : vector<32x128xf32>
        %278 = arith.mulf %277, %240 : vector<32x128xf32>
        %279 = vector.broadcast %255 : f32 to vector<32x128xf32>
        %280 = arith.mulf %278, %279 : vector<32x128xf32>
        %281 = arith.addf %229, %280 : vector<32x128xf32>
        %282 = vector.broadcast %257 : f32 to vector<32x128xf32>
        %283 = arith.mulf %278, %282 : vector<32x128xf32>
        %284 = arith.addf %232, %283 : vector<32x128xf32>
        %285 = vector.broadcast %259 : f32 to vector<32x128xf32>
        %286 = arith.mulf %278, %285 : vector<32x128xf32>
        %287 = arith.addf %235, %286 : vector<32x128xf32>
        %cst_72 = arith.constant 1.000000e+00 : f32
        %288 = vector.broadcast %cst_72 : f32 to vector<32x128xf32>
        %289 = arith.subf %288, %277 : vector<32x128xf32>
        %cst_73 = arith.constant 1.000000e-10 : f32
        %290 = vector.broadcast %cst_73 : f32 to vector<32x128xf32>
        %291 = arith.addf %289, %290 : vector<32x128xf32>
        %292 = arith.mulf %240, %291 : vector<32x128xf32>
        %c5_i32 = arith.constant 5 : i32
        %293 = arith.addi %25, %c5_i32 : i32
        %c0_74 = arith.constant 0 : index
        %294 = arith.index_cast %293 : i32 to index
        %295 = memref.load %arg2[%c0_74, %294] : memref<9x48xf32, #tpu.memory_space<smem>>
        %c1_75 = arith.constant 1 : index
        %296 = arith.index_cast %293 : i32 to index
        %297 = memref.load %arg2[%c1_75, %296] : memref<9x48xf32, #tpu.memory_space<smem>>
        %c2_76 = arith.constant 2 : index
        %298 = arith.index_cast %293 : i32 to index
        %299 = memref.load %arg2[%c2_76, %298] : memref<9x48xf32, #tpu.memory_space<smem>>
        %c3_77 = arith.constant 3 : index
        %300 = arith.index_cast %293 : i32 to index
        %301 = memref.load %arg2[%c3_77, %300] : memref<9x48xf32, #tpu.memory_space<smem>>
        %c4_78 = arith.constant 4 : index
        %302 = arith.index_cast %293 : i32 to index
        %303 = memref.load %arg2[%c4_78, %302] : memref<9x48xf32, #tpu.memory_space<smem>>
        %c5_79 = arith.constant 5 : index
        %304 = arith.index_cast %293 : i32 to index
        %305 = memref.load %arg2[%c5_79, %304] : memref<9x48xf32, #tpu.memory_space<smem>>
        %c6_80 = arith.constant 6 : index
        %306 = arith.index_cast %293 : i32 to index
        %307 = memref.load %arg2[%c6_80, %306] : memref<9x48xf32, #tpu.memory_space<smem>>
        %c7_81 = arith.constant 7 : index
        %308 = arith.index_cast %293 : i32 to index
        %309 = memref.load %arg2[%c7_81, %308] : memref<9x48xf32, #tpu.memory_space<smem>>
        %c8_82 = arith.constant 8 : index
        %310 = arith.index_cast %293 : i32 to index
        %311 = memref.load %arg2[%c8_82, %310] : memref<9x48xf32, #tpu.memory_space<smem>>
        %312 = vector.broadcast %295 : f32 to vector<32x128xf32>
        %313 = arith.subf %9, %312 : vector<32x128xf32>
        %314 = vector.broadcast %297 : f32 to vector<32x128xf32>
        %315 = arith.subf %5, %314 : vector<32x128xf32>
        %316 = vector.broadcast %299 : f32 to vector<32x128xf32>
        %317 = arith.mulf %316, %313 : vector<32x128xf32>
        %318 = arith.mulf %317, %313 : vector<32x128xf32>
        %319 = arith.mulf %313, %315 : vector<32x128xf32>
        %320 = vector.broadcast %301 : f32 to vector<32x128xf32>
        %321 = arith.mulf %320, %319 : vector<32x128xf32>
        %322 = arith.addf %318, %321 : vector<32x128xf32>
        %323 = vector.broadcast %303 : f32 to vector<32x128xf32>
        %324 = arith.mulf %323, %315 : vector<32x128xf32>
        %325 = arith.mulf %324, %315 : vector<32x128xf32>
        %326 = arith.addf %322, %325 : vector<32x128xf32>
        %327 = math.exp %326 : vector<32x128xf32>
        %328 = vector.broadcast %305 : f32 to vector<32x128xf32>
        %329 = arith.mulf %327, %328 : vector<32x128xf32>
        %330 = arith.mulf %329, %292 : vector<32x128xf32>
        %331 = vector.broadcast %307 : f32 to vector<32x128xf32>
        %332 = arith.mulf %330, %331 : vector<32x128xf32>
        %333 = arith.addf %281, %332 : vector<32x128xf32>
        %334 = vector.broadcast %309 : f32 to vector<32x128xf32>
        %335 = arith.mulf %330, %334 : vector<32x128xf32>
        %336 = arith.addf %284, %335 : vector<32x128xf32>
        %337 = vector.broadcast %311 : f32 to vector<32x128xf32>
        %338 = arith.mulf %330, %337 : vector<32x128xf32>
        %339 = arith.addf %287, %338 : vector<32x128xf32>
        %cst_83 = arith.constant 1.000000e+00 : f32
        %340 = vector.broadcast %cst_83 : f32 to vector<32x128xf32>
        %341 = arith.subf %340, %329 : vector<32x128xf32>
        %cst_84 = arith.constant 1.000000e-10 : f32
        %342 = vector.broadcast %cst_84 : f32 to vector<32x128xf32>
        %343 = arith.addf %341, %342 : vector<32x128xf32>
        %344 = arith.mulf %292, %343 : vector<32x128xf32>
        %c6_i32 = arith.constant 6 : i32
        %345 = arith.addi %25, %c6_i32 : i32
        %c0_85 = arith.constant 0 : index
        %346 = arith.index_cast %345 : i32 to index
        %347 = memref.load %arg2[%c0_85, %346] : memref<9x48xf32, #tpu.memory_space<smem>>
        %c1_86 = arith.constant 1 : index
        %348 = arith.index_cast %345 : i32 to index
        %349 = memref.load %arg2[%c1_86, %348] : memref<9x48xf32, #tpu.memory_space<smem>>
        %c2_87 = arith.constant 2 : index
        %350 = arith.index_cast %345 : i32 to index
        %351 = memref.load %arg2[%c2_87, %350] : memref<9x48xf32, #tpu.memory_space<smem>>
        %c3_88 = arith.constant 3 : index
        %352 = arith.index_cast %345 : i32 to index
        %353 = memref.load %arg2[%c3_88, %352] : memref<9x48xf32, #tpu.memory_space<smem>>
        %c4_89 = arith.constant 4 : index
        %354 = arith.index_cast %345 : i32 to index
        %355 = memref.load %arg2[%c4_89, %354] : memref<9x48xf32, #tpu.memory_space<smem>>
        %c5_90 = arith.constant 5 : index
        %356 = arith.index_cast %345 : i32 to index
        %357 = memref.load %arg2[%c5_90, %356] : memref<9x48xf32, #tpu.memory_space<smem>>
        %c6_91 = arith.constant 6 : index
        %358 = arith.index_cast %345 : i32 to index
        %359 = memref.load %arg2[%c6_91, %358] : memref<9x48xf32, #tpu.memory_space<smem>>
        %c7_92 = arith.constant 7 : index
        %360 = arith.index_cast %345 : i32 to index
        %361 = memref.load %arg2[%c7_92, %360] : memref<9x48xf32, #tpu.memory_space<smem>>
        %c8_93 = arith.constant 8 : index
        %362 = arith.index_cast %345 : i32 to index
        %363 = memref.load %arg2[%c8_93, %362] : memref<9x48xf32, #tpu.memory_space<smem>>
        %364 = vector.broadcast %347 : f32 to vector<32x128xf32>
        %365 = arith.subf %9, %364 : vector<32x128xf32>
        %366 = vector.broadcast %349 : f32 to vector<32x128xf32>
        %367 = arith.subf %5, %366 : vector<32x128xf32>
        %368 = vector.broadcast %351 : f32 to vector<32x128xf32>
        %369 = arith.mulf %368, %365 : vector<32x128xf32>
        %370 = arith.mulf %369, %365 : vector<32x128xf32>
        %371 = arith.mulf %365, %367 : vector<32x128xf32>
        %372 = vector.broadcast %353 : f32 to vector<32x128xf32>
        %373 = arith.mulf %372, %371 : vector<32x128xf32>
        %374 = arith.addf %370, %373 : vector<32x128xf32>
        %375 = vector.broadcast %355 : f32 to vector<32x128xf32>
        %376 = arith.mulf %375, %367 : vector<32x128xf32>
        %377 = arith.mulf %376, %367 : vector<32x128xf32>
        %378 = arith.addf %374, %377 : vector<32x128xf32>
        %379 = math.exp %378 : vector<32x128xf32>
        %380 = vector.broadcast %357 : f32 to vector<32x128xf32>
        %381 = arith.mulf %379, %380 : vector<32x128xf32>
        %382 = arith.mulf %381, %344 : vector<32x128xf32>
        %383 = vector.broadcast %359 : f32 to vector<32x128xf32>
        %384 = arith.mulf %382, %383 : vector<32x128xf32>
        %385 = arith.addf %333, %384 : vector<32x128xf32>
        %386 = vector.broadcast %361 : f32 to vector<32x128xf32>
        %387 = arith.mulf %382, %386 : vector<32x128xf32>
        %388 = arith.addf %336, %387 : vector<32x128xf32>
        %389 = vector.broadcast %363 : f32 to vector<32x128xf32>
        %390 = arith.mulf %382, %389 : vector<32x128xf32>
        %391 = arith.addf %339, %390 : vector<32x128xf32>
        %cst_94 = arith.constant 1.000000e+00 : f32
        %392 = vector.broadcast %cst_94 : f32 to vector<32x128xf32>
        %393 = arith.subf %392, %381 : vector<32x128xf32>
        %cst_95 = arith.constant 1.000000e-10 : f32
        %394 = vector.broadcast %cst_95 : f32 to vector<32x128xf32>
        %395 = arith.addf %393, %394 : vector<32x128xf32>
        %396 = arith.mulf %344, %395 : vector<32x128xf32>
        %c7_i32 = arith.constant 7 : i32
        %397 = arith.addi %25, %c7_i32 : i32
        %c0_96 = arith.constant 0 : index
        %398 = arith.index_cast %397 : i32 to index
        %399 = memref.load %arg2[%c0_96, %398] : memref<9x48xf32, #tpu.memory_space<smem>>
        %c1_97 = arith.constant 1 : index
        %400 = arith.index_cast %397 : i32 to index
        %401 = memref.load %arg2[%c1_97, %400] : memref<9x48xf32, #tpu.memory_space<smem>>
        %c2_98 = arith.constant 2 : index
        %402 = arith.index_cast %397 : i32 to index
        %403 = memref.load %arg2[%c2_98, %402] : memref<9x48xf32, #tpu.memory_space<smem>>
        %c3_99 = arith.constant 3 : index
        %404 = arith.index_cast %397 : i32 to index
        %405 = memref.load %arg2[%c3_99, %404] : memref<9x48xf32, #tpu.memory_space<smem>>
        %c4_100 = arith.constant 4 : index
        %406 = arith.index_cast %397 : i32 to index
        %407 = memref.load %arg2[%c4_100, %406] : memref<9x48xf32, #tpu.memory_space<smem>>
        %c5_101 = arith.constant 5 : index
        %408 = arith.index_cast %397 : i32 to index
        %409 = memref.load %arg2[%c5_101, %408] : memref<9x48xf32, #tpu.memory_space<smem>>
        %c6_102 = arith.constant 6 : index
        %410 = arith.index_cast %397 : i32 to index
        %411 = memref.load %arg2[%c6_102, %410] : memref<9x48xf32, #tpu.memory_space<smem>>
        %c7_103 = arith.constant 7 : index
        %412 = arith.index_cast %397 : i32 to index
        %413 = memref.load %arg2[%c7_103, %412] : memref<9x48xf32, #tpu.memory_space<smem>>
        %c8_104 = arith.constant 8 : index
        %414 = arith.index_cast %397 : i32 to index
        %415 = memref.load %arg2[%c8_104, %414] : memref<9x48xf32, #tpu.memory_space<smem>>
        %416 = vector.broadcast %399 : f32 to vector<32x128xf32>
        %417 = arith.subf %9, %416 : vector<32x128xf32>
        %418 = vector.broadcast %401 : f32 to vector<32x128xf32>
        %419 = arith.subf %5, %418 : vector<32x128xf32>
        %420 = vector.broadcast %403 : f32 to vector<32x128xf32>
        %421 = arith.mulf %420, %417 : vector<32x128xf32>
        %422 = arith.mulf %421, %417 : vector<32x128xf32>
        %423 = arith.mulf %417, %419 : vector<32x128xf32>
        %424 = vector.broadcast %405 : f32 to vector<32x128xf32>
        %425 = arith.mulf %424, %423 : vector<32x128xf32>
        %426 = arith.addf %422, %425 : vector<32x128xf32>
        %427 = vector.broadcast %407 : f32 to vector<32x128xf32>
        %428 = arith.mulf %427, %419 : vector<32x128xf32>
        %429 = arith.mulf %428, %419 : vector<32x128xf32>
        %430 = arith.addf %426, %429 : vector<32x128xf32>
        %431 = math.exp %430 : vector<32x128xf32>
        %432 = vector.broadcast %409 : f32 to vector<32x128xf32>
        %433 = arith.mulf %431, %432 : vector<32x128xf32>
        %434 = arith.mulf %433, %396 : vector<32x128xf32>
        %435 = vector.broadcast %411 : f32 to vector<32x128xf32>
        %436 = arith.mulf %434, %435 : vector<32x128xf32>
        %437 = arith.addf %385, %436 : vector<32x128xf32>
        %438 = vector.broadcast %413 : f32 to vector<32x128xf32>
        %439 = arith.mulf %434, %438 : vector<32x128xf32>
        %440 = arith.addf %388, %439 : vector<32x128xf32>
        %441 = vector.broadcast %415 : f32 to vector<32x128xf32>
        %442 = arith.mulf %434, %441 : vector<32x128xf32>
        %443 = arith.addf %391, %442 : vector<32x128xf32>
        %cst_105 = arith.constant 1.000000e+00 : f32
        %444 = vector.broadcast %cst_105 : f32 to vector<32x128xf32>
        %445 = arith.subf %444, %433 : vector<32x128xf32>
        %cst_106 = arith.constant 1.000000e-10 : f32
        %446 = vector.broadcast %cst_106 : f32 to vector<32x128xf32>
        %447 = arith.addf %445, %446 : vector<32x128xf32>
        %448 = arith.mulf %396, %447 : vector<32x128xf32>
        %c8_i32 = arith.constant 8 : i32
        %449 = arith.addi %25, %c8_i32 : i32
        %c0_107 = arith.constant 0 : index
        %450 = arith.index_cast %449 : i32 to index
        %451 = memref.load %arg2[%c0_107, %450] : memref<9x48xf32, #tpu.memory_space<smem>>
        %c1_108 = arith.constant 1 : index
        %452 = arith.index_cast %449 : i32 to index
        %453 = memref.load %arg2[%c1_108, %452] : memref<9x48xf32, #tpu.memory_space<smem>>
        %c2_109 = arith.constant 2 : index
        %454 = arith.index_cast %449 : i32 to index
        %455 = memref.load %arg2[%c2_109, %454] : memref<9x48xf32, #tpu.memory_space<smem>>
        %c3_110 = arith.constant 3 : index
        %456 = arith.index_cast %449 : i32 to index
        %457 = memref.load %arg2[%c3_110, %456] : memref<9x48xf32, #tpu.memory_space<smem>>
        %c4_111 = arith.constant 4 : index
        %458 = arith.index_cast %449 : i32 to index
        %459 = memref.load %arg2[%c4_111, %458] : memref<9x48xf32, #tpu.memory_space<smem>>
        %c5_112 = arith.constant 5 : index
        %460 = arith.index_cast %449 : i32 to index
        %461 = memref.load %arg2[%c5_112, %460] : memref<9x48xf32, #tpu.memory_space<smem>>
        %c6_113 = arith.constant 6 : index
        %462 = arith.index_cast %449 : i32 to index
        %463 = memref.load %arg2[%c6_113, %462] : memref<9x48xf32, #tpu.memory_space<smem>>
        %c7_114 = arith.constant 7 : index
        %464 = arith.index_cast %449 : i32 to index
        %465 = memref.load %arg2[%c7_114, %464] : memref<9x48xf32, #tpu.memory_space<smem>>
        %c8_115 = arith.constant 8 : index
        %466 = arith.index_cast %449 : i32 to index
        %467 = memref.load %arg2[%c8_115, %466] : memref<9x48xf32, #tpu.memory_space<smem>>
        %468 = vector.broadcast %451 : f32 to vector<32x128xf32>
        %469 = arith.subf %9, %468 : vector<32x128xf32>
        %470 = vector.broadcast %453 : f32 to vector<32x128xf32>
        %471 = arith.subf %5, %470 : vector<32x128xf32>
        %472 = vector.broadcast %455 : f32 to vector<32x128xf32>
        %473 = arith.mulf %472, %469 : vector<32x128xf32>
        %474 = arith.mulf %473, %469 : vector<32x128xf32>
        %475 = arith.mulf %469, %471 : vector<32x128xf32>
        %476 = vector.broadcast %457 : f32 to vector<32x128xf32>
        %477 = arith.mulf %476, %475 : vector<32x128xf32>
        %478 = arith.addf %474, %477 : vector<32x128xf32>
        %479 = vector.broadcast %459 : f32 to vector<32x128xf32>
        %480 = arith.mulf %479, %471 : vector<32x128xf32>
        %481 = arith.mulf %480, %471 : vector<32x128xf32>
        %482 = arith.addf %478, %481 : vector<32x128xf32>
        %483 = math.exp %482 : vector<32x128xf32>
        %484 = vector.broadcast %461 : f32 to vector<32x128xf32>
        %485 = arith.mulf %483, %484 : vector<32x128xf32>
        %486 = arith.mulf %485, %448 : vector<32x128xf32>
        %487 = vector.broadcast %463 : f32 to vector<32x128xf32>
        %488 = arith.mulf %486, %487 : vector<32x128xf32>
        %489 = arith.addf %437, %488 : vector<32x128xf32>
        %490 = vector.broadcast %465 : f32 to vector<32x128xf32>
        %491 = arith.mulf %486, %490 : vector<32x128xf32>
        %492 = arith.addf %440, %491 : vector<32x128xf32>
        %493 = vector.broadcast %467 : f32 to vector<32x128xf32>
        %494 = arith.mulf %486, %493 : vector<32x128xf32>
        %495 = arith.addf %443, %494 : vector<32x128xf32>
        %cst_116 = arith.constant 1.000000e+00 : f32
        %496 = vector.broadcast %cst_116 : f32 to vector<32x128xf32>
        %497 = arith.subf %496, %485 : vector<32x128xf32>
        %cst_117 = arith.constant 1.000000e-10 : f32
        %498 = vector.broadcast %cst_117 : f32 to vector<32x128xf32>
        %499 = arith.addf %497, %498 : vector<32x128xf32>
        %500 = arith.mulf %448, %499 : vector<32x128xf32>
        %c9_i32 = arith.constant 9 : i32
        %501 = arith.addi %25, %c9_i32 : i32
        %c0_118 = arith.constant 0 : index
        %502 = arith.index_cast %501 : i32 to index
        %503 = memref.load %arg2[%c0_118, %502] : memref<9x48xf32, #tpu.memory_space<smem>>
        %c1_119 = arith.constant 1 : index
        %504 = arith.index_cast %501 : i32 to index
        %505 = memref.load %arg2[%c1_119, %504] : memref<9x48xf32, #tpu.memory_space<smem>>
        %c2_120 = arith.constant 2 : index
        %506 = arith.index_cast %501 : i32 to index
        %507 = memref.load %arg2[%c2_120, %506] : memref<9x48xf32, #tpu.memory_space<smem>>
        %c3_121 = arith.constant 3 : index
        %508 = arith.index_cast %501 : i32 to index
        %509 = memref.load %arg2[%c3_121, %508] : memref<9x48xf32, #tpu.memory_space<smem>>
        %c4_122 = arith.constant 4 : index
        %510 = arith.index_cast %501 : i32 to index
        %511 = memref.load %arg2[%c4_122, %510] : memref<9x48xf32, #tpu.memory_space<smem>>
        %c5_123 = arith.constant 5 : index
        %512 = arith.index_cast %501 : i32 to index
        %513 = memref.load %arg2[%c5_123, %512] : memref<9x48xf32, #tpu.memory_space<smem>>
        %c6_124 = arith.constant 6 : index
        %514 = arith.index_cast %501 : i32 to index
        %515 = memref.load %arg2[%c6_124, %514] : memref<9x48xf32, #tpu.memory_space<smem>>
        %c7_125 = arith.constant 7 : index
        %516 = arith.index_cast %501 : i32 to index
        %517 = memref.load %arg2[%c7_125, %516] : memref<9x48xf32, #tpu.memory_space<smem>>
        %c8_126 = arith.constant 8 : index
        %518 = arith.index_cast %501 : i32 to index
        %519 = memref.load %arg2[%c8_126, %518] : memref<9x48xf32, #tpu.memory_space<smem>>
        %520 = vector.broadcast %503 : f32 to vector<32x128xf32>
        %521 = arith.subf %9, %520 : vector<32x128xf32>
        %522 = vector.broadcast %505 : f32 to vector<32x128xf32>
        %523 = arith.subf %5, %522 : vector<32x128xf32>
        %524 = vector.broadcast %507 : f32 to vector<32x128xf32>
        %525 = arith.mulf %524, %521 : vector<32x128xf32>
        %526 = arith.mulf %525, %521 : vector<32x128xf32>
        %527 = arith.mulf %521, %523 : vector<32x128xf32>
        %528 = vector.broadcast %509 : f32 to vector<32x128xf32>
        %529 = arith.mulf %528, %527 : vector<32x128xf32>
        %530 = arith.addf %526, %529 : vector<32x128xf32>
        %531 = vector.broadcast %511 : f32 to vector<32x128xf32>
        %532 = arith.mulf %531, %523 : vector<32x128xf32>
        %533 = arith.mulf %532, %523 : vector<32x128xf32>
        %534 = arith.addf %530, %533 : vector<32x128xf32>
        %535 = math.exp %534 : vector<32x128xf32>
        %536 = vector.broadcast %513 : f32 to vector<32x128xf32>
        %537 = arith.mulf %535, %536 : vector<32x128xf32>
        %538 = arith.mulf %537, %500 : vector<32x128xf32>
        %539 = vector.broadcast %515 : f32 to vector<32x128xf32>
        %540 = arith.mulf %538, %539 : vector<32x128xf32>
        %541 = arith.addf %489, %540 : vector<32x128xf32>
        %542 = vector.broadcast %517 : f32 to vector<32x128xf32>
        %543 = arith.mulf %538, %542 : vector<32x128xf32>
        %544 = arith.addf %492, %543 : vector<32x128xf32>
        %545 = vector.broadcast %519 : f32 to vector<32x128xf32>
        %546 = arith.mulf %538, %545 : vector<32x128xf32>
        %547 = arith.addf %495, %546 : vector<32x128xf32>
        %cst_127 = arith.constant 1.000000e+00 : f32
        %548 = vector.broadcast %cst_127 : f32 to vector<32x128xf32>
        %549 = arith.subf %548, %537 : vector<32x128xf32>
        %cst_128 = arith.constant 1.000000e-10 : f32
        %550 = vector.broadcast %cst_128 : f32 to vector<32x128xf32>
        %551 = arith.addf %549, %550 : vector<32x128xf32>
        %552 = arith.mulf %500, %551 : vector<32x128xf32>
        %c10_i32 = arith.constant 10 : i32
        %553 = arith.addi %25, %c10_i32 : i32
        %c0_129 = arith.constant 0 : index
        %554 = arith.index_cast %553 : i32 to index
        %555 = memref.load %arg2[%c0_129, %554] : memref<9x48xf32, #tpu.memory_space<smem>>
        %c1_130 = arith.constant 1 : index
        %556 = arith.index_cast %553 : i32 to index
        %557 = memref.load %arg2[%c1_130, %556] : memref<9x48xf32, #tpu.memory_space<smem>>
        %c2_131 = arith.constant 2 : index
        %558 = arith.index_cast %553 : i32 to index
        %559 = memref.load %arg2[%c2_131, %558] : memref<9x48xf32, #tpu.memory_space<smem>>
        %c3_132 = arith.constant 3 : index
        %560 = arith.index_cast %553 : i32 to index
        %561 = memref.load %arg2[%c3_132, %560] : memref<9x48xf32, #tpu.memory_space<smem>>
        %c4_133 = arith.constant 4 : index
        %562 = arith.index_cast %553 : i32 to index
        %563 = memref.load %arg2[%c4_133, %562] : memref<9x48xf32, #tpu.memory_space<smem>>
        %c5_134 = arith.constant 5 : index
        %564 = arith.index_cast %553 : i32 to index
        %565 = memref.load %arg2[%c5_134, %564] : memref<9x48xf32, #tpu.memory_space<smem>>
        %c6_135 = arith.constant 6 : index
        %566 = arith.index_cast %553 : i32 to index
        %567 = memref.load %arg2[%c6_135, %566] : memref<9x48xf32, #tpu.memory_space<smem>>
        %c7_136 = arith.constant 7 : index
        %568 = arith.index_cast %553 : i32 to index
        %569 = memref.load %arg2[%c7_136, %568] : memref<9x48xf32, #tpu.memory_space<smem>>
        %c8_137 = arith.constant 8 : index
        %570 = arith.index_cast %553 : i32 to index
        %571 = memref.load %arg2[%c8_137, %570] : memref<9x48xf32, #tpu.memory_space<smem>>
        %572 = vector.broadcast %555 : f32 to vector<32x128xf32>
        %573 = arith.subf %9, %572 : vector<32x128xf32>
        %574 = vector.broadcast %557 : f32 to vector<32x128xf32>
        %575 = arith.subf %5, %574 : vector<32x128xf32>
        %576 = vector.broadcast %559 : f32 to vector<32x128xf32>
        %577 = arith.mulf %576, %573 : vector<32x128xf32>
        %578 = arith.mulf %577, %573 : vector<32x128xf32>
        %579 = arith.mulf %573, %575 : vector<32x128xf32>
        %580 = vector.broadcast %561 : f32 to vector<32x128xf32>
        %581 = arith.mulf %580, %579 : vector<32x128xf32>
        %582 = arith.addf %578, %581 : vector<32x128xf32>
        %583 = vector.broadcast %563 : f32 to vector<32x128xf32>
        %584 = arith.mulf %583, %575 : vector<32x128xf32>
        %585 = arith.mulf %584, %575 : vector<32x128xf32>
        %586 = arith.addf %582, %585 : vector<32x128xf32>
        %587 = math.exp %586 : vector<32x128xf32>
        %588 = vector.broadcast %565 : f32 to vector<32x128xf32>
        %589 = arith.mulf %587, %588 : vector<32x128xf32>
        %590 = arith.mulf %589, %552 : vector<32x128xf32>
        %591 = vector.broadcast %567 : f32 to vector<32x128xf32>
        %592 = arith.mulf %590, %591 : vector<32x128xf32>
        %593 = arith.addf %541, %592 : vector<32x128xf32>
        %594 = vector.broadcast %569 : f32 to vector<32x128xf32>
        %595 = arith.mulf %590, %594 : vector<32x128xf32>
        %596 = arith.addf %544, %595 : vector<32x128xf32>
        %597 = vector.broadcast %571 : f32 to vector<32x128xf32>
        %598 = arith.mulf %590, %597 : vector<32x128xf32>
        %599 = arith.addf %547, %598 : vector<32x128xf32>
        %cst_138 = arith.constant 1.000000e+00 : f32
        %600 = vector.broadcast %cst_138 : f32 to vector<32x128xf32>
        %601 = arith.subf %600, %589 : vector<32x128xf32>
        %cst_139 = arith.constant 1.000000e-10 : f32
        %602 = vector.broadcast %cst_139 : f32 to vector<32x128xf32>
        %603 = arith.addf %601, %602 : vector<32x128xf32>
        %604 = arith.mulf %552, %603 : vector<32x128xf32>
        %c11_i32 = arith.constant 11 : i32
        %605 = arith.addi %25, %c11_i32 : i32
        %c0_140 = arith.constant 0 : index
        %606 = arith.index_cast %605 : i32 to index
        %607 = memref.load %arg2[%c0_140, %606] : memref<9x48xf32, #tpu.memory_space<smem>>
        %c1_141 = arith.constant 1 : index
        %608 = arith.index_cast %605 : i32 to index
        %609 = memref.load %arg2[%c1_141, %608] : memref<9x48xf32, #tpu.memory_space<smem>>
        %c2_142 = arith.constant 2 : index
        %610 = arith.index_cast %605 : i32 to index
        %611 = memref.load %arg2[%c2_142, %610] : memref<9x48xf32, #tpu.memory_space<smem>>
        %c3_143 = arith.constant 3 : index
        %612 = arith.index_cast %605 : i32 to index
        %613 = memref.load %arg2[%c3_143, %612] : memref<9x48xf32, #tpu.memory_space<smem>>
        %c4_144 = arith.constant 4 : index
        %614 = arith.index_cast %605 : i32 to index
        %615 = memref.load %arg2[%c4_144, %614] : memref<9x48xf32, #tpu.memory_space<smem>>
        %c5_145 = arith.constant 5 : index
        %616 = arith.index_cast %605 : i32 to index
        %617 = memref.load %arg2[%c5_145, %616] : memref<9x48xf32, #tpu.memory_space<smem>>
        %c6_146 = arith.constant 6 : index
        %618 = arith.index_cast %605 : i32 to index
        %619 = memref.load %arg2[%c6_146, %618] : memref<9x48xf32, #tpu.memory_space<smem>>
        %c7_147 = arith.constant 7 : index
        %620 = arith.index_cast %605 : i32 to index
        %621 = memref.load %arg2[%c7_147, %620] : memref<9x48xf32, #tpu.memory_space<smem>>
        %c8_148 = arith.constant 8 : index
        %622 = arith.index_cast %605 : i32 to index
        %623 = memref.load %arg2[%c8_148, %622] : memref<9x48xf32, #tpu.memory_space<smem>>
        %624 = vector.broadcast %607 : f32 to vector<32x128xf32>
        %625 = arith.subf %9, %624 : vector<32x128xf32>
        %626 = vector.broadcast %609 : f32 to vector<32x128xf32>
        %627 = arith.subf %5, %626 : vector<32x128xf32>
        %628 = vector.broadcast %611 : f32 to vector<32x128xf32>
        %629 = arith.mulf %628, %625 : vector<32x128xf32>
        %630 = arith.mulf %629, %625 : vector<32x128xf32>
        %631 = arith.mulf %625, %627 : vector<32x128xf32>
        %632 = vector.broadcast %613 : f32 to vector<32x128xf32>
        %633 = arith.mulf %632, %631 : vector<32x128xf32>
        %634 = arith.addf %630, %633 : vector<32x128xf32>
        %635 = vector.broadcast %615 : f32 to vector<32x128xf32>
        %636 = arith.mulf %635, %627 : vector<32x128xf32>
        %637 = arith.mulf %636, %627 : vector<32x128xf32>
        %638 = arith.addf %634, %637 : vector<32x128xf32>
        %639 = math.exp %638 : vector<32x128xf32>
        %640 = vector.broadcast %617 : f32 to vector<32x128xf32>
        %641 = arith.mulf %639, %640 : vector<32x128xf32>
        %642 = arith.mulf %641, %604 : vector<32x128xf32>
        %643 = vector.broadcast %619 : f32 to vector<32x128xf32>
        %644 = arith.mulf %642, %643 : vector<32x128xf32>
        %645 = arith.addf %593, %644 : vector<32x128xf32>
        %646 = vector.broadcast %621 : f32 to vector<32x128xf32>
        %647 = arith.mulf %642, %646 : vector<32x128xf32>
        %648 = arith.addf %596, %647 : vector<32x128xf32>
        %649 = vector.broadcast %623 : f32 to vector<32x128xf32>
        %650 = arith.mulf %642, %649 : vector<32x128xf32>
        %651 = arith.addf %599, %650 : vector<32x128xf32>
        %cst_149 = arith.constant 1.000000e+00 : f32
        %652 = vector.broadcast %cst_149 : f32 to vector<32x128xf32>
        %653 = arith.subf %652, %641 : vector<32x128xf32>
        %cst_150 = arith.constant 1.000000e-10 : f32
        %654 = vector.broadcast %cst_150 : f32 to vector<32x128xf32>
        %655 = arith.addf %653, %654 : vector<32x128xf32>
        %656 = arith.mulf %604, %655 : vector<32x128xf32>
        %c12_i32 = arith.constant 12 : i32
        %657 = arith.addi %25, %c12_i32 : i32
        %c0_151 = arith.constant 0 : index
        %658 = arith.index_cast %657 : i32 to index
        %659 = memref.load %arg2[%c0_151, %658] : memref<9x48xf32, #tpu.memory_space<smem>>
        %c1_152 = arith.constant 1 : index
        %660 = arith.index_cast %657 : i32 to index
        %661 = memref.load %arg2[%c1_152, %660] : memref<9x48xf32, #tpu.memory_space<smem>>
        %c2_153 = arith.constant 2 : index
        %662 = arith.index_cast %657 : i32 to index
        %663 = memref.load %arg2[%c2_153, %662] : memref<9x48xf32, #tpu.memory_space<smem>>
        %c3_154 = arith.constant 3 : index
        %664 = arith.index_cast %657 : i32 to index
        %665 = memref.load %arg2[%c3_154, %664] : memref<9x48xf32, #tpu.memory_space<smem>>
        %c4_155 = arith.constant 4 : index
        %666 = arith.index_cast %657 : i32 to index
        %667 = memref.load %arg2[%c4_155, %666] : memref<9x48xf32, #tpu.memory_space<smem>>
        %c5_156 = arith.constant 5 : index
        %668 = arith.index_cast %657 : i32 to index
        %669 = memref.load %arg2[%c5_156, %668] : memref<9x48xf32, #tpu.memory_space<smem>>
        %c6_157 = arith.constant 6 : index
        %670 = arith.index_cast %657 : i32 to index
        %671 = memref.load %arg2[%c6_157, %670] : memref<9x48xf32, #tpu.memory_space<smem>>
        %c7_158 = arith.constant 7 : index
        %672 = arith.index_cast %657 : i32 to index
        %673 = memref.load %arg2[%c7_158, %672] : memref<9x48xf32, #tpu.memory_space<smem>>
        %c8_159 = arith.constant 8 : index
        %674 = arith.index_cast %657 : i32 to index
        %675 = memref.load %arg2[%c8_159, %674] : memref<9x48xf32, #tpu.memory_space<smem>>
        %676 = vector.broadcast %659 : f32 to vector<32x128xf32>
        %677 = arith.subf %9, %676 : vector<32x128xf32>
        %678 = vector.broadcast %661 : f32 to vector<32x128xf32>
        %679 = arith.subf %5, %678 : vector<32x128xf32>
        %680 = vector.broadcast %663 : f32 to vector<32x128xf32>
        %681 = arith.mulf %680, %677 : vector<32x128xf32>
        %682 = arith.mulf %681, %677 : vector<32x128xf32>
        %683 = arith.mulf %677, %679 : vector<32x128xf32>
        %684 = vector.broadcast %665 : f32 to vector<32x128xf32>
        %685 = arith.mulf %684, %683 : vector<32x128xf32>
        %686 = arith.addf %682, %685 : vector<32x128xf32>
        %687 = vector.broadcast %667 : f32 to vector<32x128xf32>
        %688 = arith.mulf %687, %679 : vector<32x128xf32>
        %689 = arith.mulf %688, %679 : vector<32x128xf32>
        %690 = arith.addf %686, %689 : vector<32x128xf32>
        %691 = math.exp %690 : vector<32x128xf32>
        %692 = vector.broadcast %669 : f32 to vector<32x128xf32>
        %693 = arith.mulf %691, %692 : vector<32x128xf32>
        %694 = arith.mulf %693, %656 : vector<32x128xf32>
        %695 = vector.broadcast %671 : f32 to vector<32x128xf32>
        %696 = arith.mulf %694, %695 : vector<32x128xf32>
        %697 = arith.addf %645, %696 : vector<32x128xf32>
        %698 = vector.broadcast %673 : f32 to vector<32x128xf32>
        %699 = arith.mulf %694, %698 : vector<32x128xf32>
        %700 = arith.addf %648, %699 : vector<32x128xf32>
        %701 = vector.broadcast %675 : f32 to vector<32x128xf32>
        %702 = arith.mulf %694, %701 : vector<32x128xf32>
        %703 = arith.addf %651, %702 : vector<32x128xf32>
        %cst_160 = arith.constant 1.000000e+00 : f32
        %704 = vector.broadcast %cst_160 : f32 to vector<32x128xf32>
        %705 = arith.subf %704, %693 : vector<32x128xf32>
        %cst_161 = arith.constant 1.000000e-10 : f32
        %706 = vector.broadcast %cst_161 : f32 to vector<32x128xf32>
        %707 = arith.addf %705, %706 : vector<32x128xf32>
        %708 = arith.mulf %656, %707 : vector<32x128xf32>
        %c13_i32 = arith.constant 13 : i32
        %709 = arith.addi %25, %c13_i32 : i32
        %c0_162 = arith.constant 0 : index
        %710 = arith.index_cast %709 : i32 to index
        %711 = memref.load %arg2[%c0_162, %710] : memref<9x48xf32, #tpu.memory_space<smem>>
        %c1_163 = arith.constant 1 : index
        %712 = arith.index_cast %709 : i32 to index
        %713 = memref.load %arg2[%c1_163, %712] : memref<9x48xf32, #tpu.memory_space<smem>>
        %c2_164 = arith.constant 2 : index
        %714 = arith.index_cast %709 : i32 to index
        %715 = memref.load %arg2[%c2_164, %714] : memref<9x48xf32, #tpu.memory_space<smem>>
        %c3_165 = arith.constant 3 : index
        %716 = arith.index_cast %709 : i32 to index
        %717 = memref.load %arg2[%c3_165, %716] : memref<9x48xf32, #tpu.memory_space<smem>>
        %c4_166 = arith.constant 4 : index
        %718 = arith.index_cast %709 : i32 to index
        %719 = memref.load %arg2[%c4_166, %718] : memref<9x48xf32, #tpu.memory_space<smem>>
        %c5_167 = arith.constant 5 : index
        %720 = arith.index_cast %709 : i32 to index
        %721 = memref.load %arg2[%c5_167, %720] : memref<9x48xf32, #tpu.memory_space<smem>>
        %c6_168 = arith.constant 6 : index
        %722 = arith.index_cast %709 : i32 to index
        %723 = memref.load %arg2[%c6_168, %722] : memref<9x48xf32, #tpu.memory_space<smem>>
        %c7_169 = arith.constant 7 : index
        %724 = arith.index_cast %709 : i32 to index
        %725 = memref.load %arg2[%c7_169, %724] : memref<9x48xf32, #tpu.memory_space<smem>>
        %c8_170 = arith.constant 8 : index
        %726 = arith.index_cast %709 : i32 to index
        %727 = memref.load %arg2[%c8_170, %726] : memref<9x48xf32, #tpu.memory_space<smem>>
        %728 = vector.broadcast %711 : f32 to vector<32x128xf32>
        %729 = arith.subf %9, %728 : vector<32x128xf32>
        %730 = vector.broadcast %713 : f32 to vector<32x128xf32>
        %731 = arith.subf %5, %730 : vector<32x128xf32>
        %732 = vector.broadcast %715 : f32 to vector<32x128xf32>
        %733 = arith.mulf %732, %729 : vector<32x128xf32>
        %734 = arith.mulf %733, %729 : vector<32x128xf32>
        %735 = arith.mulf %729, %731 : vector<32x128xf32>
        %736 = vector.broadcast %717 : f32 to vector<32x128xf32>
        %737 = arith.mulf %736, %735 : vector<32x128xf32>
        %738 = arith.addf %734, %737 : vector<32x128xf32>
        %739 = vector.broadcast %719 : f32 to vector<32x128xf32>
        %740 = arith.mulf %739, %731 : vector<32x128xf32>
        %741 = arith.mulf %740, %731 : vector<32x128xf32>
        %742 = arith.addf %738, %741 : vector<32x128xf32>
        %743 = math.exp %742 : vector<32x128xf32>
        %744 = vector.broadcast %721 : f32 to vector<32x128xf32>
        %745 = arith.mulf %743, %744 : vector<32x128xf32>
        %746 = arith.mulf %745, %708 : vector<32x128xf32>
        %747 = vector.broadcast %723 : f32 to vector<32x128xf32>
        %748 = arith.mulf %746, %747 : vector<32x128xf32>
        %749 = arith.addf %697, %748 : vector<32x128xf32>
        %750 = vector.broadcast %725 : f32 to vector<32x128xf32>
        %751 = arith.mulf %746, %750 : vector<32x128xf32>
        %752 = arith.addf %700, %751 : vector<32x128xf32>
        %753 = vector.broadcast %727 : f32 to vector<32x128xf32>
        %754 = arith.mulf %746, %753 : vector<32x128xf32>
        %755 = arith.addf %703, %754 : vector<32x128xf32>
        %cst_171 = arith.constant 1.000000e+00 : f32
        %756 = vector.broadcast %cst_171 : f32 to vector<32x128xf32>
        %757 = arith.subf %756, %745 : vector<32x128xf32>
        %cst_172 = arith.constant 1.000000e-10 : f32
        %758 = vector.broadcast %cst_172 : f32 to vector<32x128xf32>
        %759 = arith.addf %757, %758 : vector<32x128xf32>
        %760 = arith.mulf %708, %759 : vector<32x128xf32>
        %c14_i32 = arith.constant 14 : i32
        %761 = arith.addi %25, %c14_i32 : i32
        %c0_173 = arith.constant 0 : index
        %762 = arith.index_cast %761 : i32 to index
        %763 = memref.load %arg2[%c0_173, %762] : memref<9x48xf32, #tpu.memory_space<smem>>
        %c1_174 = arith.constant 1 : index
        %764 = arith.index_cast %761 : i32 to index
        %765 = memref.load %arg2[%c1_174, %764] : memref<9x48xf32, #tpu.memory_space<smem>>
        %c2_175 = arith.constant 2 : index
        %766 = arith.index_cast %761 : i32 to index
        %767 = memref.load %arg2[%c2_175, %766] : memref<9x48xf32, #tpu.memory_space<smem>>
        %c3_176 = arith.constant 3 : index
        %768 = arith.index_cast %761 : i32 to index
        %769 = memref.load %arg2[%c3_176, %768] : memref<9x48xf32, #tpu.memory_space<smem>>
        %c4_177 = arith.constant 4 : index
        %770 = arith.index_cast %761 : i32 to index
        %771 = memref.load %arg2[%c4_177, %770] : memref<9x48xf32, #tpu.memory_space<smem>>
        %c5_178 = arith.constant 5 : index
        %772 = arith.index_cast %761 : i32 to index
        %773 = memref.load %arg2[%c5_178, %772] : memref<9x48xf32, #tpu.memory_space<smem>>
        %c6_179 = arith.constant 6 : index
        %774 = arith.index_cast %761 : i32 to index
        %775 = memref.load %arg2[%c6_179, %774] : memref<9x48xf32, #tpu.memory_space<smem>>
        %c7_180 = arith.constant 7 : index
        %776 = arith.index_cast %761 : i32 to index
        %777 = memref.load %arg2[%c7_180, %776] : memref<9x48xf32, #tpu.memory_space<smem>>
        %c8_181 = arith.constant 8 : index
        %778 = arith.index_cast %761 : i32 to index
        %779 = memref.load %arg2[%c8_181, %778] : memref<9x48xf32, #tpu.memory_space<smem>>
        %780 = vector.broadcast %763 : f32 to vector<32x128xf32>
        %781 = arith.subf %9, %780 : vector<32x128xf32>
        %782 = vector.broadcast %765 : f32 to vector<32x128xf32>
        %783 = arith.subf %5, %782 : vector<32x128xf32>
        %784 = vector.broadcast %767 : f32 to vector<32x128xf32>
        %785 = arith.mulf %784, %781 : vector<32x128xf32>
        %786 = arith.mulf %785, %781 : vector<32x128xf32>
        %787 = arith.mulf %781, %783 : vector<32x128xf32>
        %788 = vector.broadcast %769 : f32 to vector<32x128xf32>
        %789 = arith.mulf %788, %787 : vector<32x128xf32>
        %790 = arith.addf %786, %789 : vector<32x128xf32>
        %791 = vector.broadcast %771 : f32 to vector<32x128xf32>
        %792 = arith.mulf %791, %783 : vector<32x128xf32>
        %793 = arith.mulf %792, %783 : vector<32x128xf32>
        %794 = arith.addf %790, %793 : vector<32x128xf32>
        %795 = math.exp %794 : vector<32x128xf32>
        %796 = vector.broadcast %773 : f32 to vector<32x128xf32>
        %797 = arith.mulf %795, %796 : vector<32x128xf32>
        %798 = arith.mulf %797, %760 : vector<32x128xf32>
        %799 = vector.broadcast %775 : f32 to vector<32x128xf32>
        %800 = arith.mulf %798, %799 : vector<32x128xf32>
        %801 = arith.addf %749, %800 : vector<32x128xf32>
        %802 = vector.broadcast %777 : f32 to vector<32x128xf32>
        %803 = arith.mulf %798, %802 : vector<32x128xf32>
        %804 = arith.addf %752, %803 : vector<32x128xf32>
        %805 = vector.broadcast %779 : f32 to vector<32x128xf32>
        %806 = arith.mulf %798, %805 : vector<32x128xf32>
        %807 = arith.addf %755, %806 : vector<32x128xf32>
        %cst_182 = arith.constant 1.000000e+00 : f32
        %808 = vector.broadcast %cst_182 : f32 to vector<32x128xf32>
        %809 = arith.subf %808, %797 : vector<32x128xf32>
        %cst_183 = arith.constant 1.000000e-10 : f32
        %810 = vector.broadcast %cst_183 : f32 to vector<32x128xf32>
        %811 = arith.addf %809, %810 : vector<32x128xf32>
        %812 = arith.mulf %760, %811 : vector<32x128xf32>
        %c15_i32 = arith.constant 15 : i32
        %813 = arith.addi %25, %c15_i32 : i32
        %c0_184 = arith.constant 0 : index
        %814 = arith.index_cast %813 : i32 to index
        %815 = memref.load %arg2[%c0_184, %814] : memref<9x48xf32, #tpu.memory_space<smem>>
        %c1_185 = arith.constant 1 : index
        %816 = arith.index_cast %813 : i32 to index
        %817 = memref.load %arg2[%c1_185, %816] : memref<9x48xf32, #tpu.memory_space<smem>>
        %c2_186 = arith.constant 2 : index
        %818 = arith.index_cast %813 : i32 to index
        %819 = memref.load %arg2[%c2_186, %818] : memref<9x48xf32, #tpu.memory_space<smem>>
        %c3_187 = arith.constant 3 : index
        %820 = arith.index_cast %813 : i32 to index
        %821 = memref.load %arg2[%c3_187, %820] : memref<9x48xf32, #tpu.memory_space<smem>>
        %c4_188 = arith.constant 4 : index
        %822 = arith.index_cast %813 : i32 to index
        %823 = memref.load %arg2[%c4_188, %822] : memref<9x48xf32, #tpu.memory_space<smem>>
        %c5_189 = arith.constant 5 : index
        %824 = arith.index_cast %813 : i32 to index
        %825 = memref.load %arg2[%c5_189, %824] : memref<9x48xf32, #tpu.memory_space<smem>>
        %c6_190 = arith.constant 6 : index
        %826 = arith.index_cast %813 : i32 to index
        %827 = memref.load %arg2[%c6_190, %826] : memref<9x48xf32, #tpu.memory_space<smem>>
        %c7_191 = arith.constant 7 : index
        %828 = arith.index_cast %813 : i32 to index
        %829 = memref.load %arg2[%c7_191, %828] : memref<9x48xf32, #tpu.memory_space<smem>>
        %c8_192 = arith.constant 8 : index
        %830 = arith.index_cast %813 : i32 to index
        %831 = memref.load %arg2[%c8_192, %830] : memref<9x48xf32, #tpu.memory_space<smem>>
        %832 = vector.broadcast %815 : f32 to vector<32x128xf32>
        %833 = arith.subf %9, %832 : vector<32x128xf32>
        %834 = vector.broadcast %817 : f32 to vector<32x128xf32>
        %835 = arith.subf %5, %834 : vector<32x128xf32>
        %836 = vector.broadcast %819 : f32 to vector<32x128xf32>
        %837 = arith.mulf %836, %833 : vector<32x128xf32>
        %838 = arith.mulf %837, %833 : vector<32x128xf32>
        %839 = arith.mulf %833, %835 : vector<32x128xf32>
        %840 = vector.broadcast %821 : f32 to vector<32x128xf32>
        %841 = arith.mulf %840, %839 : vector<32x128xf32>
        %842 = arith.addf %838, %841 : vector<32x128xf32>
        %843 = vector.broadcast %823 : f32 to vector<32x128xf32>
        %844 = arith.mulf %843, %835 : vector<32x128xf32>
        %845 = arith.mulf %844, %835 : vector<32x128xf32>
        %846 = arith.addf %842, %845 : vector<32x128xf32>
        %847 = math.exp %846 : vector<32x128xf32>
        %848 = vector.broadcast %825 : f32 to vector<32x128xf32>
        %849 = arith.mulf %847, %848 : vector<32x128xf32>
        %850 = arith.mulf %849, %812 : vector<32x128xf32>
        %851 = vector.broadcast %827 : f32 to vector<32x128xf32>
        %852 = arith.mulf %850, %851 : vector<32x128xf32>
        %853 = arith.addf %801, %852 : vector<32x128xf32>
        %854 = vector.broadcast %829 : f32 to vector<32x128xf32>
        %855 = arith.mulf %850, %854 : vector<32x128xf32>
        %856 = arith.addf %804, %855 : vector<32x128xf32>
        %857 = vector.broadcast %831 : f32 to vector<32x128xf32>
        %858 = arith.mulf %850, %857 : vector<32x128xf32>
        %859 = arith.addf %807, %858 : vector<32x128xf32>
        %cst_193 = arith.constant 1.000000e+00 : f32
        %860 = vector.broadcast %cst_193 : f32 to vector<32x128xf32>
        %861 = arith.subf %860, %849 : vector<32x128xf32>
        %cst_194 = arith.constant 1.000000e-10 : f32
        %862 = vector.broadcast %cst_194 : f32 to vector<32x128xf32>
        %863 = arith.addf %861, %862 : vector<32x128xf32>
        %864 = arith.mulf %812, %863 : vector<32x128xf32>
        %c16_i32_195 = arith.constant 16 : i32
        %c0_196 = arith.constant 0 : index
        %c0_197 = arith.constant 0 : index
        %865 = vector.load %arg4[%c0_196, %c0_197] : memref<32x128xf32, #tpu.memory_space<vmem>>, vector<32x128xf32>
        tpu.vector_store %arg4[%c0_196, %c0_197], %864 {strides = array<i32>} : memref<32x128xf32, #tpu.memory_space<vmem>>, vector<32x128xf32>,
        %c0_198 = arith.constant 0 : index
        %c0_199 = arith.constant 0 : index
        %c0_200 = arith.constant 0 : index
        %866 = vector.load %arg3[%c0_198, %c0_199, %c0_200] : memref<3x32x128xf32, #tpu.memory_space<vmem>>, vector<1x32x128xf32>
        %867 = vector.shape_cast %866 : vector<1x32x128xf32> to vector<32x128xf32>
        %868 = vector.shape_cast %853 : vector<32x128xf32> to vector<1x32x128xf32>
        tpu.vector_store %arg3[%c0_198, %c0_199, %c0_200], %868 {strides = array<i32>} : memref<3x32x128xf32, #tpu.memory_space<vmem>>, vector<1x32x128xf32>,
        %c1_201 = arith.constant 1 : index
        %c0_202 = arith.constant 0 : index
        %c0_203 = arith.constant 0 : index
        %869 = vector.load %arg3[%c1_201, %c0_202, %c0_203] : memref<3x32x128xf32, #tpu.memory_space<vmem>>, vector<1x32x128xf32>
        %870 = vector.shape_cast %869 : vector<1x32x128xf32> to vector<32x128xf32>
        %871 = vector.shape_cast %856 : vector<32x128xf32> to vector<1x32x128xf32>
        tpu.vector_store %arg3[%c1_201, %c0_202, %c0_203], %871 {strides = array<i32>} : memref<3x32x128xf32, #tpu.memory_space<vmem>>, vector<1x32x128xf32>,
        %c2_204 = arith.constant 2 : index
        %c0_205 = arith.constant 0 : index
        %c0_206 = arith.constant 0 : index
        %872 = vector.load %arg3[%c2_204, %c0_205, %c0_206] : memref<3x32x128xf32, #tpu.memory_space<vmem>>, vector<1x32x128xf32>
        %873 = vector.shape_cast %872 : vector<1x32x128xf32> to vector<32x128xf32>
        %874 = vector.shape_cast %859 : vector<32x128xf32> to vector<1x32x128xf32>
        tpu.vector_store %arg3[%c2_204, %c0_205, %c0_206], %874 {strides = array<i32>} : memref<3x32x128xf32, #tpu.memory_space<vmem>>, vector<1x32x128xf32>,
      } else {
      }
    }
    %c3_i32_5 = arith.constant 3 : i32
    return
  }
  func.func @transform_0(%arg0: i32, %arg1: i32) -> (i32, i32) {
    %c0_i32 = arith.constant 0 : i32
    %c0_i32_0 = arith.constant 0 : i32
    %c0_i32_1 = arith.constant 0 : i32
    return %c0_i32, %c0_i32_0 : i32, i32
  }
  func.func @transform_1(%arg0: i32, %arg1: i32) -> (i32, i32, i32) {
    %c0_i32 = arith.constant 0 : i32
    %c0_i32_0 = arith.constant 0 : i32
    return %c0_i32, %arg0, %arg1 : i32, i32, i32
  }
}

</mosaic_0001>

<bundles_post_ra>
// kernel: tpu_custom_call.1
= control target key start
LH: loop header
LB: loop body
LE: loop exit
PB: predicated region body
PF: predicated region fallthrough
CT: control target
= control target key end

     0   :  { %s5773_s0 = inlined_call_operand.hbm [shape: f32[9,48], index: 0, kind: input, shape index: {}]   ;;  %s5774_s1 = inlined_call_operand.hbm [shape: f32[3,64,256], index: 1, kind: output, shape index: {}]  }
   0x1   :  { %5783 = sst [smem:[#allocation18_spill]] %s5773_s0 }
   0x2   :  { %6 = vsyncpa [#allocation5], 0 }
   0x3   :  { %7 = vsyncpa [#allocation4], 0 }
   0x4   :  { %9 = vsyncpa [#allocation4 + $0x1], 0  ;;  %s3188_s6 = smov 0   ;;  %s3190_s7 = smov 0  }
   0x5   :  { %s3192_s8 = smov 0   ;;  %s3194_s9 = smov 0  }
   0x6   :  { %s3196_s10 = smov 0   ;;  %s3198_s11 = smov 0  }
   0x7   :  { %s3200_s12 = smov 0   ;;  %s3202_s13 = smov 0  }
   0x8 LB: > { %5784 = sst [smem:[#allocation11_spill]] %s3139_s8  ;;  %s2420_s14 = sadd.s32 4294967295, %s3159_s13   ;;  %s3159_s13 = sphi %s3202_s13, %s15_s13   ;;  %s3155_s12 = sphi %s3200_s12, %s5806_s12   ;;  %s3151_s11 = sphi %s3198_s11, %s5802_s11   ;;  %s3147_s10 = sphi %s3196_s10, %s5801_s10   ;;  %s3143_s9 = sphi %s3194_s9, %s5800_s9   ;;  %s3139_s8 = sphi %s3192_s8, %s5799_s8   ;;  %s3135_s7 = sphi %s3190_s7, %s5805_s7   ;;  %s3131_s6 = sphi %s3188_s6, %s5804_s6  }
   0x9   : > { %5785 = sst [smem:[#allocation12_spill]] %s3151_s11  ;;  %s2421_s15 = sadd.s32 4294967294, %s3159_s13  }
   0xa   : > { %5786 = sst [smem:[#allocation13_spill]] %s3155_s12  ;;  %s24_s16 = sadd.s32 1, %s3151_s11 }
   0xb   : > { %s27_s17 = sadd.s32 1, %s3155_s12  ;;  %p25_p0 = scmp.ge.s32.totalorder %s24_s16, 2 }
   0xc   : > { %s57_s18 = sadd.s32 1, %s3139_s8  ;;  %p67_p1 = scmp.ne.s32.totalorder %s3139_s8, %s3135_s7 }
   0xd   : > { %p68_p2 = scmp.eq.s32.totalorder %s2420_s14, 3  ;;  %s5808_s16 = smov (%p25_p0, %s24_s16), 0 }
   0xe   : > { %5787 = sst [smem:[#allocation14_spill]] %s5808_s16  ;;  %s5810_s17 = smov (!%p25_p0, %s27_s17), %s3155_s12 }
   0xf   : > { %s53_s19 = ssub.s32 %s3151_s11, %s5808_s16  ;;  %p3240_p3 = por %p68_p2, %p67_p1 }
  0x10   : > { %p29_p4 = scmp.ge.s32.totalorder %s5810_s17, 2  ;;  %p73_p5 = scmp.ne.s32.totalorder %s3135_s7, %s3131_s6 }
  0x11   : > { %p74_p6 = scmp.eq.s32.totalorder %s2421_s15, 3  ;;  %p2422_p7 = scmp.ge.s32.totalorder %s3159_s13, 1 }
  0x12   : > { %s5812_s17 = smov (%p29_p4, %s5810_s17), 0  ;;  %p81_p9 = scmp.lt.s32.totalorder %s3159_s13, 5 }
  0x13   : > { %5789 = sst [smem:[#allocation15_spill]] %s5812_s17  ;;  %p3249_p8 = por %p74_p6, %p73_p5 }
  0x14   : > { %s52_s22 = ssub.s32 %s3155_s12, %s5812_s17  ;;  %p82_p10 = pnand %p2422_p7, %p81_p9 }
  0x15   : > { %s54_s23 = sor.u32 %s53_s19, %s52_s22  ;;  %p2858_p12 = scmp.eq.s32.totalorder %s2420_s14, 0 }
  0x16   : > { %p55_p11 = scmp.eq.s32.totalorder %s54_s23, 0  ;;  %p2850_p13 = pneg %p82_p10 }
  0x17   : > { %s3165_s25 = smov [#allocation3]   ;;  %s3166_s26 = smov 128  }
  0x18   : > { %s3257_s24 = scalar_select %p55_p11, %s3139_s8, %s57_s18  }
  0x19   : > { %p2851_p0 = pnand %p2858_p12, %p2850_p13  ;;  %s3167_s27 = smov 8  }
  0x1a   : > { %5791 = sst [smem:[#allocation16_spill]] %s3257_s24 }
  0x1b   : > { %s5792_s0 = sld [smem:[#allocation18_spill]] }
  0x1d   : > { %107 = sbr.rel (%p82_p10) target bundleno = 670 (0x29e), region = 24 }
  0x21   : > { %2853 = dma.hbm_to_smem (!%p2851_p0), %s5792_s0, 256, %s3165_s25, [#allocation5], %s3166_s26, %s3166_s26, %s3167_s27  }
  0x22   : > { %3122 = dma.done.wait (%p2858_p12), [#allocation5], 256  }
  0x23   : > { %3124 = vsyncadd (%p2858_p12), [#allocation5], 4294967040 }
  0x24   : > { %113 = sfence }
  0x25   : > { %s2426_s30 = sshll.u32 %s3147_s10, 5  ;;  %s2427_s2 = sshll.u32 %s3143_s9, 7  ;;  %v126_v0 = vlaneseq  ;;  %v3168_v2 = vmov 1.0   ;;  %v3169_v11 = vmov 0.0  }
  0x26   : > { %v131_v1 = vstv %s2426_s30  ;;  %145 = vst [vmem:[#allocation2 + $0x10] sm:$0xff] %v3168_v2  ;;  %146 = vst [vmem:[#allocation2] sm:$0xff] %v3168_v2  ;;  %s5775_s3 = sand.u32 1, %s3135_s7   ;;  %v142_v5 = vstv %s2427_s2  ;;  %s3291_s14 = smov 0  }
  0x27   : > { %147 = vst [vmem:[#allocation2 + $0x18] sm:$0xff] %v3168_v2  ;;  %148 = vst [vmem:[#allocation2 + $0x8] sm:$0xff] %v3168_v2  ;;  %v127_v3 = vshrl.u32 %v126_v0, 7  ;;  %v141_v4 = vand.u32 127, %v126_v0  ;;  %s2835_s4 = smul.u32 96, %s5775_s3 }
  0x29   : > { %v128_v6 = vadd.s32 8, %v127_v3  ;;  %v129_v7 = vadd.s32 16, %v127_v3  ;;  %v130_v8 = vadd.s32 24, %v127_v3  ;;  %v132_v9 = vadd.s32 %v131_v1, %v127_v3  ;;  %s3267_s5 = scalar_lea.vmem [#allocation6], %s2835_s4 }
  0x2a   : > { %v143_v10 = vadd.s32 %v142_v5, %v141_v4  ;;  %149 = vst [vmem:[%s3267_s5] sm:$0xff] %v3169_v11  ;;  %150 = vst [vmem:[%s3267_s5 + $0x8] sm:$0xff] %v3169_v11 }
  0x2b   : > { %151 = vst [vmem:[%s3267_s5 + $0x10] sm:$0xff] %v3169_v11  ;;  %152 = vst [vmem:[%s3267_s5 + $0x18] sm:$0xff] %v3169_v11  ;;  %v133_v12 = vadd.s32 %v131_v1, %v128_v6  ;;  %v134_v13 = vadd.s32 %v131_v1, %v129_v7  ;;  %v135_v14 = vadd.s32 %v131_v1, %v130_v8  ;;  %v3281_v15 = vcvt.s32.f32 %v132_v9 }
  0x2c   : > { %153 = vst [vmem:[%s3267_s5 + $0x20] sm:$0xff] %v3169_v11  ;;  %154 = vst [vmem:[%s3267_s5 + $0x28] sm:$0xff] %v3169_v11  ;;  %v3283_v16 = vcvt.s32.f32 %v143_v10 }
  0x2d   : > { %155 = vst [vmem:[%s3267_s5 + $0x30] sm:$0xff] %v3169_v11  ;;  %156 = vst [vmem:[%s3267_s5 + $0x38] sm:$0xff] %v3169_v11  ;;  %v3285_v17 = vcvt.s32.f32 %v133_v12  ;;  %v3287_v18 = vcvt.s32.f32 %v134_v13  ;;  %v3289_v19 = vcvt.s32.f32 %v135_v14 }
  0x2e   : > { %157 = vst [vmem:[%s3267_s5 + $0x40] sm:$0xff] %v3169_v11  ;;  %158 = vst [vmem:[%s3267_s5 + $0x48] sm:$0xff] %v3169_v11 }
  0x2f   : > { %159 = vst [vmem:[%s3267_s5 + $0x50] sm:$0xff] %v3169_v11  ;;  %160 = vst [vmem:[%s3267_s5 + $0x58] sm:$0xff] %v3169_v11 }
  0x30 LB: >> { %v167_v20 = vld [vmem:[#allocation2 + $0x10] sm:$0xff]  ;;  %v168_v21 = vld [vmem:[#allocation2] sm:$0xff]  ;;  %v169_v22 = vld [vmem:[#allocation2 + $0x18] sm:$0xff]  ;;  %s3163_s14 = sphi %s3291_s14, %s166_s14  }
  0x31   : >> { %v170_v23 = vld [vmem:[#allocation2 + $0x8] sm:$0xff]  ;;  %v171_v24 = vmax.f32 %v167_v20, %v168_v21 }
  0x32   : >> { %v172_v25 = vmax.f32 %v169_v22, %v170_v23 }
  0x34   : >> { %v173_v26 = vmax.f32 %v171_v24, %v172_v25 }
  0x36   : >> { %174 = vmax.xlane.f32.xlu0 %v173_v26 }
  0xbf   : >> { %v175_v27 = vpop.xlane.xlu0 %174 }
  0xc0   : >> { %v176_v28 = vrot.slane %v175_v27, 4 }
  0xc2   : >> { %v177_v29 = vmax.f32 %v175_v27, %v176_v28 }
  0xc4   : >> { %v178_v30 = vrot.slane %v177_v29, 2 }
  0xc6   : >> { %v179_v31 = vmax.f32 %v177_v29, %v178_v30 }
  0xc8   : >> { %v180_v32 = vrot.slane %v179_v31, 1 }
  0xca   : >> { %v181_v33 = vmax.f32 %v179_v31, %v180_v32 }
  0xcc   : >> { %2836 = vpush %v181_v33 }
  0xfd   : >> { %s2837_s15 = spop %2836 }
  0xfe   : >> { %p183_p1 = scmp.ge.f32.partialorder %s2837_s15, 1e-06 }
 0x100   : >> { %186 = sbr.rel (!%p183_p1) target bundleno = 651 (0x28b), region = 39 }
 0x105   : >> { %s3297_s18 = sshll.u32 %s3163_s14, 4 }
 0x106   : >> { %s206_s19 = sld [smem:[#allocation3 + %s3297_s18]]  ;;  %s207_s22 = sshra.s32 %s3297_s18, 7 }
 0x107   : >> { %s3301_s23 = sshll.u32 %s207_s22, 7  ;;  %s3304_s25 = sand.u32 127, %s3297_s18 }
 0x108   : >> { %s2579_s26 = sadd.s32 128, %s3301_s23  ;;  %s2581_s27 = sadd.s32 256, %s3301_s23 }
 0x109   : >> { %s213_s28 = sadd.s32 %s2579_s26, %s3304_s25  ;;  %s217_s29 = sadd.s32 %s2581_s27, %s3304_s25 }
 0x10a   : >> { %s214_s30 = sld [smem:[#allocation3 + %s213_s28]]  ;;  %s2583_s2 = sadd.s32 384, %s3301_s23 }
 0x10b   : >> { %s218_s4 = sld [smem:[#allocation3 + %s217_s29]]  ;;  %s221_s15 = sadd.s32 %s2583_s2, %s3304_s25 }
 0x10c   : >> { %s222_s22 = sld [smem:[#allocation3 + %s221_s15]]  ;;  %s2585_s3 = sadd.s32 512, %s3301_s23  ;;  %v243_v34 = vstv %s206_s19 }
 0x10d   : >> { %s225_s0 = sadd.s32 %s2585_s3, %s3304_s25  ;;  %v244_v35 = vsub.f32 %v3283_v16, %v243_v34  ;;  %s335_s19 = sadd.s32 1, %s3297_s18 }
 0x10e   : >> { %s226_s17 = sld [smem:[#allocation3 + %s225_s0]]  ;;  %s337_s0 = sshra.s32 %s335_s19, 7 }
 0x10f   : >> { %s3320_s3 = sld [smem:[#allocation3 + %s335_s19]]  ;;  %s3322_s26 = sshll.u32 %s337_s0, 7 }
 0x110   : >> { %v245_v36 = vstv %s214_s30  ;;  %s2595_s27 = sadd.s32 128, %s3322_s26  ;;  %s3325_s28 = sand.u32 127, %s335_s19 }
 0x111   : >> { %v246_v37 = vsub.f32 %v3281_v15, %v245_v36  ;;  %v247_v38 = vsub.f32 %v3285_v17, %v245_v36  ;;  %v248_v39 = vsub.f32 %v3287_v18, %v245_v36  ;;  %v249_v40 = vsub.f32 %v3289_v19, %v245_v36  ;;  %s2597_s29 = sadd.s32 256, %s3322_s26  ;;  %s2599_s15 = sadd.s32 384, %s3322_s26 }
 0x112   : >> { %v250_v41 = vstv %s218_s4  ;;  %v257_v42 = vstv %s222_s22  ;;  %s347_s2 = sadd.s32 %s2597_s29, %s3325_s28  ;;  %s351_s22 = sadd.s32 %s2599_s15, %s3325_s28 }
 0x113   : >> { %v251_v43 = vmul.f32 %v250_v41, %v244_v35  ;;  %v253_v44 = vmul.f32 %v246_v37, %v244_v35  ;;  %v254_v45 = vmul.f32 %v247_v38, %v244_v35  ;;  %v255_v46 = vmul.f32 %v248_v39, %v244_v35  ;;  %s348_s4 = sld [smem:[#allocation3 + %s347_s2]]  ;;  %s2601_s19 = sadd.s32 512, %s3322_s26 }
 0x114   : >> { %v256_v47 = vmul.f32 %v249_v40, %v244_v35  ;;  %v266_v48 = vstv %s226_s17  ;;  %s343_s17 = sadd.s32 %s2595_s27, %s3325_s28  ;;  %s352_s0 = sld [smem:[#allocation3 + %s351_s22]] }
 0x115   : >> { %v252_v49 = vmul.f32 %v251_v43, %v244_v35  ;;  %v258_v50 = vmul.f32 %v257_v42, %v253_v44  ;;  %v259_v51 = vmul.f32 %v257_v42, %v254_v45  ;;  %v260_v52 = vmul.f32 %v257_v42, %v255_v46  ;;  %s344_s30 = sld [smem:[#allocation3 + %s343_s17]]  ;;  %s355_s27 = sadd.s32 %s2601_s19, %s3325_s28 }
 0x116   : >> { %v261_v53 = vmul.f32 %v257_v42, %v256_v47  ;;  %v267_v54 = vmul.f32 %v266_v48, %v246_v37  ;;  %v268_v55 = vmul.f32 %v266_v48, %v247_v38  ;;  %v269_v56 = vmul.f32 %v266_v48, %v248_v39  ;;  %s2587_s16 = sadd.s32 640, %s3301_s23  ;;  %s356_s17 = sld [smem:[#allocation3 + %s355_s27]] }
 0x117   : >> { %v262_v57 = vadd.f32 %v258_v50, %v252_v49  ;;  %v263_v58 = vadd.f32 %v259_v51, %v252_v49  ;;  %v264_v59 = vadd.f32 %v260_v52, %v252_v49  ;;  %v270_v60 = vmul.f32 %v266_v48, %v249_v40  ;;  %s229_s29 = sadd.s32 %s2587_s16, %s3304_s25  ;;  %s2589_s2 = sadd.s32 768, %s3301_s23 }
 0x118   : >> { %v265_v61 = vadd.f32 %v261_v53, %v252_v49  ;;  %v271_v62 = vmul.f32 %v267_v54, %v246_v37  ;;  %v272_v63 = vmul.f32 %v268_v55, %v247_v38  ;;  %v273_v0 = vmul.f32 %v269_v56, %v248_v39  ;;  %s3344_s16 = sld [smem:[#allocation3 + %s229_s29]]  ;;  %s2593_s22 = sadd.s32 1024, %s3301_s23 }
 0x119   : >> { %v274_v1 = vmul.f32 %v270_v60, %v249_v40  ;;  %v373_v6 = vstv %s3320_s3  ;;  %s2591_s3 = sadd.s32 896, %s3301_s23  ;;  %v380_v22 = vstv %s348_s4  ;;  %s2603_s4 = sadd.s32 640, %s3322_s26 }
 0x11a   : >> { %v275_v2 = vadd.f32 %v271_v62, %v262_v57  ;;  %v276_v3 = vadd.f32 %v272_v63, %v263_v58  ;;  %v277_v4 = vadd.f32 %v273_v0, %v264_v59  ;;  %v374_v10 = vsub.f32 %v3283_v16, %v373_v6  ;;  %s237_s15 = sadd.s32 %s2591_s3, %s3304_s25  ;;  %s3351_s19 = sadd.s32 2, %s3297_s18  ;;  %v3382_v58 = vld [vmem:[#allocation2 + $0x10] sm:$0xff]  ;;  %v3391_v63 = vld [vmem:[#allocation2 + $0x18] sm:$0xff] }
 0x11b   : >> { %v278_v5 = vadd.f32 %v274_v1, %v265_v61  ;;  %v375_v12 = vstv %s344_s30  ;;  %s233_s30 = sadd.s32 %s2589_s2, %s3304_s25  ;;  %v387_v28 = vstv %s352_s0  ;;  %s2605_s0 = sadd.s32 768, %s3322_s26  ;;  %v3386_v61 = vld [vmem:[#allocation2] sm:$0xff] }
 0x11c   : >> { %v279_v7 = vmul.f32 1.442695, %v275_v2  ;;  %v281_v8 = vmul.f32 1.442695, %v276_v3  ;;  %v283_v9 = vmul.f32 1.442695, %v277_v4  ;;  %v376_v13 = vsub.f32 %v3281_v15, %v375_v12  ;;  %s359_s29 = sadd.s32 %s2603_s4, %s3325_s28  ;;  %s363_s3 = sadd.s32 %s2605_s0, %s3325_s28 }
 0x11d   : >> { %v285_v11 = vmul.f32 1.442695, %v278_v5  ;;  %v377_v14 = vsub.f32 %v3285_v17, %v375_v12  ;;  %v378_v20 = vsub.f32 %v3287_v18, %v375_v12  ;;  %v379_v21 = vsub.f32 %v3289_v19, %v375_v12  ;;  %s3353_s27 = sld [smem:[#allocation3 + %s233_s30]]  ;;  %s467_s2 = sshra.s32 %s3351_s19, 7  ;;  %v3395_v3 = vld [vmem:[#allocation2 + $0x8] sm:$0xff] }
 0x11e   : >> { %2946 = vpow2.f32 %v279_v7  ;;  %v381_v23 = vmul.f32 %v380_v22, %v374_v10  ;;  %v383_v24 = vmul.f32 %v376_v13, %v374_v10  ;;  %v396_v32 = vstv %s356_s17  ;;  %s3356_s23 = sld [smem:[#allocation3 + %s237_s15]]  ;;  %s241_s17 = sadd.s32 %s2593_s22, %s3304_s25  ;;  %v192_v22 = vld [vmem:[%s3267_s5] sm:$0xff] }
 0x11f   : >> { %2948 = vpow2.f32 %v281_v8  ;;  %v384_v25 = vmul.f32 %v377_v14, %v374_v10  ;;  %v385_v26 = vmul.f32 %v378_v20, %v374_v10  ;;  %v386_v27 = vmul.f32 %v379_v21, %v374_v10  ;;  %s2607_s30 = sadd.s32 896, %s3322_s26  ;;  %s3363_s12 = sld [smem:[#allocation3 + %s241_s17]] }
 0x120   : >> { %2950 = vpow2.f32 %v283_v9  ;;  %v382_v29 = vmul.f32 %v381_v23, %v374_v10  ;;  %v388_v30 = vmul.f32 %v387_v28, %v383_v24  ;;  %v397_v35 = vmul.f32 %v396_v32, %v376_v13  ;;  %s2609_s15 = sadd.s32 1024, %s3322_s26  ;;  %s3366_s25 = sld [smem:[#allocation3 + %s359_s29]]  ;;  %v193_v23 = vld [vmem:[%s3267_s5 + $0x8] sm:$0xff] }
 0x121   : >> { %2952 = vpow2.f32 %v285_v11  ;;  %v389_v31 = vmul.f32 %v387_v28, %v384_v25  ;;  %v390_v33 = vmul.f32 %v387_v28, %v385_v26  ;;  %v391_v34 = vmul.f32 %v387_v28, %v386_v27  ;;  %s3368_s22 = sshll.u32 %s467_s2, 7  ;;  %s3370_s4 = sld [smem:[#allocation3 + %s363_s3]]  ;;  %v2429_v28 = vld [vmem:[%s3267_s5 + $0x20] sm:$0xff] }
 0x122   : >> { %v398_v36 = vmul.f32 %v396_v32, %v377_v14  ;;  %v392_v37 = vadd.f32 %v388_v30, %v382_v29  ;;  %v399_v39 = vmul.f32 %v396_v32, %v378_v20  ;;  %v400_v40 = vmul.f32 %v396_v32, %v379_v21  ;;  %s367_s0 = sadd.s32 %s2607_s30, %s3325_s28  ;;  %s371_s11 = sadd.s32 %s2609_s15, %s3325_s28 }
 0x123   : >> { %v393_v38 = vadd.f32 %v389_v31, %v382_v29  ;;  %v394_v41 = vadd.f32 %v390_v33, %v382_v29  ;;  %v395_v42 = vadd.f32 %v391_v34, %v382_v29  ;;  %v401_v43 = vmul.f32 %v397_v35, %v376_v13  ;;  %s3376_s17 = sld [smem:[#allocation3 + %s3351_s19]]  ;;  %s2611_s26 = sadd.s32 128, %s3368_s22  ;;  %v2430_v29 = vld [vmem:[%s3267_s5 + $0x28] sm:$0xff]  ;;  %v194_v34 = vld [vmem:[%s3267_s5 + $0x10] sm:$0xff] }
 0x124   : >> { %v402_v44 = vmul.f32 %v398_v36, %v377_v14  ;;  %v403_v45 = vmul.f32 %v399_v39, %v378_v20  ;;  %v404_v46 = vmul.f32 %v400_v40, %v379_v21  ;;  %v287_v54 = vstv %s3344_s16  ;;  %s3380_s29 = sand.u32 127, %s3351_s19  ;;  %s3384_s2 = sld [smem:[#allocation3 + %s367_s0]]  ;;  %v2431_v39 = vld [vmem:[%s3267_s5 + $0x30] sm:$0xff] }
 0x125   : >> { %v405_v47 = vadd.f32 %v401_v43, %v392_v37  ;;  %s3388_s28 = sld [smem:[#allocation3 + %s371_s11]]  ;;  %s2613_s16 = sadd.s32 256, %s3368_s22  ;;  %v296_v5 = vstv %s3353_s27  ;;  %v305_v8 = vstv %s3356_s23  ;;  %v314_v10 = vstv %s3363_s12 }
 0x126   : >> { %v406_v48 = vadd.f32 %v402_v44, %v393_v38  ;;  %v407_v49 = vadd.f32 %v403_v45, %v394_v41  ;;  %v408_v50 = vadd.f32 %v404_v46, %v395_v42  ;;  %s473_s19 = sadd.s32 %s2611_s26, %s3380_s29  ;;  %s477_s11 = sadd.s32 %s2613_s16, %s3380_s29  ;;  %v3409_v12 = vstv %s3366_s25  ;;  %v195_v45 = vld [vmem:[%s3267_s5 + $0x18] sm:$0xff] }
 0x127   : >> { %v409_v51 = vmul.f32 1.442695, %v405_v47  ;;  %s3402_s3 = sld [smem:[#allocation3 + %s473_s19]]  ;;  %s3405_s30 = sadd.s32 3, %s3297_s18  ;;  %v3413_v20 = vstv %s3370_s4 }
 0x128   : >> { %v411_v52 = vmul.f32 1.442695, %v406_v48  ;;  %v413_v56 = vmul.f32 1.442695, %v407_v49  ;;  %v415_v59 = vmul.f32 1.442695, %v408_v50 }
 0x129   : >> { %2954 = vpow2.f32 %v409_v51  ;;  %s3415_s27 = sld [smem:[#allocation3 + %s477_s11]]  ;;  %v503_v21 = vstv %s3376_s17  ;;  %s597_s12 = sshra.s32 %s3405_s30, 7 }
 0x12a   : >> { %2956 = vpow2.f32 %v411_v52  ;;  %v3421_v27 = vstv %s3384_s2  ;;  %s2615_s23 = sadd.s32 384, %s3368_s22  ;;  %s2617_s15 = sadd.s32 512, %s3368_s22  ;;  %v3433_v38 = vsub.f32 %v3283_v16, %v503_v21 }
 0x12b   : >> { %v2947_v53 = vpop.eup %2946  ;;  %2958 = vpow2.f32 %v413_v56  ;;  %v3427_v33 = vstv %s3388_s28  ;;  %s3438_s25 = sshll.u32 %s597_s12, 7  ;;  %s481_s4 = sadd.s32 %s2615_s23, %s3380_s29 }
 0x12c   : >> { %v2949_v55 = vpop.eup %2948  ;;  %v288_v62 = vmul.f32 %v2947_v53, %v287_v54  ;;  %2960 = vpow2.f32 %v415_v59  ;;  %s485_s0 = sadd.s32 %s2617_s15, %s3380_s29  ;;  %s2627_s17 = sadd.s32 128, %s3438_s25 }
 0x12d   : >> { %v2951_v57 = vpop.eup %2950  ;;  %v289_v0 = vmul.f32 %v2949_v55, %v287_v54  ;;  %v2432_v55 = vld [vmem:[%s3267_s5 + $0x38] sm:$0xff]  ;;  %s3463_s26 = sand.u32 127, %s3405_s30  ;;  %s3471_s2 = sld [smem:[#allocation3 + %s481_s4]] }
 0x12e   : >> { %v2953_v60 = vpop.eup %2952  ;;  %v290_v1 = vmul.f32 %v2951_v57, %v287_v54  ;;  %v292_v2 = vmul.f32 %v288_v62, %v3382_v58  ;;  %v323_v9 = vsub.f32 1.0, %v288_v62  ;;  %v2433_v62 = vld [vmem:[%s3267_s5 + $0x40] sm:$0xff]  ;;  %s3480_s28 = sld [smem:[#allocation3 + %s485_s0]]  ;;  %s603_s16 = sadd.s32 %s2627_s17, %s3463_s26 }
 0x12f   : >> { %v293_v4 = vmul.f32 %v289_v0, %v3386_v61  ;;  %v291_v6 = vmul.f32 %v2953_v60, %v287_v54  ;;  %v324_v11 = vsub.f32 1.0, %v289_v0  ;;  %v505_v54 = vstv %s3402_s3  ;;  %s3520_s19 = sld [smem:[#allocation3 + %s3405_s30]]  ;;  %s2629_s11 = sadd.s32 256, %s3438_s25 }
 0x130   : >> { %v294_v7 = vmul.f32 %v290_v1, %v3391_v63  ;;  %v297_v14 = vmul.f32 %v296_v5, %v292_v2  ;;  %v306_v25 = vmul.f32 %v305_v8, %v292_v2  ;;  %v325_v31 = vsub.f32 1.0, %v290_v1  ;;  %s3532_s3 = sld [smem:[#allocation3 + %s603_s16]]  ;;  %s2631_s30 = sadd.s32 384, %s3438_s25 }
 0x131   : >> { %v295_v13 = vmul.f32 %v291_v6, %v3395_v3  ;;  %v298_v24 = vmul.f32 %v296_v5, %v293_v4  ;;  %v307_v26 = vmul.f32 %v305_v8, %v293_v4  ;;  %v327_v32 = vadd.f32 1e-10, %v323_v9  ;;  %s607_s12 = sadd.s32 %s2629_s11, %s3463_s26  ;;  %s2633_s23 = sadd.s32 512, %s3438_s25 }
 0x132   : >> { %v299_v30 = vmul.f32 %v296_v5, %v294_v7  ;;  %v308_v35 = vmul.f32 %v305_v8, %v294_v7  ;;  %v326_v36 = vsub.f32 1.0, %v291_v6  ;;  %v328_v37 = vadd.f32 1e-10, %v324_v11  ;;  %v2435_v6 = vld [vmem:[%s3267_s5 + $0x50] sm:$0xff]  ;;  %s611_s15 = sadd.s32 %s2631_s30, %s3463_s26  ;;  %s3574_s0 = sld [smem:[#allocation3 + %s607_s12]] }
 0x133   : >> { %v300_v40 = vmul.f32 %v296_v5, %v295_v13  ;;  %v3436_v41 = vadd.f32 %v297_v14, %v192_v22  ;;  %v315_v42 = vmul.f32 %v314_v10, %v292_v2  ;;  %v316_v43 = vmul.f32 %v314_v10, %v293_v4  ;;  %v2434_v5 = vld [vmem:[%s3267_s5 + $0x48] sm:$0xff]  ;;  %s615_s17 = sadd.s32 %s2633_s23, %s3463_s26  ;;  %s2619_s16 = sadd.s32 640, %s3368_s22 }
 0x134   : >> { %v3441_v46 = vadd.f32 %v298_v24, %v193_v23  ;;  %v309_v47 = vmul.f32 %v305_v8, %v295_v13  ;;  %v3443_v48 = vadd.f32 %v2429_v28, %v306_v25  ;;  %v3445_v49 = vadd.f32 %v2430_v29, %v307_v26  ;;  %s3600_s11 = sld [smem:[#allocation3 + %s615_s17]]  ;;  %s489_s23 = sadd.s32 %s2619_s16, %s3380_s29 }
 0x135   : >> { %v3448_v51 = vadd.f32 %v299_v30, %v194_v34  ;;  %v329_v52 = vadd.f32 1e-10, %v325_v31  ;;  %v3451_v53 = vmul.f32 %v327_v32, %v3382_v58  ;;  %v3456_v56 = vadd.f32 %v2431_v39, %v308_v35  ;;  %s2623_s17 = sadd.s32 896, %s3368_s22  ;;  %s2625_s8 = sadd.s32 1024, %s3368_s22 }
 0x136   : >> { %v2955_v44 = vpop.eup %2954  ;;  %v317_v57 = vmul.f32 %v314_v10, %v294_v7  ;;  %v330_v59 = vadd.f32 1e-10, %v326_v36  ;;  %v3459_v60 = vmul.f32 %v328_v37, %v3386_v61  ;;  %v3466_v0 = vadd.f32 %v300_v40, %v195_v45  ;;  %v2436_v7 = vld [vmem:[%s3267_s5 + $0x58] sm:$0xff] }
 0x137   : >> { %v2957_v50 = vpop.eup %2956  ;;  %v318_v58 = vmul.f32 %v314_v10, %v295_v13  ;;  %v3469_v1 = vmul.f32 %v2955_v44, %v3409_v12  ;;  %v510_v2 = vstv %s3415_s27  ;;  %v3483_v8 = vsub.f32 %v3281_v15, %v505_v54  ;;  %s3544_s27 = sadd.s32 4, %s3297_s18 }
 0x138   : >> { %v2959_v4 = vpop.eup %2958  ;;  %v3478_v61 = vmul.f32 %v2957_v50, %v3409_v12  ;;  %v3486_v9 = vsub.f32 %v3285_v17, %v505_v54  ;;  %v3489_v10 = vsub.f32 %v3287_v18, %v505_v54  ;;  %v3491_v13 = vadd.f32 %v2432_v55, %v309_v47  ;;  %s727_s4 = sshra.s32 %s3544_s27, 7  ;;  %s3617_s12 = sand.u32 127, %s3544_s27 }
 0x139   : >> { %v2961_v11 = vpop.eup %2960  ;;  %v3494_v14 = vmul.f32 %v329_v52, %v3391_v63  ;;  %v422_v21 = vmul.f32 %v3469_v1, %v3451_v53  ;;  %v3499_v22 = vsub.f32 %v3289_v19, %v505_v54  ;;  %v3502_v23 = vadd.f32 %v2433_v62, %v315_v42  ;;  %s3633_s16 = sld [smem:[#allocation3 + %s3544_s27]] }
 0x13a   : >> { %v3505_v24 = vmul.f32 %v330_v59, %v3395_v3  ;;  %v423_v25 = vmul.f32 %v3478_v61, %v3459_v60  ;;  %v511_v26 = vmul.f32 %v510_v2, %v3433_v38  ;;  %v3510_v63 = vadd.f32 %v2434_v5, %v316_v43 }
 0x13b   : >> { %v3512_v28 = vadd.f32 %v2435_v6, %v317_v57  ;;  %v3514_v29 = vadd.f32 %v2436_v7, %v318_v58  ;;  %v3517_v30 = vmul.f32 %v2959_v4, %v3409_v12  ;;  %v3524_v3 = vmul.f32 %v2961_v11, %v3409_v12 }
 0x13c   : >> { %v513_v31 = vmul.f32 %v3483_v8, %v3433_v38  ;;  %v514_v32 = vmul.f32 %v3486_v9, %v3433_v38  ;;  %v515_v34 = vmul.f32 %v3489_v10, %v3433_v38  ;;  %v427_v12 = vmul.f32 %v3413_v20, %v422_v21 }
 0x13d   : >> { %v3536_v35 = vmul.f32 %v3517_v30, %v3494_v14  ;;  %v453_v36 = vsub.f32 1.0, %v3469_v1  ;;  %v516_v37 = vmul.f32 %v3499_v22, %v3433_v38  ;;  %v3548_v39 = vmul.f32 %v3524_v3, %v3505_v24 }
 0x13e   : >> { %v428_v40 = vmul.f32 %v3413_v20, %v423_v25  ;;  %v436_v42 = vmul.f32 %v3421_v27, %v422_v21  ;;  %v512_v43 = vmul.f32 %v511_v26, %v3433_v38  ;;  %v437_v44 = vmul.f32 %v3421_v27, %v423_v25 }
 0x13f   : >> { %v3557_v45 = vmul.f32 %v3427_v33, %v422_v21  ;;  %v454_v47 = vsub.f32 1.0, %v3478_v61  ;;  %v517_v50 = vstv %s3471_s2  ;;  %v3562_v52 = vmul.f32 %v3427_v33, %v423_v25  ;;  %s3593_s2 = sld [smem:[#allocation3 + %s611_s15]] }
 0x140   : >> { %v518_v54 = vmul.f32 %v517_v50, %v513_v31  ;;  %v519_v55 = vmul.f32 %v517_v50, %v514_v32  ;;  %v526_v57 = vstv %s3480_s28  ;;  %v3569_v38 = vmul.f32 %v3413_v20, %v3536_v35  ;;  %s3595_s28 = sshll.u32 %s727_s4, 7  ;;  %s3629_s4 = sld [smem:[#allocation3 + %s489_s23]] }
 0x141   : >> { %v3572_v59 = vadd.f32 %v427_v12, %v3436_v41  ;;  %v520_v62 = vmul.f32 %v517_v50, %v515_v34  ;;  %v521_v58 = vmul.f32 %v517_v50, %v516_v37  ;;  %v3579_v2 = vmul.f32 %v3413_v20, %v3548_v39  ;;  %s2643_s30 = sadd.s32 128, %s3595_s28  ;;  %s497_s23 = sadd.s32 %s2623_s17, %s3380_s29 }
 0x142   : >> { %v3582_v4 = vadd.f32 %v428_v40, %v3441_v46  ;;  %v3586_v5 = vmul.f32 %v3421_v27, %v3536_v35  ;;  %v3589_v6 = vadd.f32 %v436_v42, %v3443_v48  ;;  %v522_v41 = vadd.f32 %v518_v54, %v512_v43  ;;  %s733_s15 = sadd.s32 %s2643_s30, %s3617_s12 }
 0x143   : >> { %v523_v7 = vadd.f32 %v519_v55, %v512_v43  ;;  %v527_v11 = vmul.f32 %v526_v57, %v3483_v8  ;;  %v528_v21 = vmul.f32 %v526_v57, %v3486_v9  ;;  %v524_v20 = vadd.f32 %v520_v62, %v512_v43  ;;  %s3639_s30 = sld [smem:[#allocation3 + %s733_s15]] }
 0x144   : >> { %v525_v46 = vadd.f32 %v521_v58, %v512_v43  ;;  %v529_v48 = vmul.f32 %v526_v57, %v3489_v10  ;;  %v530_v25 = vmul.f32 %v526_v57, %v3499_v22  ;;  %v3604_v26 = vmul.f32 %v3421_v27, %v3548_v39 }
 0x145   : >> { %v3607_v31 = vadd.f32 %v437_v44, %v3445_v49  ;;  %v531_v32 = vmul.f32 %v527_v11, %v3483_v8  ;;  %v532_v34 = vmul.f32 %v528_v21, %v3486_v9  ;;  %v633_v40 = vstv %s3520_s19  ;;  %s2645_s19 = sadd.s32 256, %s3595_s28 }
 0x146   : >> { %v533_v12 = vmul.f32 %v529_v48, %v3489_v10  ;;  %v534_v37 = vmul.f32 %v530_v25, %v3499_v22  ;;  %v635_v42 = vstv %s3532_s3  ;;  %v634_v8 = vsub.f32 %v3283_v16, %v633_v40  ;;  %s2621_s3 = sadd.s32 768, %s3368_s22  ;;  %s737_s24 = sadd.s32 %s2645_s19, %s3617_s12 }
 0x147   : >> { %v535_v27 = vadd.f32 %v531_v32, %v522_v41  ;;  %v536_v49 = vadd.f32 %v532_v34, %v523_v7  ;;  %v636_v9 = vsub.f32 %v3281_v15, %v635_v42  ;;  %v637_v44 = vsub.f32 %v3285_v17, %v635_v42  ;;  %s3643_s27 = sld [smem:[#allocation3 + %s737_s24]]  ;;  %s2647_s19 = sadd.s32 384, %s3595_s28 }
 0x148   : >> { %v537_v43 = vadd.f32 %v533_v12, %v524_v20  ;;  %v538_v10 = vadd.f32 %v534_v37, %v525_v46  ;;  %v638_v22 = vsub.f32 %v3287_v18, %v635_v42  ;;  %v639_v55 = vsub.f32 %v3289_v19, %v635_v42  ;;  %s3649_s22 = sld [smem:[#allocation3 + %s497_s23]]  ;;  %s501_s24 = sadd.s32 %s2625_s8, %s3380_s29 }
 0x149   : >> { %v539_v50 = vmul.f32 1.442695, %v535_v27  ;;  %v541_v54 = vmul.f32 1.442695, %v536_v49  ;;  %v640_v57 = vstv %s3574_s0  ;;  %v643_v7 = vmul.f32 %v636_v9, %v634_v8  ;;  %s493_s0 = sadd.s32 %s2621_s3, %s3380_s29  ;;  %s2637_s3 = sadd.s32 768, %s3438_s25 }
 0x14a   : >> { %v543_v62 = vmul.f32 1.442695, %v537_v43  ;;  %v545_v58 = vmul.f32 1.442695, %v538_v10  ;;  %v641_v41 = vmul.f32 %v640_v57, %v634_v8  ;;  %v644_v11 = vmul.f32 %v637_v44, %v634_v8  ;;  %s741_s15 = sadd.s32 %s2647_s19, %s3617_s12  ;;  %s623_s8 = sadd.s32 %s2637_s3, %s3463_s26 }
 0x14b   : >> { %2962 = vpow2.f32 %v539_v50  ;;  %v645_v21 = vmul.f32 %v638_v22, %v634_v8  ;;  %v646_v20 = vmul.f32 %v639_v55, %v634_v8  ;;  %v647_v48 = vstv %s3593_s2  ;;  %s3646_s2 = sld [smem:[#allocation3 + %s493_s0]]  ;;  %s2639_s0 = sadd.s32 896, %s3438_s25 }
 0x14c   : >> { %2964 = vpow2.f32 %v541_v54  ;;  %v642_v46 = vmul.f32 %v641_v41, %v634_v8  ;;  %v656_v25 = vstv %s3600_s11  ;;  %v648_v32 = vmul.f32 %v647_v48, %v643_v7  ;;  %s2635_s11 = sadd.s32 640, %s3438_s25  ;;  %s2641_s29 = sadd.s32 1024, %s3438_s25 }
 0x14d   : >> { %2966 = vpow2.f32 %v543_v62  ;;  %v649_v34 = vmul.f32 %v647_v48, %v644_v11  ;;  %v650_v12 = vmul.f32 %v647_v48, %v645_v21  ;;  %v651_v37 = vmul.f32 %v647_v48, %v646_v20  ;;  %s619_s17 = sadd.s32 %s2635_s11, %s3463_s26  ;;  %s3676_s23 = sld [smem:[#allocation3 + %s741_s15]] }
 0x14e   : >> { %2968 = vpow2.f32 %v545_v58  ;;  %v657_v40 = vmul.f32 %v656_v25, %v636_v9  ;;  %v658_v42 = vmul.f32 %v656_v25, %v637_v44  ;;  %v652_v27 = vadd.f32 %v648_v32, %v642_v46  ;;  %s2649_s19 = sadd.s32 512, %s3595_s28  ;;  %s3691_s25 = sld [smem:[#allocation3 + %s501_s24]] }
 0x14f   : >> { %v653_v49 = vadd.f32 %v649_v34, %v642_v46  ;;  %v654_v8 = vadd.f32 %v650_v12, %v642_v46  ;;  %v659_v43 = vmul.f32 %v656_v25, %v638_v22  ;;  %v655_v10 = vadd.f32 %v651_v37, %v642_v46  ;;  %s631_s11 = sadd.s32 %s2641_s29, %s3463_s26  ;;  %s3701_s3 = sld [smem:[#allocation3 + %s623_s8]] }
 0x150   : >> { %v660_v50 = vmul.f32 %v656_v25, %v639_v55  ;;  %v661_v54 = vmul.f32 %v657_v40, %v636_v9  ;;  %v662_v57 = vmul.f32 %v658_v42, %v637_v44  ;;  %v3654_v62 = vadd.f32 %v3569_v38, %v3448_v51  ;;  %s745_s15 = sadd.s32 %s2649_s19, %s3617_s12 }
 0x151   : >> { %v3658_v58 = vadd.f32 %v3586_v5, %v3456_v56  ;;  %v447_v41 = vmul.f32 %v3427_v33, %v3536_v35  ;;  %v663_v7 = vmul.f32 %v659_v43, %v638_v22  ;;  %v448_v9 = vmul.f32 %v3427_v33, %v3548_v39  ;;  %s3731_s24 = sld [smem:[#allocation3 + %s745_s15]] }
 0x152   : >> { %v664_v51 = vmul.f32 %v660_v50, %v639_v55  ;;  %v665_v38 = vadd.f32 %v661_v54, %v652_v27  ;;  %v666_v44 = vadd.f32 %v662_v57, %v653_v49  ;;  %v3670_v56 = vadd.f32 %v3579_v2, %v3466_v0 }
 0x153   : >> { %v455_v5 = vsub.f32 1.0, %v3517_v30  ;;  %v667_v35 = vadd.f32 %v663_v7, %v654_v8  ;;  %v763_v22 = vstv %s3633_s16  ;;  %v765_v55 = vstv %s3639_s30  ;;  %s627_s16 = sadd.s32 %s2639_s0, %s3463_s26  ;;  %s3696_s30 = sld [smem:[#allocation3 + %s619_s17]] }
 0x154   : >> { %v668_v33 = vadd.f32 %v664_v51, %v655_v10  ;;  %v669_v39 = vmul.f32 1.442695, %v665_v38  ;;  %v671_v11 = vmul.f32 1.442695, %v666_v44  ;;  %v3682_v0 = vadd.f32 %v3604_v26, %v3491_v13  ;;  %s3717_s26 = sld [smem:[#allocation3 + %s627_s16]]  ;;  %s3828_s16 = sadd.s32 6, %s3297_s18 }
 0x155   : >> { %v3686_v30 = vadd.f32 %v3557_v45, %v3502_v23  ;;  %v456_v2 = vsub.f32 1.0, %v3524_v3  ;;  %v457_v21 = vadd.f32 1e-10, %v453_v36  ;;  %v458_v20 = vadd.f32 1e-10, %v454_v47  ;;  %s987_s15 = sshra.s32 %s3828_s16, 7 }
 0x156   : >> { %v673_v13 = vmul.f32 1.442695, %v667_v35  ;;  %v764_v26 = vsub.f32 %v3283_v16, %v763_v22  ;;  %v770_v46 = vstv %s3643_s27  ;;  %2970 = vpow2.f32 %v669_v39  ;;  %s3723_s27 = sld [smem:[#allocation3 + %s631_s11]] }
 0x157   : >> { %v675_v23 = vmul.f32 1.442695, %v668_v33  ;;  %v3705_v1 = vsub.f32 %v3281_v15, %v765_v55  ;;  %v3708_v3 = vsub.f32 %v3285_v17, %v765_v55  ;;  %v3712_v36 = vadd.f32 %v3562_v52, %v3510_v63 }
 0x158   : >> { %v2963_v61 = vpop.eup %2962  ;;  %v3715_v45 = vadd.f32 %v447_v41, %v3512_v28  ;;  %v459_v47 = vadd.f32 1e-10, %v455_v5  ;;  %2972 = vpow2.f32 %v671_v11  ;;  %v3720_v25 = vadd.f32 %v448_v9, %v3514_v29 }
 0x159   : >> { %v2965_v48 = vpop.eup %2964  ;;  %v460_v32 = vadd.f32 1e-10, %v456_v2  ;;  %v547_v34 = vstv %s3629_s4  ;;  %v3726_v12 = vsub.f32 %v3287_v18, %v765_v55  ;;  %v3729_v28 = vmul.f32 %v457_v21, %v3451_v53  ;;  %s3740_s4 = sadd.s32 5, %s3297_s18 }
 0x15a   : >> { %v2967_v63 = vpop.eup %2966  ;;  %2974 = vpow2.f32 %v673_v13  ;;  %v3734_v29 = vsub.f32 %v3289_v19, %v765_v55  ;;  %v771_v52 = vmul.f32 %v770_v46, %v764_v26  ;;  %v462_v40 = vmul.f32 %v458_v20, %v3459_v60  ;;  %s857_s17 = sshra.s32 %s3740_s4, 7  ;;  %s3784_s0 = sand.u32 127, %s3740_s4 }
 0x15b   : >> { %v2969_v37 = vpop.eup %2968  ;;  %2976 = vpow2.f32 %v675_v23  ;;  %v773_v42 = vmul.f32 %v3705_v1, %v764_v26  ;;  %v774_v27 = vmul.f32 %v3708_v3, %v764_v26  ;;  %v3743_v53 = vmul.f32 %v459_v47, %v3494_v14  ;;  %s3808_s29 = sld [smem:[#allocation3 + %s3740_s4]]  ;;  %s3902_s4 = sshll.u32 %s987_s15, 7 }
 0x15c   : >> { %v548_v49 = vmul.f32 %v2963_v61, %v547_v34  ;;  %v549_v8 = vmul.f32 %v2965_v48, %v547_v34  ;;  %v777_v43 = vstv %s3676_s23  ;;  %v464_v10 = vmul.f32 %v460_v32, %v3505_v24  ;;  %s3950_s15 = sld [smem:[#allocation3 + %s3828_s16]] }
 0x15d   : >> { %v556_v50 = vstv %s3646_s2  ;;  %v565_v60 = vstv %s3649_s22  ;;  %v775_v54 = vmul.f32 %v3726_v12, %v764_v26  ;;  %v574_v41 = vstv %s3691_s25  ;;  %s3768_s2 = sshll.u32 %s857_s17, 7  ;;  %s2651_s17 = sadd.s32 640, %s3595_s28 }
 0x15e   : >> { %v552_v57 = vmul.f32 %v548_v49, %v3729_v28  ;;  %v3752_v7 = vmul.f32 %v771_v52, %v764_v26  ;;  %v776_v14 = vmul.f32 %v3734_v29, %v764_v26  ;;  %v550_v9 = vmul.f32 %v2967_v63, %v547_v34  ;;  %s2659_s22 = sadd.s32 128, %s3768_s2  ;;  %s2661_s23 = sadd.s32 256, %s3768_s2 }
 0x15f   : >> { %v551_v51 = vmul.f32 %v2969_v37, %v547_v34  ;;  %v778_v38 = vmul.f32 %v777_v43, %v773_v42  ;;  %v779_v24 = vmul.f32 %v777_v43, %v774_v27  ;;  %v583_v44 = vsub.f32 1.0, %v548_v49  ;;  %s863_s8 = sadd.s32 %s2659_s22, %s3784_s0  ;;  %s2663_s25 = sadd.s32 384, %s3768_s2 }
 0x160   : >> { %v584_v5 = vsub.f32 1.0, %v549_v8  ;;  %v677_v35 = vstv %s3696_s30  ;;  %v3758_v22 = vstv %s3701_s3  ;;  %v553_v33 = vmul.f32 %v549_v8, %v462_v40  ;;  %s3816_s19 = sld [smem:[#allocation3 + %s863_s8]]  ;;  %s867_s30 = sadd.s32 %s2661_s23, %s3784_s0 }
 0x161   : >> { %v3761_v39 = vstv %s3717_s26  ;;  %v3764_v11 = vstv %s3723_s27  ;;  %v3766_v55 = vmul.f32 %v777_v43, %v775_v54  ;;  %v554_v2 = vmul.f32 %v550_v9, %v3743_v53  ;;  %s2665_s11 = sadd.s32 512, %s3768_s2  ;;  %s871_s3 = sadd.s32 %s2663_s25, %s3784_s0 }
 0x162   : >> { %5793 = vst [vmem:[#allocation17_spill] sm:$0xff] %v3764_v11  ;;  %v557_v21 = vmul.f32 %v556_v50, %v552_v57  ;;  %v3771_v20 = vmul.f32 %v777_v43, %v776_v14  ;;  %v3774_v13 = vstv %s3731_s24  ;;  %v585_v26 = vsub.f32 1.0, %v550_v9  ;;  %s3874_s26 = sld [smem:[#allocation3 + %s867_s30]]  ;;  %s875_s27 = sadd.s32 %s2665_s11, %s3784_s0 }
 0x163   : >> { %v586_v46 = vsub.f32 1.0, %v551_v51  ;;  %v3777_v23 = vadd.f32 %v778_v38, %v3752_v7  ;;  %v3780_v61 = vadd.f32 %v779_v24, %v3752_v7  ;;  %v2971_v47 = vpop.eup %2970  ;;  %v555_v48 = vmul.f32 %v551_v51, %v464_v10  ;;  %s3900_s24 = sld [smem:[#allocation3 + %s871_s3]]  ;;  %s2675_s8 = sadd.s32 128, %s3902_s4 }
 0x164   : >> { %v566_v32 = vmul.f32 %v565_v60, %v552_v57  ;;  %v587_v34 = vadd.f32 1e-10, %v583_v44  ;;  %v588_v63 = vadd.f32 1e-10, %v584_v5  ;;  %v558_v37 = vmul.f32 %v556_v50, %v553_v33  ;;  %s3917_s22 = sld [smem:[#allocation3 + %s875_s27]]  ;;  %s3932_s23 = sand.u32 127, %s3828_s16 }
 0x165   : >> { %v2973_v52 = vpop.eup %2972  ;;  %v567_v42 = vmul.f32 %v565_v60, %v553_v33  ;;  %v589_v27 = vadd.f32 1e-10, %v585_v26  ;;  %v590_v49 = vadd.f32 1e-10, %v586_v46  ;;  %v559_v8 = vmul.f32 %v556_v50, %v554_v2  ;;  %s749_s25 = sadd.s32 %s2651_s17, %s3617_s12  ;;  %s993_s30 = sadd.s32 %s2675_s8, %s3932_s23 }
 0x166   : >> { %v3787_v43 = vadd.f32 %v557_v21, %v3572_v59  ;;  %v575_v54 = vmul.f32 %v574_v41, %v552_v57  ;;  %v576_v14 = vmul.f32 %v574_v41, %v553_v33  ;;  %v568_v51 = vmul.f32 %v565_v60, %v554_v2  ;;  %s3946_s11 = sld [smem:[#allocation3 + %s749_s25]]  ;;  %s2655_s3 = sadd.s32 896, %s3595_s28 }
 0x167   : >> { %v2975_v9 = vpop.eup %2974  ;;  %v3790_v38 = vmul.f32 %v587_v34, %v3729_v28  ;;  %v3792_v24 = vmul.f32 %v588_v63, %v462_v40  ;;  %v678_v44 = vmul.f32 %v2971_v47, %v677_v35  ;;  %v560_v26 = vmul.f32 %v556_v50, %v555_v48  ;;  %s3956_s17 = sld [smem:[#allocation3 + %s993_s30]]  ;;  %s757_s8 = sadd.s32 %s2655_s3, %s3617_s12 }
 0x168   : >> { %v2977_v5 = vpop.eup %2976  ;;  %v569_v46 = vmul.f32 %v565_v60, %v555_v48  ;;  %v3796_v11 = vadd.f32 %v566_v32, %v3589_v6  ;;  %v679_v59 = vmul.f32 %v2973_v52, %v677_v35  ;;  %v562_v57 = vadd.f32 %v558_v37, %v3582_v4  ;;  %s2657_s25 = sadd.s32 1024, %s3595_s28 }
 0x169   : >> { %v3800_v33 = vadd.f32 %v567_v42, %v3607_v31  ;;  %v3803_v28 = vmul.f32 %v589_v27, %v3743_v53  ;;  %v3805_v40 = vmul.f32 %v590_v49, %v464_v10  ;;  %v3812_v6 = vadd.f32 %v559_v8, %v3654_v62  ;;  %s761_s30 = sadd.s32 %s2657_s25, %s3617_s12 }
 0x16a   : >> { %v577_v50 = vmul.f32 %v574_v41, %v554_v2  ;;  %v578_v60 = vmul.f32 %v574_v41, %v555_v48  ;;  %v3814_v4 = vmul.f32 %v2975_v9, %v677_v35  ;;  %v3818_v31 = vmul.f32 %v2977_v5, %v677_v35 }
 0x16b   : >> { %v3821_v53 = vmul.f32 %v678_v44, %v3790_v38  ;;  %v3824_v10 = vmul.f32 %v679_v59, %v3792_v24  ;;  %v713_v21 = vsub.f32 1.0, %v678_v44  ;;  %v3831_v62 = vadd.f32 %v560_v26, %v3670_v56 }
 0x16c   : >> { %v3834_v41 = vadd.f32 %v568_v51, %v3658_v58  ;;  %v3837_v35 = vadd.f32 %v569_v46, %v3682_v0  ;;  %v714_v2 = vsub.f32 1.0, %v679_v59  ;;  %v3842_v47 = vadd.f32 %v575_v54, %v3686_v30 }
 0x16d   : >> { %v3845_v48 = vadd.f32 %v576_v14, %v3712_v36  ;;  %v3849_v56 = vmul.f32 %v3814_v4, %v3803_v28  ;;  %v3853_v58 = vmul.f32 %v3818_v31, %v3805_v40  ;;  %v3856_v0 = vadd.f32 %v577_v50, %v3715_v45 }
 0x16e   : >> { %v3859_v32 = vadd.f32 %v578_v60, %v3720_v25  ;;  %v784_v30 = vadd.f32 %v3766_v55, %v3752_v7  ;;  %v785_v36 = vadd.f32 %v3771_v20, %v3752_v7  ;;  %v687_v34 = vmul.f32 %v3758_v22, %v3821_v53 }
 0x16f   : >> { %v688_v63 = vmul.f32 %v3758_v22, %v3824_v10  ;;  %v715_v45 = vsub.f32 1.0, %v3814_v4  ;;  %v3872_v52 = vadd.f32 1e-10, %v713_v21  ;;  %v3879_v25 = vmul.f32 %v3761_v39, %v3821_v53 }
 0x170   : >> { %v3883_v7 = vmul.f32 %v3761_v39, %v3824_v10  ;;  %v716_v55 = vsub.f32 1.0, %v3818_v31  ;;  %v3886_v20 = vadd.f32 1e-10, %v714_v2  ;;  %v3890_v37 = vmul.f32 %v3758_v22, %v3849_v56 }
 0x171   : >> { %v3894_v42 = vmul.f32 %v3758_v22, %v3853_v58  ;;  %v787_v27 = vmul.f32 %v3774_v13, %v3705_v1  ;;  %v788_v49 = vmul.f32 %v3774_v13, %v3708_v3  ;;  %v3906_v8 = vmul.f32 %v3761_v39, %v3849_v56 }
 0x172   : >> { %v3910_v22 = vmul.f32 %v3761_v39, %v3853_v58  ;;  %v789_v54 = vmul.f32 %v3774_v13, %v3726_v12  ;;  %v790_v14 = vmul.f32 %v3774_v13, %v3734_v29  ;;  %v3920_v9 = vadd.f32 %v687_v34, %v3787_v43 }
 0x173   : >> { %v3922_v51 = vadd.f32 %v688_v63, %v562_v57  ;;  %v791_v44 = vmul.f32 %v787_v27, %v3705_v1  ;;  %v792_v5 = vmul.f32 %v788_v49, %v3708_v3  ;;  %v893_v46 = vstv %s3808_s29  ;;  %s2677_s29 = sadd.s32 256, %s3902_s4 }
 0x174   : >> { %v793_v39 = vmul.f32 %v789_v54, %v3726_v12  ;;  %v794_v26 = vmul.f32 %v790_v14, %v3734_v29  ;;  %v895_v59 = vstv %s3816_s19  ;;  %v894_v3 = vsub.f32 %v3283_v16, %v893_v46  ;;  %s2653_s19 = sadd.s32 768, %s3595_s28  ;;  %s997_s27 = sadd.s32 %s2677_s29, %s3932_s23 }
 0x175   : >> { %v795_v13 = vadd.f32 %v791_v44, %v3777_v23  ;;  %v796_v1 = vadd.f32 %v792_v5, %v3780_v61  ;;  %v896_v12 = vsub.f32 %v3281_v15, %v895_v59  ;;  %v897_v29 = vsub.f32 %v3285_v17, %v895_v59  ;;  %s3960_s16 = sld [smem:[#allocation3 + %s997_s27]]  ;;  %s2679_s29 = sadd.s32 384, %s3902_s4 }
 0x176   : >> { %v797_v43 = vadd.f32 %v793_v39, %v784_v30  ;;  %v798_v57 = vadd.f32 %v794_v26, %v785_v36  ;;  %v898_v50 = vsub.f32 %v3287_v18, %v895_v59  ;;  %v899_v23 = vsub.f32 %v3289_v19, %v895_v59  ;;  %s3966_s28 = sld [smem:[#allocation3 + %s757_s8]]  ;;  %s1001_s3 = sadd.s32 %s2679_s29, %s3932_s23 }
 0x177   : >> { %v799_v60 = vmul.f32 1.442695, %v795_v13  ;;  %v801_v21 = vmul.f32 1.442695, %v796_v1  ;;  %v900_v61 = vstv %s3874_s26  ;;  %v903_v34 = vmul.f32 %v896_v12, %v894_v3  ;;  %s753_s26 = sadd.s32 %s2653_s19, %s3617_s12  ;;  %s2669_s19 = sadd.s32 768, %s3768_s2 }
 0x178   : >> { %v803_v2 = vmul.f32 1.442695, %v797_v43  ;;  %v805_v30 = vmul.f32 1.442695, %v798_v57  ;;  %v901_v36 = vmul.f32 %v900_v61, %v894_v3  ;;  %v904_v63 = vmul.f32 %v897_v29, %v894_v3  ;;  %s883_s12 = sadd.s32 %s2669_s19, %s3784_s0  ;;  %s2673_s8 = sadd.s32 1024, %s3768_s2 }
 0x179   : >> { %2978 = vpow2.f32 %v799_v60  ;;  %v905_v27 = vmul.f32 %v898_v50, %v894_v3  ;;  %v906_v49 = vmul.f32 %v899_v23, %v894_v3  ;;  %v907_v14 = vstv %s3900_s24  ;;  %s3963_s24 = sld [smem:[#allocation3 + %s753_s26]]  ;;  %s2671_s26 = sadd.s32 896, %s3768_s2 }
 0x17a   : >> { %2980 = vpow2.f32 %v801_v21  ;;  %v902_v54 = vmul.f32 %v901_v36, %v894_v3  ;;  %v916_v44 = vstv %s3917_s22  ;;  %v908_v5 = vmul.f32 %v907_v14, %v903_v34  ;;  %s2667_s22 = sadd.s32 640, %s3768_s2  ;;  %s4000_s25 = sld [smem:[#allocation3 + %s1001_s3]] }
 0x17b   : >> { %2982 = vpow2.f32 %v803_v2  ;;  %v909_v39 = vmul.f32 %v907_v14, %v904_v63  ;;  %v910_v26 = vmul.f32 %v907_v14, %v905_v27  ;;  %v911_v46 = vmul.f32 %v907_v14, %v906_v49  ;;  %s879_s27 = sadd.s32 %s2667_s22, %s3784_s0  ;;  %s2681_s29 = sadd.s32 512, %s3902_s4 }
 0x17c   : >> { %2984 = vpow2.f32 %v805_v30  ;;  %v917_v59 = vmul.f32 %v916_v44, %v896_v12  ;;  %v918_v13 = vmul.f32 %v916_v44, %v897_v29  ;;  %v912_v1 = vadd.f32 %v908_v5, %v902_v54  ;;  %s4012_s2 = sld [smem:[#allocation3 + %s761_s30]]  ;;  %s891_s22 = sadd.s32 %s2673_s8, %s3784_s0 }
 0x17d   : >> { %v913_v3 = vadd.f32 %v909_v39, %v902_v54  ;;  %v914_v43 = vadd.f32 %v910_v26, %v902_v54  ;;  %v919_v57 = vmul.f32 %v916_v44, %v898_v50  ;;  %v915_v60 = vadd.f32 %v911_v46, %v902_v54  ;;  %s4022_s19 = sld [smem:[#allocation3 + %s883_s12]]  ;;  %s1005_s3 = sadd.s32 %s2681_s29, %s3932_s23 }
 0x17e   : >> { %v920_v21 = vmul.f32 %v916_v44, %v899_v23  ;;  %v921_v61 = vmul.f32 %v917_v59, %v896_v12  ;;  %v922_v2 = vmul.f32 %v918_v13, %v897_v29  ;;  %v3971_v30 = vadd.f32 %v3890_v37, %v3812_v6  ;;  %s4058_s30 = sld [smem:[#allocation3 + %s1005_s3]] }
 0x17f   : >> { %v3975_v36 = vadd.f32 %v3879_v25, %v3796_v11  ;;  %v3979_v34 = vadd.f32 %v3883_v7, %v3800_v33  ;;  %v923_v63 = vmul.f32 %v919_v57, %v898_v50  ;;  %v3985_v12 = vadd.f32 %v3894_v42, %v3831_v62 }
 0x180   : >> { %v924_v6 = vmul.f32 %v920_v21, %v899_v23  ;;  %v925_v37 = vadd.f32 %v921_v61, %v912_v1  ;;  %v926_v11 = vadd.f32 %v922_v2, %v913_v3  ;;  %v3991_v25 = vadd.f32 %v3906_v8, %v3834_v41  ;;  %v5794_v41 = vld [vmem:[#allocation17_spill] sm:$0xff] }
 0x181   : >> { %v3995_v33 = vadd.f32 %v3910_v22, %v3837_v35  ;;  %v927_v62 = vadd.f32 %v923_v63, %v914_v43  ;;  %v1023_v7 = vstv %s3950_s15  ;;  %v1025_v23 = vstv %s3956_s17  ;;  %s887_s15 = sadd.s32 %s2671_s26, %s3784_s0  ;;  %s4017_s17 = sld [smem:[#allocation3 + %s879_s27]] }
 0x182   : >> { %v928_v42 = vadd.f32 %v924_v6, %v915_v60  ;;  %v929_v29 = vmul.f32 1.442695, %v925_v37  ;;  %v931_v50 = vmul.f32 1.442695, %v926_v11  ;;  %v705_v8 = vmul.f32 %v5794_v41, %v3821_v53  ;;  %s4041_s0 = sld [smem:[#allocation3 + %s887_s15]]  ;;  %s4159_s15 = sadd.s32 8, %s3297_s18 }
 0x183   : >> { %v706_v35 = vmul.f32 %v5794_v41, %v3824_v10  ;;  %v707_v22 = vmul.f32 %v5794_v41, %v3849_v56  ;;  %v708_v27 = vmul.f32 %v5794_v41, %v3853_v58  ;;  %v719_v49 = vadd.f32 1e-10, %v715_v45  ;;  %s1247_s3 = sshra.s32 %s4159_s15, 7 }
 0x184   : >> { %v933_v54 = vmul.f32 1.442695, %v927_v62  ;;  %v1024_v53 = vsub.f32 %v3283_v16, %v1023_v7  ;;  %v1030_v14 = vstv %s3960_s16  ;;  %2986 = vpow2.f32 %v929_v29  ;;  %s4050_s16 = sld [smem:[#allocation3 + %s891_s22]] }
 0x185   : >> { %v935_v10 = vmul.f32 1.442695, %v928_v42  ;;  %v4026_v56 = vsub.f32 %v3281_v15, %v1025_v23  ;;  %v4029_v58 = vsub.f32 %v3285_v17, %v1025_v23  ;;  %v720_v45 = vadd.f32 1e-10, %v716_v55 }
 0x186   : >> { %v2979_v4 = vpop.eup %2978  ;;  %v4035_v44 = vmul.f32 %v3872_v52, %v3790_v38  ;;  %v4039_v5 = vmul.f32 %v3886_v20, %v3792_v24  ;;  %2988 = vpow2.f32 %v931_v50  ;;  %v4044_v26 = vadd.f32 %v705_v8, %v3842_v47 }
 0x187   : >> { %v2981_v39 = vpop.eup %2980  ;;  %v4047_v46 = vadd.f32 %v706_v35, %v3845_v48  ;;  %v807_v31 = vstv %s3946_s11  ;;  %v4053_v38 = vsub.f32 %v3287_v18, %v1025_v23  ;;  %v4056_v52 = vadd.f32 %v707_v22, %v3856_v0  ;;  %s4069_s11 = sadd.s32 7, %s3297_s18 }
 0x188   : >> { %v2983_v24 = vpop.eup %2982  ;;  %2990 = vpow2.f32 %v933_v54  ;;  %v4061_v47 = vsub.f32 %v3289_v19, %v1025_v23  ;;  %v1031_v48 = vmul.f32 %v1030_v14, %v1024_v53  ;;  %v4064_v20 = vadd.f32 %v708_v27, %v3859_v32  ;;  %s1117_s27 = sshra.s32 %s4069_s11, 7  ;;  %s4114_s26 = sand.u32 127, %s4069_s11 }
 0x189   : >> { %v2985_v55 = vpop.eup %2984  ;;  %2992 = vpow2.f32 %v935_v10  ;;  %v1033_v59 = vmul.f32 %v4026_v56, %v1024_v53  ;;  %v1034_v0 = vmul.f32 %v4029_v58, %v1024_v53  ;;  %v4072_v13 = vmul.f32 %v719_v49, %v3803_v28  ;;  %s4139_s8 = sld [smem:[#allocation3 + %s4069_s11]]  ;;  %s4233_s11 = sshll.u32 %s1247_s3, 7 }
 0x18a   : >> { %v808_v1 = vmul.f32 %v2979_v4, %v807_v31  ;;  %v809_v3 = vmul.f32 %v2981_v39, %v807_v31  ;;  %v1037_v43 = vstv %s4000_s25  ;;  %v724_v57 = vmul.f32 %v720_v45, %v3805_v40  ;;  %s4281_s3 = sld [smem:[#allocation3 + %s4159_s15]] }
 0x18b   : >> { %v816_v32 = vstv %s3963_s24  ;;  %v825_v60 = vstv %s3966_s28  ;;  %v1035_v21 = vmul.f32 %v4053_v38, %v1024_v53  ;;  %v834_v2 = vstv %s4012_s2  ;;  %s4098_s24 = sshll.u32 %s1117_s27, 7  ;;  %s2683_s27 = sadd.s32 640, %s3902_s4 }
 0x18c   : >> { %v812_v61 = vmul.f32 %v808_v1, %v4035_v44  ;;  %v4081_v63 = vmul.f32 %v1031_v48, %v1024_v53  ;;  %v1036_v28 = vmul.f32 %v4061_v47, %v1024_v53  ;;  %v810_v6 = vmul.f32 %v2983_v24, %v807_v31  ;;  %s2691_s28 = sadd.s32 128, %s4098_s24  ;;  %s2693_s25 = sadd.s32 256, %s4098_s24 }
 0x18d   : >> { %v811_v37 = vmul.f32 %v2985_v55, %v807_v31  ;;  %v1038_v11 = vmul.f32 %v1037_v43, %v1033_v59  ;;  %v1039_v40 = vmul.f32 %v1037_v43, %v1034_v0  ;;  %v843_v62 = vsub.f32 1.0, %v808_v1  ;;  %s1123_s12 = sadd.s32 %s2691_s28, %s4114_s26  ;;  %s2695_s2 = sadd.s32 384, %s4098_s24 }
 0x18e   : >> { %v844_v7 = vsub.f32 1.0, %v809_v3  ;;  %v937_v42 = vstv %s4017_s17  ;;  %v4087_v29 = vstv %s4022_s19  ;;  %v813_v50 = vmul.f32 %v809_v3, %v4039_v5  ;;  %s4147_s29 = sld [smem:[#allocation3 + %s1123_s12]]  ;;  %s1127_s17 = sadd.s32 %s2693_s25, %s4114_s26 }
 0x18f   : >> { %v4091_v23 = vstv %s4041_s0  ;;  %v4094_v41 = vstv %s4050_s16  ;;  %v4096_v8 = vmul.f32 %v1037_v43, %v1035_v21  ;;  %v814_v35 = vmul.f32 %v810_v6, %v4072_v13  ;;  %s2697_s22 = sadd.s32 512, %s4098_s24  ;;  %s1131_s19 = sadd.s32 %s2695_s2, %s4114_s26 }
 0x190   : >> { %v817_v22 = vmul.f32 %v816_v32, %v812_v61  ;;  %v4101_v27 = vmul.f32 %v1037_v43, %v1036_v28  ;;  %v4104_v49 = vstv %s4058_s30  ;;  %v845_v54 = vsub.f32 1.0, %v810_v6  ;;  %s4205_s0 = sld [smem:[#allocation3 + %s1127_s17]]  ;;  %s1135_s16 = sadd.s32 %s2697_s22, %s4114_s26 }
 0x191   : >> { %v846_v53 = vsub.f32 1.0, %v811_v37  ;;  %v4107_v14 = vadd.f32 %v1038_v11, %v4081_v63  ;;  %v4110_v10 = vadd.f32 %v1039_v40, %v4081_v63  ;;  %v2987_v4 = vpop.eup %2986  ;;  %v815_v45 = vmul.f32 %v811_v37, %v724_v57  ;;  %s4231_s30 = sld [smem:[#allocation3 + %s1131_s19]]  ;;  %s2707_s12 = sadd.s32 128, %s4233_s11 }
 0x192   : >> { %v826_v39 = vmul.f32 %v825_v60, %v812_v61  ;;  %v847_v31 = vadd.f32 1e-10, %v843_v62  ;;  %v848_v24 = vadd.f32 1e-10, %v844_v7  ;;  %v818_v55 = vmul.f32 %v816_v32, %v813_v50  ;;  %s4248_s28 = sld [smem:[#allocation3 + %s1135_s16]]  ;;  %s4263_s25 = sand.u32 127, %s4159_s15 }
 0x193   : >> { %v2989_v48 = vpop.eup %2988  ;;  %v827_v59 = vmul.f32 %v825_v60, %v813_v50  ;;  %v849_v0 = vadd.f32 1e-10, %v845_v54  ;;  %v850_v1 = vadd.f32 1e-10, %v846_v53  ;;  %v819_v3 = vmul.f32 %v816_v32, %v814_v35  ;;  %s1009_s2 = sadd.s32 %s2683_s27, %s3932_s23  ;;  %s1253_s17 = sadd.s32 %s2707_s12, %s4263_s25 }
 0x194   : >> { %v4117_v43 = vadd.f32 %v817_v22, %v3920_v9  ;;  %v835_v21 = vmul.f32 %v834_v2, %v812_v61  ;;  %v836_v28 = vmul.f32 %v834_v2, %v813_v50  ;;  %v828_v37 = vmul.f32 %v825_v60, %v814_v35  ;;  %s4277_s22 = sld [smem:[#allocation3 + %s1009_s2]]  ;;  %s2687_s19 = sadd.s32 896, %s3902_s4 }
 0x195   : >> { %v2991_v6 = vpop.eup %2990  ;;  %v4120_v11 = vmul.f32 %v847_v31, %v4035_v44  ;;  %v4123_v40 = vmul.f32 %v848_v24, %v4039_v5  ;;  %v938_v62 = vmul.f32 %v2987_v4, %v937_v42  ;;  %v820_v54 = vmul.f32 %v816_v32, %v815_v45  ;;  %s4287_s27 = sld [smem:[#allocation3 + %s1253_s17]]  ;;  %s1017_s12 = sadd.s32 %s2687_s19, %s3932_s23 }
 0x196   : >> { %v2993_v7 = vpop.eup %2992  ;;  %v829_v53 = vmul.f32 %v825_v60, %v815_v45  ;;  %v4127_v9 = vadd.f32 %v826_v39, %v3975_v36  ;;  %v939_v61 = vmul.f32 %v2989_v48, %v937_v42  ;;  %v822_v50 = vadd.f32 %v818_v55, %v3922_v51  ;;  %s2689_s2 = sadd.s32 1024, %s3902_s4 }
 0x197   : >> { %v4131_v22 = vadd.f32 %v827_v59, %v3979_v34  ;;  %v4134_v44 = vmul.f32 %v849_v0, %v4072_v13  ;;  %v4136_v5 = vmul.f32 %v850_v1, %v724_v57  ;;  %v4143_v36 = vadd.f32 %v819_v3, %v3971_v30  ;;  %s1021_s17 = sadd.s32 %s2689_s2, %s3932_s23 }
 0x198   : >> { %v837_v32 = vmul.f32 %v834_v2, %v814_v35  ;;  %v838_v60 = vmul.f32 %v834_v2, %v815_v45  ;;  %v4145_v51 = vmul.f32 %v2991_v6, %v937_v42  ;;  %v4149_v34 = vmul.f32 %v2993_v7, %v937_v42 }
 0x199   : >> { %v4152_v13 = vmul.f32 %v938_v62, %v4120_v11  ;;  %v4155_v57 = vmul.f32 %v939_v61, %v4123_v40  ;;  %v973_v4 = vsub.f32 1.0, %v938_v62  ;;  %v4162_v30 = vadd.f32 %v820_v54, %v3985_v12 }
 0x19a   : >> { %v4165_v2 = vadd.f32 %v828_v37, %v3991_v25  ;;  %v4168_v42 = vadd.f32 %v829_v53, %v3995_v33  ;;  %v974_v35 = vsub.f32 1.0, %v939_v61  ;;  %v4173_v45 = vadd.f32 %v835_v21, %v4044_v26 }
 0x19b   : >> { %v4176_v39 = vadd.f32 %v836_v28, %v4047_v46  ;;  %v4180_v12 = vmul.f32 %v4145_v51, %v4134_v44  ;;  %v4184_v25 = vmul.f32 %v4149_v34, %v4136_v5  ;;  %v4187_v33 = vadd.f32 %v837_v32, %v4056_v52 }
 0x19c   : >> { %v4190_v31 = vadd.f32 %v838_v60, %v4064_v20  ;;  %v1044_v26 = vadd.f32 %v4096_v8, %v4081_v63  ;;  %v1045_v46 = vadd.f32 %v4101_v27, %v4081_v63  ;;  %v947_v24 = vmul.f32 %v4087_v29, %v4152_v13 }
 0x19d   : >> { %v948_v48 = vmul.f32 %v4087_v29, %v4155_v57  ;;  %v975_v52 = vsub.f32 1.0, %v4145_v51  ;;  %v4203_v55 = vadd.f32 1e-10, %v973_v4  ;;  %v4210_v20 = vmul.f32 %v4091_v23, %v4152_v13 }
 0x19e   : >> { %v4214_v63 = vmul.f32 %v4091_v23, %v4155_v57  ;;  %v976_v8 = vsub.f32 1.0, %v4149_v34  ;;  %v4217_v27 = vadd.f32 1e-10, %v974_v35  ;;  %v4221_v59 = vmul.f32 %v4087_v29, %v4180_v12 }
 0x19f   : >> { %v4225_v0 = vmul.f32 %v4087_v29, %v4184_v25  ;;  %v1047_v1 = vmul.f32 %v4104_v49, %v4026_v56  ;;  %v1048_v3 = vmul.f32 %v4104_v49, %v4029_v58  ;;  %v4237_v21 = vmul.f32 %v4091_v23, %v4180_v12 }
 0x1a0   : >> { %v4241_v29 = vmul.f32 %v4091_v23, %v4184_v25  ;;  %v1049_v28 = vmul.f32 %v4104_v49, %v4053_v38  ;;  %v1050_v6 = vmul.f32 %v4104_v49, %v4061_v47  ;;  %v4251_v37 = vadd.f32 %v947_v24, %v4117_v43 }
 0x1a1   : >> { %v4253_v62 = vadd.f32 %v948_v48, %v822_v50  ;;  %v1051_v7 = vmul.f32 %v1047_v1, %v4026_v56  ;;  %v1052_v54 = vmul.f32 %v1048_v3, %v4029_v58  ;;  %v1153_v61 = vstv %s4139_s8  ;;  %s2709_s8 = sadd.s32 256, %s4233_s11 }
 0x1a2   : >> { %v1053_v23 = vmul.f32 %v1049_v28, %v4053_v38  ;;  %v1054_v53 = vmul.f32 %v1050_v6, %v4061_v47  ;;  %v1155_v32 = vstv %s4147_s29  ;;  %v1154_v58 = vsub.f32 %v3283_v16, %v1153_v61  ;;  %s2685_s29 = sadd.s32 768, %s3902_s4  ;;  %s1257_s16 = sadd.s32 %s2709_s8, %s4263_s25 }
 0x1a3   : >> { %v1055_v49 = vadd.f32 %v1051_v7, %v4107_v14  ;;  %v1056_v56 = vadd.f32 %v1052_v54, %v4110_v10  ;;  %v1156_v38 = vsub.f32 %v3281_v15, %v1155_v32  ;;  %v1157_v47 = vsub.f32 %v3285_v17, %v1155_v32  ;;  %s4291_s15 = sld [smem:[#allocation3 + %s1257_s16]]  ;;  %s2711_s8 = sadd.s32 384, %s4233_s11 }
 0x1a4   : >> { %v1057_v43 = vadd.f32 %v1053_v23, %v1044_v26  ;;  %v1058_v50 = vadd.f32 %v1054_v53, %v1045_v46  ;;  %v1158_v60 = vsub.f32 %v3287_v18, %v1155_v32  ;;  %v1159_v14 = vsub.f32 %v3289_v19, %v1155_v32  ;;  %s4297_s4 = sld [smem:[#allocation3 + %s1017_s12]]  ;;  %s1261_s19 = sadd.s32 %s2711_s8, %s4263_s25 }
 0x1a5   : >> { %v1059_v4 = vmul.f32 1.442695, %v1055_v49  ;;  %v1061_v35 = vmul.f32 1.442695, %v1056_v56  ;;  %v1160_v10 = vstv %s4205_s0  ;;  %v1163_v48 = vmul.f32 %v1156_v38, %v1154_v58  ;;  %s1013_s0 = sadd.s32 %s2685_s29, %s3932_s23  ;;  %s2701_s29 = sadd.s32 768, %s4098_s24 }
 0x1a6   : >> { %v1063_v26 = vmul.f32 1.442695, %v1057_v43  ;;  %v1065_v46 = vmul.f32 1.442695, %v1058_v50  ;;  %v1161_v24 = vmul.f32 %v1160_v10, %v1154_v58  ;;  %v1164_v1 = vmul.f32 %v1157_v47, %v1154_v58  ;;  %s1143_s23 = sadd.s32 %s2701_s29, %s4114_s26  ;;  %s2705_s12 = sadd.s32 1024, %s4098_s24 }
 0x1a7   : >> { %2994 = vpow2.f32 %v1059_v4  ;;  %v1165_v3 = vmul.f32 %v1158_v60, %v1154_v58  ;;  %v1166_v28 = vmul.f32 %v1159_v14, %v1154_v58  ;;  %v1167_v7 = vstv %s4231_s30  ;;  %s4294_s30 = sld [smem:[#allocation3 + %s1013_s0]]  ;;  %s2703_s0 = sadd.s32 896, %s4098_s24 }
 0x1a8   : >> { %2996 = vpow2.f32 %v1061_v35  ;;  %v1162_v6 = vmul.f32 %v1161_v24, %v1154_v58  ;;  %v1176_v54 = vstv %s4248_s28  ;;  %v1168_v23 = vmul.f32 %v1167_v7, %v1163_v48  ;;  %s2699_s28 = sadd.s32 640, %s4098_s24  ;;  %s4331_s2 = sld [smem:[#allocation3 + %s1261_s19]] }
 0x1a9   : >> { %2998 = vpow2.f32 %v1063_v26  ;;  %v1169_v53 = vmul.f32 %v1167_v7, %v1164_v1  ;;  %v1170_v61 = vmul.f32 %v1167_v7, %v1165_v3  ;;  %v1171_v32 = vmul.f32 %v1167_v7, %v1166_v28  ;;  %s1139_s16 = sadd.s32 %s2699_s28, %s4114_s26  ;;  %s2713_s8 = sadd.s32 512, %s4233_s11 }
 0x1aa   : >> { %3000 = vpow2.f32 %v1065_v46  ;;  %v1177_v49 = vmul.f32 %v1176_v54, %v1156_v38  ;;  %v1178_v56 = vmul.f32 %v1176_v54, %v1157_v47  ;;  %v1172_v58 = vadd.f32 %v1168_v23, %v1162_v6  ;;  %s4343_s24 = sld [smem:[#allocation3 + %s1021_s17]]  ;;  %s1151_s28 = sadd.s32 %s2705_s12, %s4114_s26 }
 0x1ab   : >> { %v1173_v43 = vadd.f32 %v1169_v53, %v1162_v6  ;;  %v1174_v50 = vadd.f32 %v1170_v61, %v1162_v6  ;;  %v1179_v4 = vmul.f32 %v1176_v54, %v1158_v60  ;;  %v1175_v35 = vadd.f32 %v1171_v32, %v1162_v6  ;;  %s4353_s29 = sld [smem:[#allocation3 + %s1143_s23]]  ;;  %s1265_s19 = sadd.s32 %s2713_s8, %s4263_s25 }
 0x1ac   : >> { %v1180_v10 = vmul.f32 %v1176_v54, %v1159_v14  ;;  %v1181_v26 = vmul.f32 %v1177_v49, %v1156_v38  ;;  %v1182_v46 = vmul.f32 %v1178_v56, %v1157_v47  ;;  %v4302_v24 = vadd.f32 %v4221_v59, %v4143_v36  ;;  %s4389_s17 = sld [smem:[#allocation3 + %s1265_s19]] }
 0x1ad   : >> { %v4306_v48 = vadd.f32 %v4210_v20, %v4127_v9  ;;  %v4310_v1 = vadd.f32 %v4214_v63, %v4131_v22  ;;  %v1183_v3 = vmul.f32 %v1179_v4, %v1158_v60  ;;  %v4316_v38 = vadd.f32 %v4225_v0, %v4162_v30 }
 0x1ae   : >> { %v1184_v36 = vmul.f32 %v1180_v10, %v1159_v14  ;;  %v1185_v59 = vadd.f32 %v1181_v26, %v1172_v58  ;;  %v1186_v9 = vadd.f32 %v1182_v46, %v1173_v43  ;;  %v4322_v20 = vadd.f32 %v4237_v21, %v4165_v2 }
 0x1af   : >> { %v4326_v22 = vadd.f32 %v4241_v29, %v4168_v42  ;;  %v1187_v30 = vadd.f32 %v1183_v3, %v1174_v50  ;;  %v1283_v63 = vstv %s4281_s3  ;;  %v1285_v14 = vstv %s4287_s27  ;;  %s1147_s3 = sadd.s32 %s2703_s0, %s4114_s26  ;;  %s4348_s27 = sld [smem:[#allocation3 + %s1139_s16]] }
 0x1b0   : >> { %v1188_v0 = vadd.f32 %v1184_v36, %v1175_v35  ;;  %v1189_v47 = vmul.f32 1.442695, %v1185_v59  ;;  %v1191_v60 = vmul.f32 1.442695, %v1186_v9  ;;  %v965_v2 = vmul.f32 %v4094_v41, %v4152_v13  ;;  %s4372_s26 = sld [smem:[#allocation3 + %s1147_s3]]  ;;  %s4490_s3 = sadd.s32 10, %s3297_s18 }
 0x1b1   : >> { %v966_v42 = vmul.f32 %v4094_v41, %v4155_v57  ;;  %v967_v21 = vmul.f32 %v4094_v41, %v4180_v12  ;;  %v968_v29 = vmul.f32 %v4094_v41, %v4184_v25  ;;  %v979_v28 = vadd.f32 1e-10, %v975_v52  ;;  %s1507_s19 = sshra.s32 %s4490_s3, 7 }
 0x1b2   : >> { %v1193_v6 = vmul.f32 1.442695, %v1187_v30  ;;  %v1284_v13 = vsub.f32 %v3283_v16, %v1283_v63  ;;  %v1290_v7 = vstv %s4291_s15  ;;  %3002 = vpow2.f32 %v1189_v47  ;;  %s4381_s15 = sld [smem:[#allocation3 + %s1151_s28]] }
 0x1b3   : >> { %v1195_v57 = vmul.f32 1.442695, %v1188_v0  ;;  %v4357_v41 = vsub.f32 %v3281_v15, %v1285_v14  ;;  %v4360_v12 = vsub.f32 %v3285_v17, %v1285_v14  ;;  %v980_v25 = vadd.f32 1e-10, %v976_v8 }
 0x1b4   : >> { %v2995_v51 = vpop.eup %2994  ;;  %v4366_v52 = vmul.f32 %v4203_v55, %v4120_v11  ;;  %v4370_v54 = vmul.f32 %v4217_v27, %v4123_v40  ;;  %3004 = vpow2.f32 %v1191_v60  ;;  %v4375_v53 = vadd.f32 %v965_v2, %v4173_v45 }
 0x1b5   : >> { %v2997_v23 = vpop.eup %2996  ;;  %v4378_v61 = vadd.f32 %v966_v42, %v4176_v39  ;;  %v1067_v34 = vstv %s4277_s22  ;;  %v4384_v11 = vsub.f32 %v3287_v18, %v1285_v14  ;;  %v4387_v55 = vadd.f32 %v967_v21, %v4187_v33  ;;  %s4400_s22 = sadd.s32 9, %s3297_s18 }
 0x1b6   : >> { %v2999_v40 = vpop.eup %2998  ;;  %3006 = vpow2.f32 %v1193_v6  ;;  %v4392_v45 = vsub.f32 %v3289_v19, %v1285_v14  ;;  %v1291_v39 = vmul.f32 %v1290_v7, %v1284_v13  ;;  %v4395_v27 = vadd.f32 %v968_v29, %v4190_v31  ;;  %s1377_s16 = sshra.s32 %s4400_s22, 7  ;;  %s4445_s0 = sand.u32 127, %s4400_s22 }
 0x1b7   : >> { %v3001_v8 = vpop.eup %3000  ;;  %3008 = vpow2.f32 %v1195_v57  ;;  %v1293_v32 = vmul.f32 %v4357_v41, %v1284_v13  ;;  %v1294_v33 = vmul.f32 %v4360_v12, %v1284_v13  ;;  %v4403_v49 = vmul.f32 %v979_v28, %v4134_v44  ;;  %s4470_s12 = sld [smem:[#allocation3 + %s4400_s22]]  ;;  %s4564_s22 = sshll.u32 %s1507_s19, 7 }
 0x1b8   : >> { %v1068_v56 = vmul.f32 %v2995_v51, %v1067_v34  ;;  %v1069_v58 = vmul.f32 %v2997_v23, %v1067_v34  ;;  %v1297_v43 = vstv %s4331_s2  ;;  %v984_v50 = vmul.f32 %v980_v25, %v4136_v5  ;;  %s4612_s19 = sld [smem:[#allocation3 + %s4490_s3]] }
 0x1b9   : >> { %v1076_v31 = vstv %s4294_s30  ;;  %v1085_v4 = vstv %s4297_s4  ;;  %v1295_v35 = vmul.f32 %v4384_v11, %v1284_v13  ;;  %v1094_v26 = vstv %s4343_s24  ;;  %s4429_s30 = sshll.u32 %s1377_s16, 7  ;;  %s2715_s16 = sadd.s32 640, %s4233_s11 }
 0x1ba   : >> { %v1072_v10 = vmul.f32 %v1068_v56, %v4366_v52  ;;  %v4412_v46 = vmul.f32 %v1291_v39, %v1284_v13  ;;  %v1296_v44 = vmul.f32 %v4392_v45, %v1284_v13  ;;  %v1070_v3 = vmul.f32 %v2999_v40, %v1067_v34  ;;  %s2723_s4 = sadd.s32 128, %s4429_s30  ;;  %s2725_s2 = sadd.s32 256, %s4429_s30 }
 0x1bb   : >> { %v1071_v36 = vmul.f32 %v3001_v8, %v1067_v34  ;;  %v1298_v59 = vmul.f32 %v1297_v43, %v1293_v32  ;;  %v1299_v5 = vmul.f32 %v1297_v43, %v1294_v33  ;;  %v1103_v9 = vsub.f32 1.0, %v1068_v56  ;;  %s1383_s23 = sadd.s32 %s2723_s4, %s4445_s0  ;;  %s2727_s24 = sadd.s32 384, %s4429_s30 }
 0x1bc   : >> { %v1104_v30 = vsub.f32 1.0, %v1069_v58  ;;  %v1197_v63 = vstv %s4348_s27  ;;  %v4418_v0 = vstv %s4353_s29  ;;  %v1073_v47 = vmul.f32 %v1069_v58, %v4370_v54  ;;  %s4478_s8 = sld [smem:[#allocation3 + %s1383_s23]]  ;;  %s1387_s27 = sadd.s32 %s2725_s2, %s4445_s0 }
 0x1bd   : >> { %v4422_v60 = vstv %s4372_s26  ;;  %v4425_v14 = vstv %s4381_s15  ;;  %v4427_v2 = vmul.f32 %v1297_v43, %v1295_v35  ;;  %v1074_v42 = vmul.f32 %v1070_v3, %v4403_v49  ;;  %s2729_s28 = sadd.s32 512, %s4429_s30  ;;  %s1391_s29 = sadd.s32 %s2727_s24, %s4445_s0 }
 0x1be   : >> { %v1077_v21 = vmul.f32 %v1076_v31, %v1072_v10  ;;  %v4432_v29 = vmul.f32 %v1297_v43, %v1296_v44  ;;  %v4435_v28 = vstv %s4389_s17  ;;  %v1105_v6 = vsub.f32 1.0, %v1070_v3  ;;  %s4536_s26 = sld [smem:[#allocation3 + %s1387_s27]]  ;;  %s1395_s15 = sadd.s32 %s2729_s28, %s4445_s0 }
 0x1bf   : >> { %v1106_v13 = vsub.f32 1.0, %v1071_v36  ;;  %v4438_v7 = vadd.f32 %v1298_v59, %v4412_v46  ;;  %v4441_v57 = vadd.f32 %v1299_v5, %v4412_v46  ;;  %v3003_v51 = vpop.eup %3002  ;;  %v1075_v25 = vmul.f32 %v1071_v36, %v984_v50  ;;  %s4562_s17 = sld [smem:[#allocation3 + %s1391_s29]]  ;;  %s2739_s23 = sadd.s32 128, %s4564_s22 }
 0x1c0   : >> { %v1086_v23 = vmul.f32 %v1085_v4, %v1072_v10  ;;  %v1107_v34 = vadd.f32 1e-10, %v1103_v9  ;;  %v1108_v40 = vadd.f32 1e-10, %v1104_v30  ;;  %v1078_v8 = vmul.f32 %v1076_v31, %v1073_v47  ;;  %s4579_s4 = sld [smem:[#allocation3 + %s1395_s15]]  ;;  %s4594_s2 = sand.u32 127, %s4490_s3 }
 0x1c1   : >> { %v3005_v39 = vpop.eup %3004  ;;  %v1087_v32 = vmul.f32 %v1085_v4, %v1073_v47  ;;  %v1109_v33 = vadd.f32 1e-10, %v1105_v6  ;;  %v1110_v56 = vadd.f32 1e-10, %v1106_v13  ;;  %v1079_v58 = vmul.f32 %v1076_v31, %v1074_v42  ;;  %s1269_s24 = sadd.s32 %s2715_s16, %s4263_s25  ;;  %s1513_s27 = sadd.s32 %s2739_s23, %s4594_s2 }
 0x1c2   : >> { %v4448_v43 = vadd.f32 %v1077_v21, %v4251_v37  ;;  %v1095_v35 = vmul.f32 %v1094_v26, %v1072_v10  ;;  %v1096_v44 = vmul.f32 %v1094_v26, %v1073_v47  ;;  %v1088_v36 = vmul.f32 %v1085_v4, %v1074_v42  ;;  %s4608_s28 = sld [smem:[#allocation3 + %s1269_s24]]  ;;  %s2719_s29 = sadd.s32 896, %s4233_s11 }
 0x1c3   : >> { %v3007_v3 = vpop.eup %3006  ;;  %v4451_v59 = vmul.f32 %v1107_v34, %v4366_v52  ;;  %v4454_v5 = vmul.f32 %v1108_v40, %v4370_v54  ;;  %v1198_v9 = vmul.f32 %v3003_v51, %v1197_v63  ;;  %v1080_v6 = vmul.f32 %v1076_v31, %v1075_v25  ;;  %s4618_s16 = sld [smem:[#allocation3 + %s1513_s27]]  ;;  %s1277_s23 = sadd.s32 %s2719_s29, %s4263_s25 }
 0x1c4   : >> { %v3009_v30 = vpop.eup %3008  ;;  %v1089_v13 = vmul.f32 %v1085_v4, %v1075_v25  ;;  %v4458_v37 = vadd.f32 %v1086_v23, %v4306_v48  ;;  %v1199_v10 = vmul.f32 %v3005_v39, %v1197_v63  ;;  %v1082_v47 = vadd.f32 %v1078_v8, %v4253_v62  ;;  %s2721_s24 = sadd.s32 1024, %s4233_s11 }
 0x1c5   : >> { %v4462_v21 = vadd.f32 %v1087_v32, %v4310_v1  ;;  %v4465_v52 = vmul.f32 %v1109_v33, %v4403_v49  ;;  %v4467_v54 = vmul.f32 %v1110_v56, %v984_v50  ;;  %v4474_v48 = vadd.f32 %v1079_v58, %v4302_v24  ;;  %s1281_s27 = sadd.s32 %s2721_s24, %s4263_s25 }
 0x1c6   : >> { %v1097_v31 = vmul.f32 %v1094_v26, %v1074_v42  ;;  %v1098_v4 = vmul.f32 %v1094_v26, %v1075_v25  ;;  %v4476_v62 = vmul.f32 %v3007_v3, %v1197_v63  ;;  %v4480_v1 = vmul.f32 %v3009_v30, %v1197_v63 }
 0x1c7   : >> { %v4483_v49 = vmul.f32 %v1198_v9, %v4451_v59  ;;  %v4486_v50 = vmul.f32 %v1199_v10, %v4454_v5  ;;  %v1233_v51 = vsub.f32 1.0, %v1198_v9  ;;  %v4493_v24 = vadd.f32 %v1080_v6, %v4316_v38 }
 0x1c8   : >> { %v4496_v26 = vadd.f32 %v1088_v36, %v4322_v20  ;;  %v4499_v63 = vadd.f32 %v1089_v13, %v4326_v22  ;;  %v1234_v42 = vsub.f32 1.0, %v1199_v10  ;;  %v4504_v25 = vadd.f32 %v1095_v35, %v4375_v53 }
 0x1c9   : >> { %v4507_v23 = vadd.f32 %v1096_v44, %v4378_v61  ;;  %v4511_v38 = vmul.f32 %v4476_v62, %v4465_v52  ;;  %v4515_v20 = vmul.f32 %v4480_v1, %v4467_v54  ;;  %v4518_v22 = vadd.f32 %v1097_v31, %v4387_v55 }
 0x1ca   : >> { %v4521_v34 = vadd.f32 %v1098_v4, %v4395_v27  ;;  %v1304_v53 = vadd.f32 %v4427_v2, %v4412_v46  ;;  %v1305_v61 = vadd.f32 %v4432_v29, %v4412_v46  ;;  %v1207_v40 = vmul.f32 %v4418_v0, %v4483_v49 }
 0x1cb   : >> { %v1208_v39 = vmul.f32 %v4418_v0, %v4486_v50  ;;  %v1235_v55 = vsub.f32 1.0, %v4476_v62  ;;  %v4534_v8 = vadd.f32 1e-10, %v1233_v51  ;;  %v4541_v27 = vmul.f32 %v4422_v60, %v4483_v49 }
 0x1cc   : >> { %v4545_v46 = vmul.f32 %v4422_v60, %v4486_v50  ;;  %v1236_v2 = vsub.f32 1.0, %v4480_v1  ;;  %v4548_v29 = vadd.f32 1e-10, %v1234_v42  ;;  %v4552_v32 = vmul.f32 %v4418_v0, %v4511_v38 }
 0x1cd   : >> { %v4556_v33 = vmul.f32 %v4418_v0, %v4515_v20  ;;  %v1307_v56 = vmul.f32 %v4435_v28, %v4357_v41  ;;  %v1308_v58 = vmul.f32 %v4435_v28, %v4360_v12  ;;  %v4568_v35 = vmul.f32 %v4422_v60, %v4511_v38 }
 0x1ce   : >> { %v4572_v0 = vmul.f32 %v4422_v60, %v4515_v20  ;;  %v1309_v44 = vmul.f32 %v4435_v28, %v4384_v11  ;;  %v1310_v3 = vmul.f32 %v4435_v28, %v4392_v45  ;;  %v4582_v36 = vadd.f32 %v1207_v40, %v4448_v43 }
 0x1cf   : >> { %v4584_v9 = vadd.f32 %v1208_v39, %v1082_v47  ;;  %v1311_v30 = vmul.f32 %v1307_v56, %v4357_v41  ;;  %v1312_v6 = vmul.f32 %v1308_v58, %v4360_v12  ;;  %v1413_v10 = vstv %s4470_s12  ;;  %s2741_s12 = sadd.s32 256, %s4564_s22 }
 0x1d0   : >> { %v1313_v60 = vmul.f32 %v1309_v44, %v4384_v11  ;;  %v1314_v13 = vmul.f32 %v1310_v3, %v4392_v45  ;;  %v1415_v31 = vstv %s4478_s8  ;;  %v1414_v12 = vsub.f32 %v3283_v16, %v1413_v10  ;;  %s2717_s8 = sadd.s32 768, %s4233_s11  ;;  %s1517_s15 = sadd.s32 %s2741_s12, %s4594_s2 }
 0x1d1   : >> { %v1315_v28 = vadd.f32 %v1311_v30, %v4438_v7  ;;  %v1316_v41 = vadd.f32 %v1312_v6, %v4441_v57  ;;  %v1416_v11 = vsub.f32 %v3281_v15, %v1415_v31  ;;  %v1417_v45 = vsub.f32 %v3285_v17, %v1415_v31  ;;  %s4622_s3 = sld [smem:[#allocation3 + %s1517_s15]]  ;;  %s2743_s12 = sadd.s32 384, %s4564_s22 }
 0x1d2   : >> { %v1317_v43 = vadd.f32 %v1313_v60, %v1304_v53  ;;  %v1318_v47 = vadd.f32 %v1314_v13, %v1305_v61  ;;  %v1418_v4 = vsub.f32 %v3287_v18, %v1415_v31  ;;  %v1419_v7 = vsub.f32 %v3289_v19, %v1415_v31  ;;  %s4628_s11 = sld [smem:[#allocation3 + %s1277_s23]]  ;;  %s1521_s29 = sadd.s32 %s2743_s12, %s4594_s2 }
 0x1d3   : >> { %v1319_v51 = vmul.f32 1.442695, %v1315_v28  ;;  %v1321_v42 = vmul.f32 1.442695, %v1316_v41  ;;  %v1420_v57 = vstv %s4536_s26  ;;  %v1423_v39 = vmul.f32 %v1416_v11, %v1414_v12  ;;  %s1273_s26 = sadd.s32 %s2717_s8, %s4263_s25  ;;  %s2733_s8 = sadd.s32 768, %s4429_s30 }
 0x1d4   : >> { %v1323_v53 = vmul.f32 1.442695, %v1317_v43  ;;  %v1325_v61 = vmul.f32 1.442695, %v1318_v47  ;;  %v1421_v40 = vmul.f32 %v1420_v57, %v1414_v12  ;;  %v1424_v56 = vmul.f32 %v1417_v45, %v1414_v12  ;;  %s1403_s25 = sadd.s32 %s2733_s8, %s4445_s0  ;;  %s2737_s23 = sadd.s32 1024, %s4429_s30 }
 0x1d5   : >> { %3010 = vpow2.f32 %v1319_v51  ;;  %v1425_v58 = vmul.f32 %v1418_v4, %v1414_v12  ;;  %v1426_v44 = vmul.f32 %v1419_v7, %v1414_v12  ;;  %v1427_v30 = vstv %s4562_s17  ;;  %s4625_s17 = sld [smem:[#allocation3 + %s1273_s26]]  ;;  %s2735_s26 = sadd.s32 896, %s4429_s30 }
 0x1d6   : >> { %3012 = vpow2.f32 %v1321_v42  ;;  %v1422_v3 = vmul.f32 %v1421_v40, %v1414_v12  ;;  %v1436_v6 = vstv %s4579_s4  ;;  %v1428_v60 = vmul.f32 %v1427_v30, %v1423_v39  ;;  %s2731_s4 = sadd.s32 640, %s4429_s30  ;;  %s4662_s24 = sld [smem:[#allocation3 + %s1521_s29]] }
 0x1d7   : >> { %3014 = vpow2.f32 %v1323_v53  ;;  %v1429_v13 = vmul.f32 %v1427_v30, %v1424_v56  ;;  %v1430_v10 = vmul.f32 %v1427_v30, %v1425_v58  ;;  %v1431_v31 = vmul.f32 %v1427_v30, %v1426_v44  ;;  %s1399_s15 = sadd.s32 %s2731_s4, %s4445_s0  ;;  %s2745_s12 = sadd.s32 512, %s4564_s22 }
 0x1d8   : >> { %3016 = vpow2.f32 %v1325_v61  ;;  %v1437_v28 = vmul.f32 %v1436_v6, %v1416_v11  ;;  %v1438_v41 = vmul.f32 %v1436_v6, %v1417_v45  ;;  %v1432_v12 = vadd.f32 %v1428_v60, %v1422_v3  ;;  %s4674_s30 = sld [smem:[#allocation3 + %s1281_s27]]  ;;  %s1411_s4 = sadd.s32 %s2737_s23, %s4445_s0 }
 0x1d9   : >> { %v1433_v43 = vadd.f32 %v1429_v13, %v1422_v3  ;;  %v1434_v47 = vadd.f32 %v1430_v10, %v1422_v3  ;;  %v1439_v51 = vmul.f32 %v1436_v6, %v1418_v4  ;;  %v1435_v42 = vadd.f32 %v1431_v31, %v1422_v3  ;;  %s4684_s8 = sld [smem:[#allocation3 + %s1403_s25]]  ;;  %s1525_s29 = sadd.s32 %s2745_s12, %s4594_s2 }
 0x1da   : >> { %v1440_v57 = vmul.f32 %v1436_v6, %v1419_v7  ;;  %v1441_v53 = vmul.f32 %v1437_v28, %v1416_v11  ;;  %v1442_v61 = vmul.f32 %v1438_v41, %v1417_v45  ;;  %v4633_v40 = vadd.f32 %v4552_v32, %v4474_v48  ;;  %s4720_s27 = sld [smem:[#allocation3 + %s1525_s29]] }
 0x1db   : >> { %v4637_v39 = vadd.f32 %v4541_v27, %v4458_v37  ;;  %v4641_v56 = vadd.f32 %v4545_v46, %v4462_v21  ;;  %v1443_v58 = vmul.f32 %v1439_v51, %v1418_v4  ;;  %v4647_v11 = vadd.f32 %v4556_v33, %v4493_v24 }
 0x1dc   : >> { %v1444_v48 = vmul.f32 %v1440_v57, %v1419_v7  ;;  %v1445_v32 = vadd.f32 %v1441_v53, %v1432_v12  ;;  %v1446_v37 = vadd.f32 %v1442_v61, %v1433_v43  ;;  %v4653_v27 = vadd.f32 %v4568_v35, %v4496_v26 }
 0x1dd   : >> { %v4657_v21 = vadd.f32 %v4572_v0, %v4499_v63  ;;  %v1447_v24 = vadd.f32 %v1443_v58, %v1434_v47  ;;  %v1543_v46 = vstv %s4612_s19  ;;  %v1545_v7 = vstv %s4618_s16  ;;  %s1407_s19 = sadd.s32 %s2735_s26, %s4445_s0  ;;  %s4679_s16 = sld [smem:[#allocation3 + %s1399_s15]] }
 0x1de   : >> { %v1448_v33 = vadd.f32 %v1444_v48, %v1435_v42  ;;  %v1449_v45 = vmul.f32 1.442695, %v1445_v32  ;;  %v1451_v4 = vmul.f32 1.442695, %v1446_v37  ;;  %v1225_v26 = vmul.f32 %v4425_v14, %v4483_v49  ;;  %s4703_s0 = sld [smem:[#allocation3 + %s1407_s19]]  ;;  %s4821_s19 = sadd.s32 12, %s3297_s18 }
 0x1df   : >> { %v1226_v63 = vmul.f32 %v4425_v14, %v4486_v50  ;;  %v1227_v35 = vmul.f32 %v4425_v14, %v4511_v38  ;;  %v1228_v0 = vmul.f32 %v4425_v14, %v4515_v20  ;;  %v1239_v44 = vadd.f32 1e-10, %v1235_v55  ;;  %s1767_s29 = sshra.s32 %s4821_s19, 7 }
 0x1e0   : >> { %v1453_v3 = vmul.f32 1.442695, %v1447_v24  ;;  %v1544_v49 = vsub.f32 %v3283_v16, %v1543_v46  ;;  %v1550_v30 = vstv %s4622_s3  ;;  %3018 = vpow2.f32 %v1449_v45  ;;  %s4712_s3 = sld [smem:[#allocation3 + %s1411_s4]] }
 0x1e1   : >> { %v1455_v50 = vmul.f32 1.442695, %v1448_v33  ;;  %v4688_v14 = vsub.f32 %v3281_v15, %v1545_v7  ;;  %v4691_v38 = vsub.f32 %v3285_v17, %v1545_v7  ;;  %v1240_v20 = vadd.f32 1e-10, %v1236_v2 }
 0x1e2   : >> { %v3011_v62 = vpop.eup %3010  ;;  %v4697_v55 = vmul.f32 %v4534_v8, %v4451_v59  ;;  %v4701_v6 = vmul.f32 %v4548_v29, %v4454_v5  ;;  %3020 = vpow2.f32 %v1451_v4  ;;  %v4706_v13 = vadd.f32 %v1225_v26, %v4504_v25 }
 0x1e3   : >> { %v3013_v60 = vpop.eup %3012  ;;  %v4709_v10 = vadd.f32 %v1226_v63, %v4507_v23  ;;  %v1327_v1 = vstv %s4608_s28  ;;  %v4715_v59 = vsub.f32 %v3287_v18, %v1545_v7  ;;  %v4718_v8 = vadd.f32 %v1227_v35, %v4518_v22  ;;  %s4731_s28 = sadd.s32 11, %s3297_s18 }
 0x1e4   : >> { %v3015_v5 = vpop.eup %3014  ;;  %3022 = vpow2.f32 %v1453_v3  ;;  %v4723_v25 = vsub.f32 %v3289_v19, %v1545_v7  ;;  %v1551_v23 = vmul.f32 %v1550_v30, %v1544_v49  ;;  %v4726_v29 = vadd.f32 %v1228_v0, %v4521_v34  ;;  %s1637_s15 = sshra.s32 %s4731_s28, 7  ;;  %s4776_s26 = sand.u32 127, %s4731_s28 }
 0x1e5   : >> { %v3017_v2 = vpop.eup %3016  ;;  %3024 = vpow2.f32 %v1455_v50  ;;  %v1553_v31 = vmul.f32 %v4688_v14, %v1544_v49  ;;  %v1554_v22 = vmul.f32 %v4691_v38, %v1544_v49  ;;  %v4734_v28 = vmul.f32 %v1239_v44, %v4465_v52  ;;  %s4801_s23 = sld [smem:[#allocation3 + %s4731_s28]]  ;;  %s4895_s28 = sshll.u32 %s1767_s29, 7 }
 0x1e6   : >> { %v1328_v41 = vmul.f32 %v3011_v62, %v1327_v1  ;;  %v1329_v12 = vmul.f32 %v3013_v60, %v1327_v1  ;;  %v1557_v43 = vstv %s4662_s24  ;;  %v1244_v47 = vmul.f32 %v1240_v20, %v4467_v54  ;;  %s4943_s29 = sld [smem:[#allocation3 + %s4821_s19]] }
 0x1e7   : >> { %v1336_v34 = vstv %s4625_s17  ;;  %v1345_v51 = vstv %s4628_s11  ;;  %v1555_v42 = vmul.f32 %v4715_v59, %v1544_v49  ;;  %v1354_v53 = vstv %s4674_s30  ;;  %s4760_s17 = sshll.u32 %s1637_s15, 7  ;;  %s2747_s15 = sadd.s32 640, %s4564_s22 }
 0x1e8   : >> { %v1332_v57 = vmul.f32 %v1328_v41, %v4697_v55  ;;  %v4743_v61 = vmul.f32 %v1551_v23, %v1544_v49  ;;  %v1556_v52 = vmul.f32 %v4723_v25, %v1544_v49  ;;  %v1330_v58 = vmul.f32 %v3015_v5, %v1327_v1  ;;  %s2755_s11 = sadd.s32 128, %s4760_s17  ;;  %s2757_s24 = sadd.s32 256, %s4760_s17 }
 0x1e9   : >> { %v1331_v48 = vmul.f32 %v3017_v2, %v1327_v1  ;;  %v1558_v32 = vmul.f32 %v1557_v43, %v1553_v31  ;;  %v1559_v54 = vmul.f32 %v1557_v43, %v1554_v22  ;;  %v1363_v37 = vsub.f32 1.0, %v1328_v41  ;;  %s1643_s25 = sadd.s32 %s2755_s11, %s4776_s26  ;;  %s2759_s30 = sadd.s32 384, %s4760_s17 }
 0x1ea   : >> { %v1364_v24 = vsub.f32 1.0, %v1329_v12  ;;  %v1457_v46 = vstv %s4679_s16  ;;  %v4749_v33 = vstv %s4684_s8  ;;  %v1333_v45 = vmul.f32 %v1329_v12, %v4701_v6  ;;  %s4809_s12 = sld [smem:[#allocation3 + %s1643_s25]]  ;;  %s1647_s16 = sadd.s32 %s2757_s24, %s4776_s26 }
 0x1eb   : >> { %v4753_v4 = vstv %s4703_s0  ;;  %v4756_v7 = vstv %s4712_s3  ;;  %v4758_v26 = vmul.f32 %v1557_v43, %v1555_v42  ;;  %v1334_v63 = vmul.f32 %v1330_v58, %v4734_v28  ;;  %s2761_s4 = sadd.s32 512, %s4760_s17  ;;  %s1651_s8 = sadd.s32 %s2759_s30, %s4776_s26 }
 0x1ec   : >> { %v1337_v35 = vmul.f32 %v1336_v34, %v1332_v57  ;;  %v4763_v0 = vmul.f32 %v1557_v43, %v1556_v52  ;;  %v4766_v44 = vstv %s4720_s27  ;;  %v1365_v3 = vsub.f32 1.0, %v1330_v58  ;;  %s4867_s0 = sld [smem:[#allocation3 + %s1647_s16]]  ;;  %s1655_s3 = sadd.s32 %s2761_s4, %s4776_s26 }
 0x1ed   : >> { %v1366_v49 = vsub.f32 1.0, %v1331_v48  ;;  %v4769_v30 = vadd.f32 %v1558_v32, %v4743_v61  ;;  %v4772_v50 = vadd.f32 %v1559_v54, %v4743_v61  ;;  %v3019_v62 = vpop.eup %3018  ;;  %v1335_v20 = vmul.f32 %v1331_v48, %v1244_v47  ;;  %s4893_s27 = sld [smem:[#allocation3 + %s1651_s8]]  ;;  %s2771_s25 = sadd.s32 128, %s4895_s28 }
 0x1ee   : >> { %v1346_v60 = vmul.f32 %v1345_v51, %v1332_v57  ;;  %v1367_v1 = vadd.f32 1e-10, %v1363_v37  ;;  %v1368_v5 = vadd.f32 1e-10, %v1364_v24  ;;  %v1338_v2 = vmul.f32 %v1336_v34, %v1333_v45  ;;  %s4910_s11 = sld [smem:[#allocation3 + %s1655_s3]]  ;;  %s4925_s24 = sand.u32 127, %s4821_s19 }
 0x1ef   : >> { %v3021_v23 = vpop.eup %3020  ;;  %v1347_v31 = vmul.f32 %v1345_v51, %v1333_v45  ;;  %v1369_v22 = vadd.f32 1e-10, %v1365_v3  ;;  %v1370_v41 = vadd.f32 1e-10, %v1366_v49  ;;  %v1339_v12 = vmul.f32 %v1336_v34, %v1334_v63  ;;  %s1529_s30 = sadd.s32 %s2747_s15, %s4594_s2  ;;  %s1773_s16 = sadd.s32 %s2771_s25, %s4925_s24 }
 0x1f0   : >> { %v4779_v43 = vadd.f32 %v1337_v35, %v4582_v36  ;;  %v1355_v42 = vmul.f32 %v1354_v53, %v1332_v57  ;;  %v1356_v52 = vmul.f32 %v1354_v53, %v1333_v45  ;;  %v1348_v48 = vmul.f32 %v1345_v51, %v1334_v63  ;;  %s4939_s4 = sld [smem:[#allocation3 + %s1529_s30]]  ;;  %s2751_s8 = sadd.s32 896, %s4564_s22 }
 0x1f1   : >> { %v3023_v58 = vpop.eup %3022  ;;  %v4782_v32 = vmul.f32 %v1367_v1, %v4697_v55  ;;  %v4785_v54 = vmul.f32 %v1368_v5, %v4701_v6  ;;  %v1458_v37 = vmul.f32 %v3019_v62, %v1457_v46  ;;  %v1340_v3 = vmul.f32 %v1336_v34, %v1335_v20  ;;  %s4949_s15 = sld [smem:[#allocation3 + %s1773_s16]]  ;;  %s1537_s25 = sadd.s32 %s2751_s8, %s4594_s2 }
 0x1f2   : >> { %v3025_v24 = vpop.eup %3024  ;;  %v1349_v49 = vmul.f32 %v1345_v51, %v1335_v20  ;;  %v4789_v36 = vadd.f32 %v1346_v60, %v4637_v39  ;;  %v1459_v57 = vmul.f32 %v3021_v23, %v1457_v46  ;;  %v1342_v45 = vadd.f32 %v1338_v2, %v4584_v9  ;;  %s2753_s30 = sadd.s32 1024, %s4564_s22 }
 0x1f3   : >> { %v4793_v35 = vadd.f32 %v1347_v31, %v4641_v56  ;;  %v4796_v55 = vmul.f32 %v1369_v22, %v4734_v28  ;;  %v4798_v6 = vmul.f32 %v1370_v41, %v1244_v47  ;;  %v4805_v39 = vadd.f32 %v1339_v12, %v4633_v40  ;;  %s1541_s16 = sadd.s32 %s2753_s30, %s4594_s2 }
 0x1f4   : >> { %v1357_v34 = vmul.f32 %v1354_v53, %v1334_v63  ;;  %v1358_v51 = vmul.f32 %v1354_v53, %v1335_v20  ;;  %v4807_v9 = vmul.f32 %v3023_v58, %v1457_v46  ;;  %v4811_v56 = vmul.f32 %v3025_v24, %v1457_v46 }
 0x1f5   : >> { %v4814_v28 = vmul.f32 %v1458_v37, %v4782_v32  ;;  %v4817_v47 = vmul.f32 %v1459_v57, %v4785_v54  ;;  %v1493_v62 = vsub.f32 1.0, %v1458_v37  ;;  %v4824_v40 = vadd.f32 %v1340_v3, %v4647_v11 }
 0x1f6   : >> { %v4827_v53 = vadd.f32 %v1348_v48, %v4653_v27  ;;  %v4830_v46 = vadd.f32 %v1349_v49, %v4657_v21  ;;  %v1494_v63 = vsub.f32 1.0, %v1459_v57  ;;  %v4835_v20 = vadd.f32 %v1355_v42, %v4706_v13 }
 0x1f7   : >> { %v4838_v60 = vadd.f32 %v1356_v52, %v4709_v10  ;;  %v4842_v11 = vmul.f32 %v4807_v9, %v4796_v55  ;;  %v4846_v27 = vmul.f32 %v4811_v56, %v4798_v6  ;;  %v4849_v21 = vadd.f32 %v1357_v34, %v4718_v8 }
 0x1f8   : >> { %v4852_v1 = vadd.f32 %v1358_v51, %v4726_v29  ;;  %v1564_v13 = vadd.f32 %v4758_v26, %v4743_v61  ;;  %v1565_v10 = vadd.f32 %v4763_v0, %v4743_v61  ;;  %v1467_v5 = vmul.f32 %v4749_v33, %v4814_v28 }
 0x1f9   : >> { %v1468_v23 = vmul.f32 %v4749_v33, %v4817_v47  ;;  %v1495_v8 = vsub.f32 1.0, %v4807_v9  ;;  %v4865_v2 = vadd.f32 1e-10, %v1493_v62  ;;  %v4872_v29 = vmul.f32 %v4753_v4, %v4814_v28 }
 0x1fa   : >> { %v4876_v61 = vmul.f32 %v4753_v4, %v4817_v47  ;;  %v1496_v26 = vsub.f32 1.0, %v4811_v56  ;;  %v4879_v0 = vadd.f32 1e-10, %v1494_v63  ;;  %v4883_v31 = vmul.f32 %v4749_v33, %v4842_v11 }
 0x1fb   : >> { %v4887_v22 = vmul.f32 %v4749_v33, %v4846_v27  ;;  %v1567_v41 = vmul.f32 %v4766_v44, %v4688_v14  ;;  %v1568_v12 = vmul.f32 %v4766_v44, %v4691_v38  ;;  %v4899_v42 = vmul.f32 %v4753_v4, %v4842_v11 }
 0x1fc   : >> { %v4903_v33 = vmul.f32 %v4753_v4, %v4846_v27  ;;  %v1569_v52 = vmul.f32 %v4766_v44, %v4715_v59  ;;  %v1570_v58 = vmul.f32 %v4766_v44, %v4723_v25  ;;  %v4913_v48 = vadd.f32 %v1467_v5, %v4779_v43 }
 0x1fd   : >> { %v4915_v37 = vadd.f32 %v1468_v23, %v1342_v45  ;;  %v1571_v24 = vmul.f32 %v1567_v41, %v4688_v14  ;;  %v1572_v3 = vmul.f32 %v1568_v12, %v4691_v38  ;;  %v1673_v57 = vstv %s4801_s23  ;;  %s2773_s23 = sadd.s32 256, %s4895_s28 }
 0x1fe   : >> { %v1573_v4 = vmul.f32 %v1569_v52, %v4715_v59  ;;  %v1574_v49 = vmul.f32 %v1570_v58, %v4723_v25  ;;  %v1675_v34 = vstv %s4809_s12  ;;  %v1674_v38 = vsub.f32 %v3283_v16, %v1673_v57  ;;  %s2749_s12 = sadd.s32 768, %s4564_s22  ;;  %s1777_s3 = sadd.s32 %s2773_s23, %s4925_s24 }
 0x1ff   : >> { %v1575_v44 = vadd.f32 %v1571_v24, %v4769_v30  ;;  %v1576_v14 = vadd.f32 %v1572_v3, %v4772_v50  ;;  %v1676_v59 = vsub.f32 %v3281_v15, %v1675_v34  ;;  %v1677_v25 = vsub.f32 %v3285_v17, %v1675_v34  ;;  %s4953_s19 = sld [smem:[#allocation3 + %s1777_s3]]  ;;  %s2775_s23 = sadd.s32 384, %s4895_s28 }
 0x200   : >> { %v1577_v43 = vadd.f32 %v1573_v4, %v1564_v13  ;;  %v1578_v45 = vadd.f32 %v1574_v49, %v1565_v10  ;;  %v1678_v51 = vsub.f32 %v3287_v18, %v1675_v34  ;;  %v1679_v30 = vsub.f32 %v3289_v19, %v1675_v34  ;;  %s4959_s22 = sld [smem:[#allocation3 + %s1537_s25]]  ;;  %s1781_s8 = sadd.s32 %s2775_s23, %s4925_s24 }
 0x201   : >> { %v1579_v62 = vmul.f32 1.442695, %v1575_v44  ;;  %v1581_v63 = vmul.f32 1.442695, %v1576_v14  ;;  %v1680_v50 = vstv %s4867_s0  ;;  %v1683_v23 = vmul.f32 %v1676_v59, %v1674_v38  ;;  %s1533_s0 = sadd.s32 %s2749_s12, %s4594_s2  ;;  %s2765_s12 = sadd.s32 768, %s4760_s17 }
 0x202   : >> { %v1583_v13 = vmul.f32 1.442695, %v1577_v43  ;;  %v1585_v10 = vmul.f32 1.442695, %v1578_v45  ;;  %v1681_v5 = vmul.f32 %v1680_v50, %v1674_v38  ;;  %v1684_v41 = vmul.f32 %v1677_v25, %v1674_v38  ;;  %s1663_s2 = sadd.s32 %s2765_s12, %s4776_s26  ;;  %s2769_s25 = sadd.s32 1024, %s4760_s17 }
 0x203   : >> { %3026 = vpow2.f32 %v1579_v62  ;;  %v1685_v12 = vmul.f32 %v1678_v51, %v1674_v38  ;;  %v1686_v52 = vmul.f32 %v1679_v30, %v1674_v38  ;;  %v1687_v24 = vstv %s4893_s27  ;;  %s4956_s27 = sld [smem:[#allocation3 + %s1533_s0]]  ;;  %s2767_s0 = sadd.s32 896, %s4760_s17 }
 0x204   : >> { %3028 = vpow2.f32 %v1581_v63  ;;  %v1682_v58 = vmul.f32 %v1681_v5, %v1674_v38  ;;  %v1696_v3 = vstv %s4910_s11  ;;  %v1688_v4 = vmul.f32 %v1687_v24, %v1683_v23  ;;  %s2763_s11 = sadd.s32 640, %s4760_s17  ;;  %s4993_s30 = sld [smem:[#allocation3 + %s1781_s8]] }
 0x205   : >> { %3030 = vpow2.f32 %v1583_v13  ;;  %v1689_v49 = vmul.f32 %v1687_v24, %v1684_v41  ;;  %v1690_v57 = vmul.f32 %v1687_v24, %v1685_v12  ;;  %v1691_v34 = vmul.f32 %v1687_v24, %v1686_v52  ;;  %s1659_s3 = sadd.s32 %s2763_s11, %s4776_s26  ;;  %s2777_s23 = sadd.s32 512, %s4895_s28 }
 0x206   : >> { %3032 = vpow2.f32 %v1585_v10  ;;  %v1697_v44 = vmul.f32 %v1696_v3, %v1676_v59  ;;  %v1698_v14 = vmul.f32 %v1696_v3, %v1677_v25  ;;  %v1692_v38 = vadd.f32 %v1688_v4, %v1682_v58  ;;  %s5005_s17 = sld [smem:[#allocation3 + %s1541_s16]]  ;;  %s1671_s11 = sadd.s32 %s2769_s25, %s4776_s26 }
 0x207   : >> { %v1693_v43 = vadd.f32 %v1689_v49, %v1682_v58  ;;  %v1694_v45 = vadd.f32 %v1690_v57, %v1682_v58  ;;  %v1699_v62 = vmul.f32 %v1696_v3, %v1678_v51  ;;  %v1695_v63 = vadd.f32 %v1691_v34, %v1682_v58  ;;  %s5015_s12 = sld [smem:[#allocation3 + %s1663_s2]]  ;;  %s1785_s8 = sadd.s32 %s2777_s23, %s4925_s24 }
 0x208   : >> { %v1700_v50 = vmul.f32 %v1696_v3, %v1679_v30  ;;  %v1701_v13 = vmul.f32 %v1697_v44, %v1676_v59  ;;  %v1702_v10 = vmul.f32 %v1698_v14, %v1677_v25  ;;  %v4964_v5 = vadd.f32 %v4883_v31, %v4805_v39  ;;  %s5051_s16 = sld [smem:[#allocation3 + %s1785_s8]] }
 0x209   : >> { %v4968_v23 = vadd.f32 %v4872_v29, %v4789_v36  ;;  %v4972_v41 = vadd.f32 %v4876_v61, %v4793_v35  ;;  %v1703_v12 = vmul.f32 %v1699_v62, %v1678_v51  ;;  %v4978_v59 = vadd.f32 %v4887_v22, %v4824_v40 }
 0x20a   : >> { %v1704_v39 = vmul.f32 %v1700_v50, %v1679_v30  ;;  %v1705_v31 = vadd.f32 %v1701_v13, %v1692_v38  ;;  %v1706_v36 = vadd.f32 %v1702_v10, %v1693_v43  ;;  %v4984_v29 = vadd.f32 %v4899_v42, %v4827_v53 }
 0x20b   : >> { %v4988_v35 = vadd.f32 %v4903_v33, %v4830_v46  ;;  %v1707_v40 = vadd.f32 %v1703_v12, %v1694_v45  ;;  %v1803_v61 = vstv %s4943_s29  ;;  %v1805_v30 = vstv %s4949_s15  ;;  %s1667_s29 = sadd.s32 %s2767_s0, %s4776_s26  ;;  %s5010_s15 = sld [smem:[#allocation3 + %s1659_s3]] }
 0x20c   : >> { %v1708_v22 = vadd.f32 %v1704_v39, %v1695_v63  ;;  %v1709_v25 = vmul.f32 1.442695, %v1705_v31  ;;  %v1711_v51 = vmul.f32 1.442695, %v1706_v36  ;;  %v1485_v53 = vmul.f32 %v4756_v7, %v4814_v28  ;;  %s5034_s26 = sld [smem:[#allocation3 + %s1667_s29]]  ;;  %s5152_s29 = sadd.s32 14, %s3297_s18 }
 0x20d   : >> { %v1486_v46 = vmul.f32 %v4756_v7, %v4817_v47  ;;  %v1487_v42 = vmul.f32 %v4756_v7, %v4842_v11  ;;  %v1488_v33 = vmul.f32 %v4756_v7, %v4846_v27  ;;  %v1499_v52 = vadd.f32 1e-10, %v1495_v8  ;;  %s2027_s8 = sshra.s32 %s5152_s29, 7 }
 0x20e   : >> { %v1713_v58 = vmul.f32 1.442695, %v1707_v40  ;;  %v1804_v28 = vsub.f32 %v3283_v16, %v1803_v61  ;;  %v1810_v24 = vstv %s4953_s19  ;;  %3034 = vpow2.f32 %v1709_v25  ;;  %s5043_s19 = sld [smem:[#allocation3 + %s1671_s11]] }
 0x20f   : >> { %v1715_v47 = vmul.f32 1.442695, %v1708_v22  ;;  %v5019_v7 = vsub.f32 %v3281_v15, %v1805_v30  ;;  %v5022_v11 = vsub.f32 %v3285_v17, %v1805_v30  ;;  %v1500_v27 = vadd.f32 1e-10, %v1496_v26 }
 0x210   : >> { %v3027_v9 = vpop.eup %3026  ;;  %v5028_v8 = vmul.f32 %v4865_v2, %v4782_v32  ;;  %v5032_v3 = vmul.f32 %v4879_v0, %v4785_v54  ;;  %3036 = vpow2.f32 %v1711_v51  ;;  %v5037_v49 = vadd.f32 %v1485_v53, %v4835_v20 }
 0x211   : >> { %v3029_v4 = vpop.eup %3028  ;;  %v5040_v57 = vadd.f32 %v1486_v46, %v4838_v60  ;;  %v1587_v56 = vstv %s4939_s4  ;;  %v5046_v32 = vsub.f32 %v3287_v18, %v1805_v30  ;;  %v5049_v2 = vadd.f32 %v1487_v42, %v4849_v21  ;;  %s5062_s4 = sadd.s32 13, %s3297_s18 }
 0x212   : >> { %v3031_v54 = vpop.eup %3030  ;;  %3038 = vpow2.f32 %v1713_v58  ;;  %v5054_v20 = vsub.f32 %v3289_v19, %v1805_v30  ;;  %v1811_v60 = vmul.f32 %v1810_v24, %v1804_v28  ;;  %v5057_v0 = vadd.f32 %v1488_v33, %v4852_v1  ;;  %s1897_s3 = sshra.s32 %s5062_s4, 7  ;;  %s5107_s0 = sand.u32 127, %s5062_s4 }
 0x213   : >> { %v3033_v26 = vpop.eup %3032  ;;  %3040 = vpow2.f32 %v1715_v47  ;;  %v1813_v34 = vmul.f32 %v5019_v7, %v1804_v28  ;;  %v1814_v21 = vmul.f32 %v5022_v11, %v1804_v28  ;;  %v5065_v44 = vmul.f32 %v1499_v52, %v4796_v55  ;;  %s5132_s25 = sld [smem:[#allocation3 + %s5062_s4]]  ;;  %s5226_s4 = sshll.u32 %s2027_s8, 7 }
 0x214   : >> { %v1588_v14 = vmul.f32 %v3027_v9, %v1587_v56  ;;  %v1589_v38 = vmul.f32 %v3029_v4, %v1587_v56  ;;  %v1817_v43 = vstv %s4993_s30  ;;  %v1504_v45 = vmul.f32 %v1500_v27, %v4798_v6  ;;  %s5274_s8 = sld [smem:[#allocation3 + %s5152_s29]] }
 0x215   : >> { %v1596_v1 = vstv %s4956_s27  ;;  %v1605_v62 = vstv %s4959_s22  ;;  %v1815_v63 = vmul.f32 %v5046_v32, %v1804_v28  ;;  %v1614_v13 = vstv %s5005_s17  ;;  %s5091_s27 = sshll.u32 %s1897_s3, 7  ;;  %s2779_s3 = sadd.s32 640, %s4895_s28 }
 0x216   : >> { %v1592_v50 = vmul.f32 %v1588_v14, %v5028_v8  ;;  %v5074_v10 = vmul.f32 %v1811_v60, %v1804_v28  ;;  %v1816_v55 = vmul.f32 %v5054_v20, %v1804_v28  ;;  %v1590_v12 = vmul.f32 %v3031_v54, %v1587_v56  ;;  %s2787_s22 = sadd.s32 128, %s5091_s27  ;;  %s2789_s30 = sadd.s32 256, %s5091_s27 }
 0x217   : >> { %v1591_v39 = vmul.f32 %v3033_v26, %v1587_v56  ;;  %v1818_v31 = vmul.f32 %v1817_v43, %v1813_v34  ;;  %v1819_v6 = vmul.f32 %v1817_v43, %v1814_v21  ;;  %v1623_v36 = vsub.f32 1.0, %v1588_v14  ;;  %s1903_s2 = sadd.s32 %s2787_s22, %s5107_s0  ;;  %s2791_s17 = sadd.s32 384, %s5091_s27 }
 0x218   : >> { %v1624_v40 = vsub.f32 1.0, %v1589_v38  ;;  %v1717_v61 = vstv %s5010_s15  ;;  %v5080_v22 = vstv %s5015_s12  ;;  %v1593_v25 = vmul.f32 %v1589_v38, %v5032_v3  ;;  %s5140_s23 = sld [smem:[#allocation3 + %s1903_s2]]  ;;  %s1907_s15 = sadd.s32 %s2789_s30, %s5107_s0 }
 0x219   : >> { %v5084_v51 = vstv %s5034_s26  ;;  %v5087_v30 = vstv %s5043_s19  ;;  %v5089_v53 = vmul.f32 %v1817_v43, %v1815_v63  ;;  %v1594_v46 = vmul.f32 %v1590_v12, %v5065_v44  ;;  %s2793_s11 = sadd.s32 512, %s5091_s27  ;;  %s1911_s12 = sadd.s32 %s2791_s17, %s5107_s0 }
 0x21a   : >> { %v1597_v42 = vmul.f32 %v1596_v1, %v1592_v50  ;;  %v5094_v33 = vmul.f32 %v1817_v43, %v1816_v55  ;;  %v5097_v52 = vstv %s5051_s16  ;;  %v1625_v58 = vsub.f32 1.0, %v1590_v12  ;;  %s5198_s26 = sld [smem:[#allocation3 + %s1907_s15]]  ;;  %s1915_s19 = sadd.s32 %s2793_s11, %s5107_s0 }
 0x21b   : >> { %v1626_v28 = vsub.f32 1.0, %v1591_v39  ;;  %v5100_v24 = vadd.f32 %v1818_v31, %v5074_v10  ;;  %v5103_v47 = vadd.f32 %v1819_v6, %v5074_v10  ;;  %v3035_v9 = vpop.eup %3034  ;;  %v1595_v27 = vmul.f32 %v1591_v39, %v1504_v45  ;;  %s5224_s16 = sld [smem:[#allocation3 + %s1911_s12]]  ;;  %s2803_s2 = sadd.s32 128, %s5226_s4 }
 0x21c   : >> { %v1606_v4 = vmul.f32 %v1605_v62, %v1592_v50  ;;  %v1627_v56 = vadd.f32 1e-10, %v1623_v36  ;;  %v1628_v54 = vadd.f32 1e-10, %v1624_v40  ;;  %v1598_v26 = vmul.f32 %v1596_v1, %v1593_v25  ;;  %s5241_s22 = sld [smem:[#allocation3 + %s1915_s19]]  ;;  %s5256_s30 = sand.u32 127, %s5152_s29 }
 0x21d   : >> { %v3037_v60 = vpop.eup %3036  ;;  %v1607_v34 = vmul.f32 %v1605_v62, %v1593_v25  ;;  %v1629_v21 = vadd.f32 1e-10, %v1625_v58  ;;  %v1630_v14 = vadd.f32 1e-10, %v1626_v28  ;;  %v1599_v38 = vmul.f32 %v1596_v1, %v1594_v46  ;;  %s1789_s17 = sadd.s32 %s2779_s3, %s4925_s24  ;;  %s2033_s15 = sadd.s32 %s2803_s2, %s5256_s30 }
 0x21e   : >> { %v5110_v43 = vadd.f32 %v1597_v42, %v4913_v48  ;;  %v1615_v63 = vmul.f32 %v1614_v13, %v1592_v50  ;;  %v1616_v55 = vmul.f32 %v1614_v13, %v1593_v25  ;;  %v1608_v39 = vmul.f32 %v1605_v62, %v1594_v46  ;;  %s5270_s11 = sld [smem:[#allocation3 + %s1789_s17]]  ;;  %s2783_s12 = sadd.s32 896, %s4895_s28 }
 0x21f   : >> { %v3039_v12 = vpop.eup %3038  ;;  %v5113_v31 = vmul.f32 %v1627_v56, %v5028_v8  ;;  %v5116_v6 = vmul.f32 %v1628_v54, %v5032_v3  ;;  %v1718_v36 = vmul.f32 %v3035_v9, %v1717_v61  ;;  %v1600_v58 = vmul.f32 %v1596_v1, %v1595_v27  ;;  %s5280_s3 = sld [smem:[#allocation3 + %s2033_s15]]  ;;  %s1797_s2 = sadd.s32 %s2783_s12, %s4925_s24 }
 0x220   : >> { %v3041_v40 = vpop.eup %3040  ;;  %v1609_v28 = vmul.f32 %v1605_v62, %v1595_v27  ;;  %v5120_v48 = vadd.f32 %v1606_v4, %v4968_v23  ;;  %v1719_v50 = vmul.f32 %v3037_v60, %v1717_v61  ;;  %v1602_v25 = vadd.f32 %v1598_v26, %v4915_v37  ;;  %s2785_s17 = sadd.s32 1024, %s4895_s28 }
 0x221   : >> { %v5124_v42 = vadd.f32 %v1607_v34, %v4972_v41  ;;  %v5127_v8 = vmul.f32 %v1629_v21, %v5065_v44  ;;  %v5129_v3 = vmul.f32 %v1630_v14, %v1504_v45  ;;  %v5136_v23 = vadd.f32 %v1599_v38, %v4964_v5  ;;  %s1801_s15 = sadd.s32 %s2785_s17, %s4925_s24 }
 0x222   : >> { %v1617_v1 = vmul.f32 %v1614_v13, %v1594_v46  ;;  %v1618_v62 = vmul.f32 %v1614_v13, %v1595_v27  ;;  %v5138_v37 = vmul.f32 %v3039_v12, %v1717_v61  ;;  %v5142_v41 = vmul.f32 %v3041_v40, %v1717_v61 }
 0x223   : >> { %v5145_v44 = vmul.f32 %v1718_v36, %v5113_v31  ;;  %v5148_v45 = vmul.f32 %v1719_v50, %v5116_v6  ;;  %v1753_v9 = vsub.f32 1.0, %v1718_v36  ;;  %v5155_v5 = vadd.f32 %v1600_v58, %v4978_v59 }
 0x224   : >> { %v5158_v13 = vadd.f32 %v1608_v39, %v4984_v29  ;;  %v5161_v61 = vadd.f32 %v1609_v28, %v4988_v35  ;;  %v1754_v46 = vsub.f32 1.0, %v1719_v50  ;;  %v5166_v27 = vadd.f32 %v1615_v63, %v5037_v49 }
 0x225   : >> { %v5169_v4 = vadd.f32 %v1616_v55, %v5040_v57  ;;  %v5173_v59 = vmul.f32 %v5138_v37, %v5127_v8  ;;  %v5177_v29 = vmul.f32 %v5142_v41, %v5129_v3  ;;  %v5180_v35 = vadd.f32 %v1617_v1, %v5049_v2 }
 0x226   : >> { %v5183_v56 = vadd.f32 %v1618_v62, %v5057_v0  ;;  %v1824_v49 = vadd.f32 %v5089_v53, %v5074_v10  ;;  %v1825_v57 = vadd.f32 %v5094_v33, %v5074_v10  ;;  %v1727_v54 = vmul.f32 %v5080_v22, %v5145_v44 }
 0x227   : >> { %v1728_v60 = vmul.f32 %v5080_v22, %v5148_v45  ;;  %v1755_v2 = vsub.f32 1.0, %v5138_v37  ;;  %v5196_v26 = vadd.f32 1e-10, %v1753_v9  ;;  %v5203_v0 = vmul.f32 %v5084_v51, %v5145_v44 }
 0x228   : >> { %v5207_v10 = vmul.f32 %v5084_v51, %v5148_v45  ;;  %v1756_v53 = vsub.f32 1.0, %v5142_v41  ;;  %v5210_v33 = vadd.f32 1e-10, %v1754_v46  ;;  %v5214_v34 = vmul.f32 %v5080_v22, %v5173_v59 }
 0x229   : >> { %v5218_v21 = vmul.f32 %v5080_v22, %v5177_v29  ;;  %v1827_v14 = vmul.f32 %v5097_v52, %v5019_v7  ;;  %v1828_v38 = vmul.f32 %v5097_v52, %v5022_v11  ;;  %v5230_v63 = vmul.f32 %v5084_v51, %v5173_v59 }
 0x22a   : >> { %v5234_v22 = vmul.f32 %v5084_v51, %v5177_v29  ;;  %v1829_v55 = vmul.f32 %v5097_v52, %v5046_v32  ;;  %v1830_v12 = vmul.f32 %v5097_v52, %v5054_v20  ;;  %v5244_v39 = vadd.f32 %v1727_v54, %v5110_v43 }
 0x22b   : >> { %v5246_v36 = vadd.f32 %v1728_v60, %v1602_v25  ;;  %v1831_v40 = vmul.f32 %v1827_v14, %v5019_v7  ;;  %v1832_v58 = vmul.f32 %v1828_v38, %v5022_v11  ;;  %v1933_v50 = vstv %s5132_s25  ;;  %s2805_s25 = sadd.s32 256, %s5226_s4 }
 0x22c   : >> { %v1833_v51 = vmul.f32 %v1829_v55, %v5046_v32  ;;  %v1834_v28 = vmul.f32 %v1830_v12, %v5054_v20  ;;  %v1935_v1 = vstv %s5140_s23  ;;  %v1934_v11 = vsub.f32 %v3283_v16, %v1933_v50  ;;  %s2781_s23 = sadd.s32 768, %s4895_s28  ;;  %s2037_s19 = sadd.s32 %s2805_s25, %s5256_s30 }
 0x22d   : >> { %v1835_v52 = vadd.f32 %v1831_v40, %v5100_v24  ;;  %v1836_v7 = vadd.f32 %v1832_v58, %v5103_v47  ;;  %v1936_v32 = vsub.f32 %v3281_v15, %v1935_v1  ;;  %v1937_v20 = vsub.f32 %v3285_v17, %v1935_v1  ;;  %s5284_s29 = sld [smem:[#allocation3 + %s2037_s19]]  ;;  %s2807_s25 = sadd.s32 384, %s5226_s4 }
 0x22e   : >> { %v1837_v43 = vadd.f32 %v1833_v51, %v1824_v49  ;;  %v1838_v25 = vadd.f32 %v1834_v28, %v1825_v57  ;;  %v1938_v62 = vsub.f32 %v3287_v18, %v1935_v1  ;;  %v1939_v24 = vsub.f32 %v3289_v19, %v1935_v1  ;;  %s5290_s28 = sld [smem:[#allocation3 + %s1797_s2]]  ;;  %s2041_s12 = sadd.s32 %s2807_s25, %s5256_s30 }
 0x22f   : >> { %v1839_v9 = vmul.f32 1.442695, %v1835_v52  ;;  %v1841_v46 = vmul.f32 1.442695, %v1836_v7  ;;  %v1940_v47 = vstv %s5198_s26  ;;  %v1943_v60 = vmul.f32 %v1936_v32, %v1934_v11  ;;  %s1793_s26 = sadd.s32 %s2781_s23, %s4925_s24  ;;  %s2797_s23 = sadd.s32 768, %s5091_s27 }
 0x230   : >> { %v1843_v49 = vmul.f32 1.442695, %v1837_v43  ;;  %v1845_v57 = vmul.f32 1.442695, %v1838_v25  ;;  %v1941_v54 = vmul.f32 %v1940_v47, %v1934_v11  ;;  %v1944_v14 = vmul.f32 %v1937_v20, %v1934_v11  ;;  %s1923_s24 = sadd.s32 %s2797_s23, %s5107_s0  ;;  %s2801_s2 = sadd.s32 1024, %s5091_s27 }
 0x231   : >> { %3042 = vpow2.f32 %v1839_v9  ;;  %v1945_v38 = vmul.f32 %v1938_v62, %v1934_v11  ;;  %v1946_v55 = vmul.f32 %v1939_v24, %v1934_v11  ;;  %v1947_v40 = vstv %s5224_s16  ;;  %s5287_s16 = sld [smem:[#allocation3 + %s1793_s26]]  ;;  %s2799_s26 = sadd.s32 896, %s5091_s27 }
 0x232   : >> { %3044 = vpow2.f32 %v1841_v46  ;;  %v1942_v12 = vmul.f32 %v1941_v54, %v1934_v11  ;;  %v1956_v58 = vstv %s5241_s22  ;;  %v1948_v51 = vmul.f32 %v1947_v40, %v1943_v60  ;;  %s2795_s22 = sadd.s32 640, %s5091_s27  ;;  %s5324_s17 = sld [smem:[#allocation3 + %s2041_s12]] }
 0x233   : >> { %3046 = vpow2.f32 %v1843_v49  ;;  %v1949_v28 = vmul.f32 %v1947_v40, %v1944_v14  ;;  %v1950_v50 = vmul.f32 %v1947_v40, %v1945_v38  ;;  %v1951_v1 = vmul.f32 %v1947_v40, %v1946_v55  ;;  %s1919_s19 = sadd.s32 %s2795_s22, %s5107_s0  ;;  %s2809_s25 = sadd.s32 512, %s5226_s4 }
 0x234   : >> { %3048 = vpow2.f32 %v1845_v57  ;;  %v1957_v52 = vmul.f32 %v1956_v58, %v1936_v32  ;;  %v1958_v7 = vmul.f32 %v1956_v58, %v1937_v20  ;;  %v1952_v11 = vadd.f32 %v1948_v51, %v1942_v12  ;;  %s5336_s27 = sld [smem:[#allocation3 + %s1801_s15]]  ;;  %s1931_s22 = sadd.s32 %s2801_s2, %s5107_s0 }
 0x235   : >> { %v1953_v43 = vadd.f32 %v1949_v28, %v1942_v12  ;;  %v1954_v25 = vadd.f32 %v1950_v50, %v1942_v12  ;;  %v1959_v9 = vmul.f32 %v1956_v58, %v1938_v62  ;;  %v1955_v46 = vadd.f32 %v1951_v1, %v1942_v12  ;;  %s5346_s23 = sld [smem:[#allocation3 + %s1923_s24]]  ;;  %s2045_s12 = sadd.s32 %s2809_s25, %s5256_s30 }
 0x236   : >> { %v1960_v47 = vmul.f32 %v1956_v58, %v1939_v24  ;;  %v1961_v49 = vmul.f32 %v1957_v52, %v1936_v32  ;;  %v1962_v57 = vmul.f32 %v1958_v7, %v1937_v20  ;;  %v5295_v54 = vadd.f32 %v5214_v34, %v5136_v23  ;;  %s5382_s15 = sld [smem:[#allocation3 + %s2045_s12]] }
 0x237   : >> { %v5299_v60 = vadd.f32 %v5203_v0, %v5120_v48  ;;  %v5303_v14 = vadd.f32 %v5207_v10, %v5124_v42  ;;  %v1963_v38 = vmul.f32 %v1959_v9, %v1938_v62  ;;  %v5309_v32 = vadd.f32 %v5218_v21, %v5155_v5 }
 0x238   : >> { %v1964_v23 = vmul.f32 %v1960_v47, %v1939_v24  ;;  %v1965_v34 = vadd.f32 %v1961_v49, %v1952_v11  ;;  %v1966_v48 = vadd.f32 %v1962_v57, %v1953_v43  ;;  %v5315_v0 = vadd.f32 %v5230_v63, %v5158_v13 }
 0x239   : >> { %v5319_v42 = vadd.f32 %v5234_v22, %v5161_v61  ;;  %v1967_v5 = vadd.f32 %v1963_v38, %v1954_v25  ;;  %v2063_v10 = vstv %s5274_s8  ;;  %v2065_v24 = vstv %s5280_s3  ;;  %s1927_s8 = sadd.s32 %s2799_s26, %s5107_s0  ;;  %s5341_s3 = sld [smem:[#allocation3 + %s1919_s19]] }
 0x23a   : >> { %v1968_v21 = vadd.f32 %v1964_v23, %v1955_v46  ;;  %v1969_v20 = vmul.f32 1.442695, %v1965_v34  ;;  %v1971_v62 = vmul.f32 1.442695, %v1966_v48  ;;  %v1745_v13 = vmul.f32 %v5087_v30, %v5145_v44  ;;  %s5365_s0 = sld [smem:[#allocation3 + %s1927_s8]] }
 0x23b   : >> { %v1746_v61 = vmul.f32 %v5087_v30, %v5148_v45  ;;  %v1747_v63 = vmul.f32 %v5087_v30, %v5173_v59  ;;  %v1748_v22 = vmul.f32 %v5087_v30, %v5177_v29  ;;  %v1759_v55 = vadd.f32 1e-10, %v1755_v2 }
 0x23c   : >> { %v1973_v12 = vmul.f32 1.442695, %v1967_v5  ;;  %v2064_v44 = vsub.f32 %v3283_v16, %v2063_v10  ;;  %v2070_v40 = vstv %s5284_s29  ;;  %3050 = vpow2.f32 %v1969_v20  ;;  %s5374_s29 = sld [smem:[#allocation3 + %s1931_s22]] }
 0x23d   : >> { %v1975_v45 = vmul.f32 1.442695, %v1968_v21  ;;  %v5350_v30 = vsub.f32 %v3281_v15, %v2065_v24  ;;  %v5353_v59 = vsub.f32 %v3285_v17, %v2065_v24  ;;  %v1760_v29 = vadd.f32 1e-10, %v1756_v53 }
 0x23e   : >> { %v3043_v37 = vpop.eup %3042  ;;  %v5359_v2 = vmul.f32 %v5196_v26, %v5113_v31  ;;  %v5363_v58 = vmul.f32 %v5210_v33, %v5116_v6  ;;  %3052 = vpow2.f32 %v1971_v62  ;;  %v5368_v28 = vadd.f32 %v1745_v13, %v5166_v27 }
 0x23f   : >> { %v3045_v51 = vpop.eup %3044  ;;  %v5371_v50 = vadd.f32 %v1746_v61, %v5169_v4  ;;  %v1847_v41 = vstv %s5270_s11  ;;  %v5377_v31 = vsub.f32 %v3287_v18, %v2065_v24  ;;  %v5380_v26 = vadd.f32 %v1747_v63, %v5180_v35  ;;  %s5397_s11 = sadd.s32 15, %s3297_s18 }
 0x240   : >> { %v3047_v6 = vpop.eup %3046  ;;  %3054 = vpow2.f32 %v1973_v12  ;;  %v5385_v27 = vsub.f32 %v3289_v19, %v2065_v24  ;;  %v2071_v4 = vmul.f32 %v2070_v40, %v2064_v44  ;;  %v5388_v33 = vadd.f32 %v1748_v22, %v5183_v56  ;;  %s2157_s18 = sshra.s32 %s5397_s11, 7  ;;  %s5438_s19 = sand.u32 127, %s5397_s11 }
 0x241   : >> { %v3049_v53 = vpop.eup %3048  ;;  %3056 = vpow2.f32 %v1975_v45  ;;  %v2073_v1 = vmul.f32 %v5350_v30, %v2064_v44  ;;  %v2074_v35 = vmul.f32 %v5353_v59, %v2064_v44  ;;  %v5393_v52 = vmul.f32 %v1759_v55, %v5127_v8  ;;  %s5469_s2 = sld [smem:[#allocation3 + %s5397_s11]] }
 0x242   : >> { %v1848_v7 = vmul.f32 %v3043_v37, %v1847_v41  ;;  %v1849_v11 = vmul.f32 %v3045_v51, %v1847_v41  ;;  %v2077_v43 = vstv %s5324_s17  ;;  %v1764_v25 = vmul.f32 %v1760_v29, %v5129_v3 }
 0x243   : >> { %v1856_v56 = vstv %s5287_s16  ;;  %v1865_v9 = vstv %s5290_s28  ;;  %v2075_v46 = vmul.f32 %v5377_v31, %v2064_v44  ;;  %v1874_v8 = vstv %s5336_s27  ;;  %s5428_s16 = sshll.u32 %s2157_s18, 7 }
 0x244   : >> { %v1852_v47 = vmul.f32 %v1848_v7, %v5359_v2  ;;  %v5405_v49 = vmul.f32 %v2071_v4, %v2064_v44  ;;  %v2076_v57 = vmul.f32 %v5385_v27, %v2064_v44  ;;  %v1850_v38 = vmul.f32 %v3047_v6, %v1847_v41  ;;  %s2819_s28 = sadd.s32 128, %s5428_s16  ;;  %s2821_s24 = sadd.s32 256, %s5428_s16 }
 0x245   : >> { %v1851_v23 = vmul.f32 %v3049_v53, %v1847_v41  ;;  %v2078_v34 = vmul.f32 %v2077_v43, %v2073_v1  ;;  %v2079_v48 = vmul.f32 %v2077_v43, %v2074_v35  ;;  %v1883_v3 = vsub.f32 1.0, %v1848_v7  ;;  %s2163_s26 = sadd.s32 %s2819_s28, %s5438_s19  ;;  %s2823_s25 = sadd.s32 384, %s5428_s16 }
 0x246   : >> { %v1884_v5 = vsub.f32 1.0, %v1849_v11  ;;  %v1977_v10 = vstv %s5341_s3  ;;  %v5411_v21 = vstv %s5346_s23  ;;  %v1853_v20 = vmul.f32 %v1849_v11, %v5363_v58  ;;  %s5479_s17 = sld [smem:[#allocation3 + %s2163_s26]]  ;;  %s2167_s27 = sadd.s32 %s2821_s24, %s5438_s19 }
 0x247   : >> { %v5415_v62 = vstv %s5365_s0  ;;  %v5418_v24 = vstv %s5374_s29  ;;  %v5420_v13 = vmul.f32 %v2077_v43, %v2075_v46  ;;  %v1854_v61 = vmul.f32 %v1850_v38, %v5393_v52  ;;  %s2825_s8 = sadd.s32 512, %s5428_s16  ;;  %s2171_s3 = sadd.s32 %s2823_s25, %s5438_s19 }
 0x248   : >> { %5795 = vst [vmem:[#allocation17_spill] sm:$0xff] %v5418_v24  ;;  %v1857_v63 = vmul.f32 %v1856_v56, %v1852_v47  ;;  %v5423_v22 = vmul.f32 %v2077_v43, %v2076_v57  ;;  %v5426_v55 = vstv %s5382_s15  ;;  %v1885_v12 = vsub.f32 1.0, %v1850_v38  ;;  %s5525_s22 = sld [smem:[#allocation3 + %s2167_s27]]  ;;  %s2175_s23 = sadd.s32 %s2825_s8, %s5438_s19 }
 0x249   : >> { %v1886_v44 = vsub.f32 1.0, %v1851_v23  ;;  %v5431_v40 = vadd.f32 %v2078_v34, %v5405_v49  ;;  %v5434_v45 = vadd.f32 %v2079_v48, %v5405_v49  ;;  %v3051_v37 = vpop.eup %3050  ;;  %v1855_v29 = vmul.f32 %v1851_v23, %v1764_v25  ;;  %s5551_s12 = sld [smem:[#allocation3 + %s2171_s3]]  ;;  %s2811_s0 = sadd.s32 640, %s5226_s4 }
 0x24a   : >> { %v1866_v51 = vmul.f32 %v1865_v9, %v1852_v47  ;;  %v1887_v41 = vadd.f32 1e-10, %v1883_v3  ;;  %v1888_v6 = vadd.f32 1e-10, %v1884_v5  ;;  %v1858_v53 = vmul.f32 %v1856_v56, %v1853_v20  ;;  %s5566_s29 = sld [smem:[#allocation3 + %s2175_s23]]  ;;  %s2813_s15 = sadd.s32 768, %s5226_s4 }
 0x24b   : >> { %v3053_v4 = vpop.eup %3052  ;;  %v1867_v1 = vmul.f32 %v1865_v9, %v1853_v20  ;;  %v1889_v35 = vadd.f32 1e-10, %v1885_v12  ;;  %v1890_v7 = vadd.f32 1e-10, %v1886_v44  ;;  %v1859_v11 = vmul.f32 %v1856_v56, %v1854_v61  ;;  %s2049_s11 = sadd.s32 %s2811_s0, %s5256_s30  ;;  %s2053_s18 = sadd.s32 %s2813_s15, %s5256_s30 }
 0x24c   : >> { %v5441_v43 = vadd.f32 %v1857_v63, %v5244_v39  ;;  %v1875_v46 = vmul.f32 %v1874_v8, %v1852_v47  ;;  %v1876_v57 = vmul.f32 %v1874_v8, %v1853_v20  ;;  %v1868_v23 = vmul.f32 %v1865_v9, %v1854_v61  ;;  %s2815_s28 = sadd.s32 896, %s5226_s4  ;;  %s5591_s26 = sld [smem:[#allocation3 + %s2049_s11]] }
 0x24d   : >> { %v3055_v38 = vpop.eup %3054  ;;  %v5444_v34 = vmul.f32 %v1887_v41, %v5359_v2  ;;  %v5447_v48 = vmul.f32 %v1888_v6, %v5363_v58  ;;  %v1978_v3 = vmul.f32 %v3051_v37, %v1977_v10  ;;  %v1860_v12 = vmul.f32 %v1856_v56, %v1855_v29  ;;  %s2817_s24 = sadd.s32 1024, %s5226_s4  ;;  %s2057_s25 = sadd.s32 %s2815_s28, %s5256_s30 }
 0x24e   : >> { %v3057_v5 = vpop.eup %3056  ;;  %v1869_v44 = vmul.f32 %v1865_v9, %v1855_v29  ;;  %v5450_v24 = vadd.f32 %v1866_v51, %v5299_v60  ;;  %v1979_v39 = vmul.f32 %v3053_v4, %v1977_v10  ;;  %v1862_v47 = vadd.f32 %v1858_v53, %v5246_v36  ;;  %s2829_s27 = sadd.s32 768, %s5428_s16  ;;  %s2061_s4 = sadd.s32 %s2817_s24, %s5256_s30 }
 0x24f   : >> { %v5455_v20 = vadd.f32 %v1867_v1, %v5303_v14  ;;  %v5458_v2 = vmul.f32 %v1889_v35, %v5393_v52  ;;  %v5460_v58 = vmul.f32 %v1890_v7, %v1764_v25  ;;  %v5464_v56 = vadd.f32 %v1859_v11, %v5295_v54  ;;  %s2831_s8 = sadd.s32 896, %s5428_s16  ;;  %s5605_s23 = sld [smem:[#allocation3 + %s2057_s25]] }
 0x250   : >> { %v1877_v60 = vmul.f32 %v1874_v8, %v1854_v61  ;;  %v1878_v9 = vmul.f32 %v1874_v8, %v1855_v29  ;;  %v5466_v63 = vmul.f32 %v3055_v38, %v1977_v10  ;;  %v5471_v36 = vmul.f32 %v3057_v5, %v1977_v10  ;;  %s2183_s0 = sadd.s32 %s2829_s27, %s5438_s19  ;;  %s5608_s30 = sld [smem:[#allocation3 + %s2061_s4]] }
 0x251   : >> { %v5474_v14 = vmul.f32 %v1978_v3, %v5444_v34  ;;  %v5477_v52 = vmul.f32 %v1979_v39, %v5447_v48  ;;  %v2013_v25 = vsub.f32 1.0, %v1978_v3  ;;  %v5483_v54 = vadd.f32 %v1860_v12, %v5309_v32  ;;  %s5630_s15 = sld [smem:[#allocation3 + %s2183_s0]] }
 0x252   : >> { %v5486_v8 = vadd.f32 %v1868_v23, %v5315_v0  ;;  %v5489_v10 = vadd.f32 %v1869_v44, %v5319_v42  ;;  %v2014_v61 = vsub.f32 1.0, %v1979_v39  ;;  %v5494_v37 = vadd.f32 %v1875_v46, %v5368_v28 }
 0x253   : >> { %v5497_v29 = vadd.f32 %v1876_v57, %v5371_v50  ;;  %v5501_v32 = vmul.f32 %v5466_v63, %v5458_v2  ;;  %v5505_v0 = vmul.f32 %v5471_v36, %v5460_v58  ;;  %v5508_v42 = vadd.f32 %v1877_v60, %v5380_v26 }
 0x254   : >> { %v5511_v51 = vadd.f32 %v1878_v9, %v5388_v33  ;;  %v2084_v28 = vadd.f32 %v5420_v13, %v5405_v49  ;;  %v2085_v50 = vadd.f32 %v5423_v22, %v5405_v49  ;;  %v1987_v41 = vmul.f32 %v5411_v21, %v5474_v14 }
 0x255   : >> { %v1988_v6 = vmul.f32 %v5411_v21, %v5477_v52  ;;  %v2015_v26 = vsub.f32 1.0, %v5466_v63  ;;  %v5523_v4 = vadd.f32 1e-10, %v2013_v25  ;;  %v5530_v33 = vmul.f32 %v5415_v62, %v5474_v14 }
 0x256   : >> { %v5534_v49 = vmul.f32 %v5415_v62, %v5477_v52  ;;  %v2016_v13 = vsub.f32 1.0, %v5471_v36  ;;  %v5537_v22 = vadd.f32 1e-10, %v2014_v61  ;;  %v5541_v53 = vmul.f32 %v5411_v21, %v5501_v32 }
 0x257   : >> { %v5545_v1 = vmul.f32 %v5411_v21, %v5505_v0  ;;  %v2087_v35 = vmul.f32 %v5426_v55, %v5350_v30  ;;  %v2088_v7 = vmul.f32 %v5426_v55, %v5353_v59  ;;  %v5555_v11 = vmul.f32 %v5415_v62, %v5501_v32 }
 0x258   : >> { %v5559_v46 = vmul.f32 %v5415_v62, %v5505_v0  ;;  %v2089_v21 = vmul.f32 %v5426_v55, %v5377_v31  ;;  %v2090_v57 = vmul.f32 %v5426_v55, %v5385_v27  ;;  %v5569_v38 = vadd.f32 %v1987_v41, %v5441_v43 }
 0x259   : >> { %v5571_v23 = vadd.f32 %v1988_v6, %v1862_v47  ;;  %v2091_v3 = vmul.f32 %v2087_v35, %v5350_v30  ;;  %v2092_v62 = vmul.f32 %v2088_v7, %v5353_v59  ;;  %v2193_v44 = vstv %s5469_s2  ;;  %s5594_s2 = sld [smem:[#allocation3 + %s2053_s18]] }
 0x25a   : >> { %v2093_v5 = vmul.f32 %v2089_v21, %v5377_v31  ;;  %v2094_v12 = vmul.f32 %v2090_v57, %v5385_v27  ;;  %v2195_v55 = vstv %s5479_s17  ;;  %v2194_v47 = vsub.f32 %v3283_v16, %v2193_v44  ;;  %s2827_s17 = sadd.s32 640, %s5428_s16 }
 0x25b   : >> { %v2095_v43 = vadd.f32 %v2091_v3, %v5431_v40  ;;  %v2096_v39 = vadd.f32 %v2092_v62, %v5434_v45  ;;  %v2196_v30 = vsub.f32 %v3281_v15, %v2195_v55  ;;  %v2197_v31 = vsub.f32 %v3285_v17, %v2195_v55  ;;  %s2179_s3 = sadd.s32 %s2827_s17, %s5438_s19 }
 0x25c   : >> { %v2097_v60 = vadd.f32 %v2093_v5, %v2084_v28  ;;  %v2098_v59 = vadd.f32 %v2094_v12, %v2085_v50  ;;  %v2198_v27 = vsub.f32 %v3287_v18, %v2195_v55  ;;  %v2199_v40 = vsub.f32 %v3289_v19, %v2195_v55 }
 0x25d   : >> { %v2099_v9 = vmul.f32 1.442695, %v2095_v43  ;;  %v2101_v25 = vmul.f32 1.442695, %v2096_v39  ;;  %v2200_v45 = vstv %s5525_s22  ;;  %v2203_v41 = vmul.f32 %v2196_v30, %v2194_v47  ;;  %s2833_s22 = sadd.s32 1024, %s5428_s16  ;;  %s5623_s16 = sld [smem:[#allocation3 + %s2179_s3]] }
 0x25e   : >> { %v2103_v61 = vmul.f32 1.442695, %v2097_v60  ;;  %v2105_v28 = vmul.f32 1.442695, %v2098_v59  ;;  %v2201_v50 = vmul.f32 %v2200_v45, %v2194_v47  ;;  %v2204_v6 = vmul.f32 %v2197_v31, %v2194_v47 }
 0x25f   : >> { %3058 = vpow2.f32 %v2099_v9  ;;  %v2205_v35 = vmul.f32 %v2198_v27, %v2194_v47  ;;  %v2206_v7 = vmul.f32 %v2199_v40, %v2194_v47  ;;  %v2207_v57 = vstv %s5551_s12  ;;  %s2187_s12 = sadd.s32 %s2831_s8, %s5438_s19 }
 0x260   : >> { %3060 = vpow2.f32 %v2101_v25  ;;  %v2202_v21 = vmul.f32 %v2201_v50, %v2194_v47  ;;  %v2216_v3 = vstv %s5566_s29  ;;  %v2208_v62 = vmul.f32 %v2207_v57, %v2203_v41  ;;  %s2191_s29 = sadd.s32 %s2833_s22, %s5438_s19  ;;  %s5638_s19 = sld [smem:[#allocation3 + %s2187_s12]] }
 0x261   : >> { %3062 = vpow2.f32 %v2103_v61  ;;  %v2209_v5 = vmul.f32 %v2207_v57, %v2204_v6  ;;  %v2210_v12 = vmul.f32 %v2207_v57, %v2205_v35  ;;  %v2211_v44 = vmul.f32 %v2207_v57, %v2206_v7  ;;  %s5642_s11 = sld [smem:[#allocation3 + %s2191_s29]] }
 0x262   : >> { %3064 = vpow2.f32 %v2105_v28  ;;  %v2217_v55 = vmul.f32 %v2216_v3, %v2196_v30  ;;  %v2218_v43 = vmul.f32 %v2216_v3, %v2197_v31  ;;  %v2212_v39 = vadd.f32 %v2208_v62, %v2202_v21 }
 0x263   : >> { %v2213_v47 = vadd.f32 %v2209_v5, %v2202_v21  ;;  %v2214_v60 = vadd.f32 %v2210_v12, %v2202_v21  ;;  %v2219_v59 = vmul.f32 %v2216_v3, %v2198_v27  ;;  %v2215_v9 = vadd.f32 %v2211_v44, %v2202_v21 }
 0x264   : >> { %v2220_v25 = vmul.f32 %v2216_v3, %v2199_v40  ;;  %v2221_v45 = vmul.f32 %v2217_v55, %v2196_v30  ;;  %v2222_v61 = vmul.f32 %v2218_v43, %v2197_v31  ;;  %v5613_v28 = vadd.f32 %v5541_v53, %v5464_v56 }
 0x265   : >> { %v5617_v50 = vadd.f32 %v5530_v33, %v5450_v24  ;;  %v5621_v41 = vadd.f32 %v5534_v49, %v5455_v20  ;;  %v2223_v6 = vmul.f32 %v2219_v59, %v2198_v27  ;;  %v5628_v30 = vadd.f32 %v5545_v1, %v5483_v54  ;;  %v5796_v24 = vld [vmem:[#allocation17_spill] sm:$0xff] }
 0x266   : >> { %v2224_v56 = vmul.f32 %v2220_v25, %v2199_v40  ;;  %v2225_v53 = vadd.f32 %v2221_v45, %v2212_v39  ;;  %v2226_v31 = vadd.f32 %v2222_v61, %v2213_v47  ;;  %v2005_v33 = vmul.f32 %v5796_v24, %v5474_v14 }
 0x267   : >> { %v2006_v20 = vmul.f32 %v5796_v24, %v5477_v52  ;;  %v2007_v49 = vmul.f32 %v5796_v24, %v5501_v32  ;;  %v2227_v27 = vadd.f32 %v2223_v6, %v2214_v60  ;;  %v2008_v54 = vmul.f32 %v5796_v24, %v5505_v0 }
 0x268   : >> { %v2228_v1 = vadd.f32 %v2224_v56, %v2215_v9  ;;  %v2229_v40 = vmul.f32 1.442695, %v2225_v53  ;;  %v2231_v35 = vmul.f32 1.442695, %v2226_v31  ;;  %v2002_v14 = vadd.f32 %v5555_v11, %v5486_v8 }
 0x269   : >> { %v2019_v52 = vadd.f32 1e-10, %v2015_v26  ;;  %v2020_v32 = vadd.f32 1e-10, %v2016_v13  ;;  %v2233_v7 = vmul.f32 1.442695, %v2227_v27  ;;  %v2003_v21 = vadd.f32 %v5559_v46, %v5489_v10 }
 0x26a   : >> { %v2107_v57 = vstv %s5591_s26  ;;  %3066 = vpow2.f32 %v2229_v40  ;;  %v2235_v0 = vmul.f32 1.442695, %v2228_v1  ;;  %v2009_v3 = vadd.f32 %v2005_v33, %v5494_v37 }
 0x26b   : >> { %v5656_v62 = vmul.f32 %v5523_v4, %v5444_v34  ;;  %v5660_v63 = vmul.f32 %v5537_v22, %v5447_v48  ;;  %3068 = vpow2.f32 %v2231_v35  ;;  %v2010_v8 = vadd.f32 %v2006_v20, %v5497_v29 }
 0x26c   : >> { %v3059_v36 = vpop.eup %3058  ;;  %v2011_v10 = vadd.f32 %v2007_v49, %v5508_v42  ;;  %v2012_v37 = vadd.f32 %v2008_v54, %v5511_v51  ;;  %3070 = vpow2.f32 %v2233_v7  ;;  %v2023_v34 = vmul.f32 %v2019_v52, %v5458_v2 }
 0x26d   : >> { %v3061_v26 = vpop.eup %3060  ;;  %v2024_v4 = vmul.f32 %v2020_v32, %v5460_v58  ;;  %v2108_v48 = vmul.f32 %v3059_v36, %v2107_v57  ;;  %3072 = vpow2.f32 %v2235_v0  ;;  %v2116_v11 = vstv %s5594_s2 }
 0x26e   : >> { %v3063_v13 = vpop.eup %3062  ;;  %v2109_v22 = vmul.f32 %v3061_v26, %v2107_v57  ;;  %v2125_v29 = vstv %s5605_s23  ;;  %v2134_v46 = vstv %s5608_s30  ;;  %v2237_v12 = vstv %s5623_s16 }
 0x26f   : >> { %v3065_v42 = vpop.eup %3064  ;;  %v2110_v5 = vmul.f32 %v3063_v13, %v2107_v57  ;;  %v2112_v51 = vmul.f32 %v2108_v48, %v5656_v62  ;;  %v5673_v44 = vstv %s5630_s15  ;;  %v5677_v43 = vstv %s5638_s19 }
 0x270   : >> { %v2111_v55 = vmul.f32 %v3065_v42, %v2107_v57  ;;  %v2113_v2 = vmul.f32 %v2109_v22, %v5660_v63  ;;  %v5680_v58 = vstv %s5642_s11  ;;  %v2143_v59 = vsub.f32 1.0, %v2108_v48 }
 0x271   : >> { %v2114_v39 = vmul.f32 %v2110_v5, %v2023_v34  ;;  %v2117_v47 = vmul.f32 %v2116_v11, %v2112_v51  ;;  %v2126_v60 = vmul.f32 %v2125_v29, %v2112_v51  ;;  %v2144_v61 = vsub.f32 1.0, %v2109_v22 }
 0x272   : >> { %v2115_v9 = vmul.f32 %v2111_v55, %v2024_v4  ;;  %v2118_v25 = vmul.f32 %v2116_v11, %v2113_v2  ;;  %v2127_v45 = vmul.f32 %v2125_v29, %v2113_v2  ;;  %v2135_v53 = vmul.f32 %v2134_v46, %v2112_v51 }
 0x273   : >> { %v2119_v6 = vmul.f32 %v2116_v11, %v2114_v39  ;;  %v2128_v56 = vmul.f32 %v2125_v29, %v2114_v39  ;;  %v2136_v31 = vmul.f32 %v2134_v46, %v2113_v2  ;;  %v2121_v33 = vadd.f32 %v2117_v47, %v5569_v38 }
 0x274   : >> { %v2120_v24 = vmul.f32 %v2116_v11, %v2115_v9  ;;  %v2129_v20 = vmul.f32 %v2125_v29, %v2115_v9  ;;  %v2130_v49 = vadd.f32 %v2126_v60, %v5617_v50  ;;  %v2122_v27 = vadd.f32 %v2118_v25, %v5571_v23 }
 0x275   : >> { %v2131_v54 = vadd.f32 %v2127_v45, %v5621_v41  ;;  %v2137_v1 = vmul.f32 %v2134_v46, %v2114_v39  ;;  %v2138_v40 = vmul.f32 %v2134_v46, %v2115_v9  ;;  %v2123_v35 = vadd.f32 %v2119_v6, %v5613_v28 }
 0x276   : >> { %v2124_v52 = vadd.f32 %v2120_v24, %v5628_v30  ;;  %v2132_v32 = vadd.f32 %v2128_v56, %v2002_v14  ;;  %v2133_v7 = vadd.f32 %v2129_v20, %v2003_v21  ;;  %v5688_v0 = vadd.f32 %v2135_v53, %v2009_v3 }
 0x277   : >> { %v3067_v57 = vpop.eup %3066  ;;  %v5690_v36 = vadd.f32 %v2136_v31, %v2010_v8  ;;  %v2145_v38 = vsub.f32 1.0, %v2110_v5  ;;  %v2146_v26 = vsub.f32 1.0, %v2111_v55  ;;  %v2141_v48 = vadd.f32 %v2137_v1, %v2011_v10 }
 0x278   : >> { %v3069_v50 = vpop.eup %3068  ;;  %v2147_v23 = vadd.f32 1e-10, %v2143_v59  ;;  %v2148_v13 = vadd.f32 1e-10, %v2144_v61  ;;  %v2238_v41 = vmul.f32 %v3067_v57, %v2237_v12  ;;  %v2142_v11 = vadd.f32 %v2138_v40, %v2012_v37 }
 0x279   : >> { %v3071_v22 = vpop.eup %3070  ;;  %v2149_v29 = vadd.f32 1e-10, %v2145_v38  ;;  %v2150_v28 = vadd.f32 1e-10, %v2146_v26  ;;  %v2239_v46 = vmul.f32 %v3069_v50, %v2237_v12 }
 0x27a   : >> { %v3073_v30 = vpop.eup %3072  ;;  %v2151_v14 = vmul.f32 %v2147_v23, %v5656_v62  ;;  %v2152_v21 = vmul.f32 %v2148_v13, %v5660_v63  ;;  %v2240_v3 = vmul.f32 %v3071_v22, %v2237_v12  ;;  %v2273_v8 = vsub.f32 1.0, %v2238_v41 }
 0x27b   : >> { %v2153_v42 = vmul.f32 %v2149_v29, %v2023_v34  ;;  %v2154_v5 = vmul.f32 %v2150_v28, %v2024_v4  ;;  %v2241_v51 = vmul.f32 %v3073_v30, %v2237_v12  ;;  %v2274_v55 = vsub.f32 1.0, %v2239_v46 }
 0x27c   : >> { %v2242_v10 = vmul.f32 %v2238_v41, %v2151_v14  ;;  %v2243_v2 = vmul.f32 %v2239_v46, %v2152_v21  ;;  %v2275_v39 = vsub.f32 1.0, %v2240_v3  ;;  %v2277_v47 = vadd.f32 1e-10, %v2273_v8 }
 0x27d   : >> { %v2244_v60 = vmul.f32 %v2240_v3, %v2153_v42  ;;  %v2245_v37 = vmul.f32 %v2241_v51, %v2154_v5  ;;  %v2276_v59 = vsub.f32 1.0, %v2241_v51  ;;  %v2278_v9 = vadd.f32 1e-10, %v2274_v55 }
 0x27e   : >> { %v2247_v25 = vmul.f32 %v5673_v44, %v2242_v10  ;;  %v2248_v62 = vmul.f32 %v5673_v44, %v2243_v2  ;;  %v2256_v63 = vmul.f32 %v5677_v43, %v2242_v10  ;;  %v2257_v45 = vmul.f32 %v5677_v43, %v2243_v2 }
 0x27f   : >> { %v2249_v34 = vmul.f32 %v5673_v44, %v2244_v60  ;;  %v2250_v4 = vmul.f32 %v5673_v44, %v2245_v37  ;;  %v2258_v12 = vmul.f32 %v5677_v43, %v2244_v60  ;;  %v2259_v61 = vmul.f32 %v5677_v43, %v2245_v37 }
 0x280   : >> { %v2251_v6 = vadd.f32 %v2247_v25, %v2121_v33  ;;  %v2252_v56 = vadd.f32 %v2248_v62, %v2122_v27  ;;  %v2260_v53 = vadd.f32 %v2256_v63, %v2130_v49  ;;  %v2261_v31 = vadd.f32 %v2257_v45, %v2131_v54 }
 0x281   : >> { %v2253_v24 = vadd.f32 %v2249_v34, %v2123_v35  ;;  %v2254_v20 = vadd.f32 %v2250_v4, %v2124_v52  ;;  %v2262_v1 = vadd.f32 %v2258_v12, %v2132_v32  ;;  %v2263_v40 = vadd.f32 %v2259_v61, %v2133_v7 }
 0x282   : >> { %v2265_v44 = vmul.f32 %v5680_v58, %v2242_v10  ;;  %v2266_v57 = vmul.f32 %v5680_v58, %v2243_v2  ;;  %v2267_v38 = vmul.f32 %v5680_v58, %v2244_v60  ;;  %v2268_v43 = vmul.f32 %v5680_v58, %v2245_v37  ;;  %2289 = vst [vmem:[%s3267_s5] sm:$0xff] %v2251_v6 }
 0x283   : >> { %2290 = vst [vmem:[%s3267_s5 + $0x8] sm:$0xff] %v2252_v56  ;;  %2565 = vst [vmem:[%s3267_s5 + $0x20] sm:$0xff] %v2260_v53  ;;  %v2279_v33 = vadd.f32 1e-10, %v2275_v39  ;;  %v2280_v49 = vadd.f32 1e-10, %v2276_v59  ;;  %v2281_v27 = vmul.f32 %v2277_v47, %v2151_v14  ;;  %v2282_v54 = vmul.f32 %v2278_v9, %v2152_v21 }
 0x284   : >> { %2566 = vst [vmem:[%s3267_s5 + $0x28] sm:$0xff] %v2261_v31  ;;  %2291 = vst [vmem:[%s3267_s5 + $0x10] sm:$0xff] %v2253_v24  ;;  %v2269_v35 = vadd.f32 %v2265_v44, %v5688_v0  ;;  %v2270_v58 = vadd.f32 %v2266_v57, %v5690_v36  ;;  %v2271_v52 = vadd.f32 %v2267_v38, %v2141_v48 }
 0x285   : >> { %2292 = vst [vmem:[%s3267_s5 + $0x18] sm:$0xff] %v2254_v20  ;;  %2567 = vst [vmem:[%s3267_s5 + $0x30] sm:$0xff] %v2262_v1  ;;  %v2272_v32 = vadd.f32 %v2268_v43, %v2142_v11  ;;  %v2283_v7 = vmul.f32 %v2279_v33, %v2153_v42  ;;  %v2284_v26 = vmul.f32 %v2280_v49, %v2154_v5 }
 0x286   : >> { %2568 = vst [vmem:[%s3267_s5 + $0x38] sm:$0xff] %v2263_v40  ;;  %2285 = vst [vmem:[#allocation2 + $0x10] sm:$0xff] %v2281_v27 }
 0x287   : >> { %2286 = vst [vmem:[#allocation2] sm:$0xff] %v2282_v54  ;;  %2569 = vst [vmem:[%s3267_s5 + $0x40] sm:$0xff] %v2269_v35 }
 0x288   : >> { %2570 = vst [vmem:[%s3267_s5 + $0x48] sm:$0xff] %v2270_v58  ;;  %2571 = vst [vmem:[%s3267_s5 + $0x50] sm:$0xff] %v2271_v52 }
 0x289   : >> { %2572 = vst [vmem:[%s3267_s5 + $0x58] sm:$0xff] %v2272_v32  ;;  %2287 = vst [vmem:[#allocation2 + $0x18] sm:$0xff] %v2283_v7 }
 0x28a   : >> { %2288 = vst [vmem:[#allocation2 + $0x8] sm:$0xff] %v2284_v26 }
 0x28b PF: >> { %s166_s14 = sadd.s32 1, %s3163_s14  }
 0x28c   : >> { %p163_p2 = scmp.ge.s32.totalorder %s166_s14, 3  }
 0x28d   : > { %s5797_s18 = sand.u32 (%p163_p2), 1, %s3135_s7  }
 0x28e   : > { %165 = sbr.rel (!%p163_p2) target bundleno = 48 (0x30), region = 79  ;;  %s2302_s28 = scalar_lea.sflag (%p163_p2), [#allocation4], %s5797_s18 }
 0x293   : > { %s2834_s26 = sshll.u32 %s3147_s10, 3  ;;  %s2327_s24 = sshll.u32 %s3267_s5, 4  ;;  %s2328_s24 = int_to_ptr.vmem [resolvable:$true] %s2327_s24 }
 0x294   : > { %s2314_s2 = sadd.s32 %s3143_s9, %s2834_s26  ;;  %s3170_s4 = smov 512  }
 0x295   : > { %s2575_s17 = sshll.u32 %s2314_s2, 7  ;;  %2842 = sst [smem:[#allocation8]] (%p3240_p3), %s3170_s4 }
 0x296   : > { %s2316_s27 = scalar_lea.hbm %s5774_s1, %s2575_s17  ;;  %s3171_s8 = smov 2048  }
 0x297   : > { %2843 = sst [smem:[#allocation8 + $0x1]] (%p3240_p3), %s3171_s8  ;;  %s3172_s3 = smov 4  }
 0x298   : > { %2844 = sst [smem:[#allocation8 + $0x2]] (%p3240_p3), %s3172_s3  ;;  %s3173_s10 = smov 128  }
 0x299   : > { %2845 = sst [smem:[#allocation8 + $0x3]] (%p3240_p3), %s3173_s10  ;;  %s3174_s9 = smov 256  }
 0x29a   : > { %2846 = sst [smem:[#allocation8 + $0x4]] (%p3240_p3), %s3174_s9  ;;  %s3175_s5 = smov 8  }
 0x29b   : > { %2847 = sst [smem:[#allocation8 + $0x5]] (%p3240_p3), %s3175_s5  ;;  %s3176_s22 = smov 131072  }
 0x29c   : > { %s3177_s23 = smov 0  }
 0x29d   : > { %2848 = dma.general (%p3240_p3), %s2328_s24, 1536, %s2316_s27, %s2302_s28, %s3176_s22, [#allocation8], %s3177_s23, 0  }
 0x29e PF: > { %p2860_p4 = scmp.ge.s32.totalorder %s3159_s13, 2  ;;  %s2355_s0 = sand.u32 1, %s3131_s6  }
 0x29f   : > { %s2356_s30 = scalar_lea.sflag [#allocation4], %s2355_s0 }
 0x2a0   : > { %p2855_p5 = pnand %p2860_p4, %p3249_p8 }
 0x2a2   : > { %p2856_p6 = pneg %p2855_p5 }
 0x2a4   : > { %3126 = dma.done.wait (%p2856_p6), %s2356_s30, 1536  }
 0x2a5   : > { %3128 = vsyncadd (%p2856_p6), %s2356_s30, 4294965760  ;;  %s15_s13 = sadd.s32 1, %s3159_s13   ;;  %s5798_s12 = sld [smem:[#allocation11_spill]] }
 0x2a6   : > { %p12_p7 = scmp.ge.s32.totalorder %s15_s13, 6   ;;  %s5799_s8 = sld [smem:[#allocation16_spill]] }
 0x2a7   : > { %s5800_s9 = sld [smem:[#allocation12_spill]]  ;;  %s5804_s6 = smov %s3135_s7 }
 0x2a8   : > { %s5801_s10 = sld [smem:[#allocation13_spill]] }
 0x2a9   : > { %s5802_s11 = sld [smem:[#allocation14_spill]] }
 0x2aa   : > { %s5803_s20 = sld [smem:[#allocation15_spill]] }
 0x2ab   : > { %s5805_s7 = smov %s5798_s12 }
 0x2ac   :  { %14 = sbr.rel (!%p12_p7) target bundleno = 8 (0x8), region = 90 }
 0x2b0   : > { %s5806_s12 = smov %s5803_s20 }
 0x2b1   :  { %2361 = vsyncpa [#allocation4], 1 }
 0x2b2   :  { %2363 = vsyncpa [#allocation4 + $0x1], 1 }
 0x2b3   :  { %2364 = vsyncpa [#allocation5], 1 }
 0x2b4   :  { %2366 = vsyncpa [#allocation5 + $0x1], 1 }

</bundles_post_ra>
